<compile_context>
chip_gen: v6e
topology: v6e:2x2x1
jax: 0.10.0
libtpu: 0.0.40
codegen_flags: <defaults>
</compile_context>

<pallas_src>
import numpy as np
import jax
import jax.numpy as jnp
from jax.experimental import pallas as pl
from jax.experimental.pallas import tpu as pltpu

FFT_SIZE = 128
HOP_SIZE = 32
WIN_SIZE = 128
N_FREQ = FFT_SIZE // 2 + 1          # 65 real-FFT bins
N_FREQ_PAD = 128                    # pad bins to a full lane width
TILE_N = 256                        # frame rows per grid step
EPS = 1e-7


# ---------------------------------------------------------------------------
# Deterministic "parameters": Hann window + window-folded fused DFT basis.
# ---------------------------------------------------------------------------
def _make_window_np():
    # torch.hann_window(win_size) (periodic): 0.5 * (1 - cos(2*pi*n/win_size))
    n = np.arange(WIN_SIZE, dtype=np.float64)
    w = 0.5 * (1.0 - np.cos(2.0 * np.pi * n / WIN_SIZE))
    # torch.stft centre-pads the window to n_fft if win_length < n_fft.
    left = (FFT_SIZE - WIN_SIZE) // 2
    right = FFT_SIZE - WIN_SIZE - left
    return np.pad(w, (left, right))


def _make_fused_basis():
    """(FFT_SIZE, 2*N_FREQ_PAD) basis with the Hann window folded into rows.

    columns [0, N_FREQ)                      -> window[n] *  cos(2*pi*n*k/N)
    columns [N_FREQ_PAD, N_FREQ_PAD+N_FREQ)  -> window[n] * -sin(2*pi*n*k/N)
    remaining columns are zero (padded lanes -> zero magnitude -> 0 in sums).
    """
    win = _make_window_np()
    n = np.arange(FFT_SIZE, dtype=np.float64)[:, None]
    k = np.arange(N_FREQ, dtype=np.float64)[None, :]
    ang = 2.0 * np.pi * n * k / FFT_SIZE
    basis = np.zeros((FFT_SIZE, 2 * N_FREQ_PAD), dtype=np.float64)
    basis[:, :N_FREQ] = win[:, None] * np.cos(ang)
    basis[:, N_FREQ_PAD:N_FREQ_PAD + N_FREQ] = win[:, None] * (-np.sin(ang))
    return jnp.asarray(basis, dtype=jnp.float32)


WINDOW = jnp.asarray(_make_window_np(), dtype=jnp.float32)   # reference only
BASIS = _make_fused_basis()                                  # (128, 256)


# ---------------------------------------------------------------------------
# Glue: reflect-pad + frame (pure JAX layout plumbing, NO window multiply).
# ---------------------------------------------------------------------------
def _frame_signal(x):
    B, T = x.shape
    pad = FFT_SIZE // 2
    x_pad = jnp.pad(x, ((0, 0), (pad, pad)), mode="reflect")   # center=True
    n_frames = 1 + (T + 2 * pad - FFT_SIZE) // HOP_SIZE
    idx = (jnp.arange(n_frames)[:, None] * HOP_SIZE
           + jnp.arange(FFT_SIZE)[None, :])
    frames = x_pad[:, idx]                                     # (B, n_frames, fft)
    return frames.reshape(B * n_frames, FFT_SIZE), n_frames


# ---------------------------------------------------------------------------
# Pallas kernel: fused DFT matmul + magnitudes + deferred reductions.
# ---------------------------------------------------------------------------
def _stft_loss_kernel(xf_ref, yf_ref, basis_ref, out_ref,
                      acc_sq_ref, acc_pow_ref, acc_log_ref):
    i = pl.program_id(0)

    @pl.when(i == 0)
    def _():
        acc_sq_ref[...] = jnp.zeros_like(acc_sq_ref)
        acc_pow_ref[...] = jnp.zeros_like(acc_pow_ref)
        acc_log_ref[...] = jnp.zeros_like(acc_log_ref)

    xf = xf_ref[...]                 # (TILE_N, FFT_SIZE), window NOT applied
    yf = yf_ref[...]
    basis = basis_ref[...]           # (FFT_SIZE, 2*N_FREQ_PAD), window folded in

    xs = jnp.dot(xf, basis, preferred_element_type=jnp.float32)   # (TILE_N, 256)
    ys = jnp.dot(yf, basis, preferred_element_type=jnp.float32)

    xr = xs[:, :N_FREQ_PAD]
    xi = xs[:, N_FREQ_PAD:]
    yr = ys[:, :N_FREQ_PAD]
    yi = ys[:, N_FREQ_PAD:]

    x_pow = xr * xr + xi * xi
    y_pow = yr * yr + yi * yi
    x_mag = jnp.sqrt(x_pow)
    y_mag = jnp.sqrt(y_pow)

    diff = y_mag - x_mag
    # Per-step VPU adds only; cross-lane reductions are deferred to the end.
    acc_sq_ref[...] += diff * diff                                  # ||y-x||^2
    acc_pow_ref[...] += y_pow                                       # ||y||^2
    acc_log_ref[...] += jnp.abs(jnp.log(x_mag + EPS)                # sum |log diff|
                                - jnp.log(y_mag + EPS))

    @pl.when(i == pl.num_programs(0) - 1)
    def _():
        out_ref[0] = jnp.sum(acc_sq_ref[...])
        out_ref[1] = jnp.sum(acc_pow_ref[...])
        out_ref[2] = jnp.sum(acc_log_ref[...])


def stft_loss(x, y):
    B = x.shape[0]
    xf, n_frames = _frame_signal(x)
    yf, _ = _frame_signal(y)

    n = xf.shape[0]
    n_pad = ((n + TILE_N - 1) // TILE_N) * TILE_N
    # Zero-padded frames have zero magnitude for both x and y, hence contribute
    # exactly 0 to every accumulated sum -> no masking needed in the kernel.
    xf = jnp.pad(xf, ((0, n_pad - n), (0, 0)))
    yf = jnp.pad(yf, ((0, n_pad - n), (0, 0)))

    sums = pl.pallas_call(
        _stft_loss_kernel,
        out_shape=jax.ShapeDtypeStruct((3,), jnp.float32),
        grid_spec=pltpu.PrefetchScalarGridSpec(
            num_scalar_prefetch=0,
            grid=(n_pad // TILE_N,),
            in_specs=[
                pl.BlockSpec((TILE_N, FFT_SIZE), lambda i: (i, 0)),
                pl.BlockSpec((TILE_N, FFT_SIZE), lambda i: (i, 0)),
                pl.BlockSpec((FFT_SIZE, 2 * N_FREQ_PAD), lambda i: (0, 0)),
            ],
            out_specs=pl.BlockSpec(memory_space=pltpu.MemorySpace.SMEM),
            scratch_shapes=[
                pltpu.VMEM((TILE_N, N_FREQ_PAD), jnp.float32),
                pltpu.VMEM((TILE_N, N_FREQ_PAD), jnp.float32),
                pltpu.VMEM((TILE_N, N_FREQ_PAD), jnp.float32),
            ],
        ),
        compiler_params=pltpu.CompilerParams(
            dimension_semantics=("arbitrary",)),
    )(xf, yf, BASIS)

    sc_loss = jnp.sqrt(sums[0]) / jnp.sqrt(sums[1])
    mag_loss = sums[2] / jnp.float32(B * n_frames * N_FREQ)
    return sc_loss + mag_loss


# ---------------------------------------------------------------------------
# Pure-JAX reference (same math via jnp.fft.rfft) for correctness check.
# ---------------------------------------------------------------------------
def _ref_stft_loss(x, y):
    def mag(sig):
        frames, _ = _frame_signal(sig)
        frames = frames * WINDOW[None, :]
        return jnp.abs(jnp.fft.rfft(frames, n=FFT_SIZE, axis=-1))
    x_mag = mag(x)
    y_mag = mag(y)
    sc = jnp.linalg.norm(y_mag - x_mag) / jnp.linalg.norm(y_mag)
    ml = jnp.mean(jnp.abs(jnp.log(x_mag + EPS) - jnp.log(y_mag + EPS)))
    return sc + ml


if __name__ == "__main__":
    key = jax.random.PRNGKey(0)
    kx, ky = jax.random.split(key)
    B, T = 2, 4096          # -> 129 frames/batch, 258 rows, 2 grid steps
    x = jax.random.normal(kx, (B, T), dtype=jnp.float32)
    y = jax.random.normal(ky, (B, T), dtype=jnp.float32)

    loss = jax.jit(stft_loss)(x, y)
    jax.block_until_ready(loss)

    ref = _ref_stft_loss(x, y)
    assert jnp.allclose(loss, ref, rtol=2e-3, atol=1e-4), (loss, ref)
    print("KERNEL_OK")
</pallas_src>

<mosaic_0001>
module attributes {stable_mosaic.version = 11 : i64} {
  func.func @_stft_loss_kernel(%arg0: i32, %arg1: memref<256x128xf32, #tpu.memory_space<vmem>>, %arg2: memref<256x128xf32, #tpu.memory_space<vmem>>, %arg3: memref<128x256xf32, #tpu.memory_space<vmem>>, %arg4: memref<3xf32, #tpu.memory_space<smem>>, %arg5: memref<256x128xf32, #tpu.memory_space<vmem>>, %arg6: memref<256x128xf32, #tpu.memory_space<vmem>>, %arg7: memref<256x128xf32, #tpu.memory_space<vmem>>) attributes {dimension_semantics = [#tpu.dimension_semantics<arbitrary>], iteration_bounds = array<i64: 2>, scalar_prefetch = 0 : i64, scratch_operands = 3 : i64, tpu.core_type = #tpu.core_type<tc>, window_params = [{transform_indices = @transform_0, window_bounds = array<i64: 256, 128>}, {transform_indices = @transform_1, window_bounds = array<i64: 256, 128>}, {pipeline_mode = #tpu.pipeline_mode<synchronous>, transform_indices = @transform_2, window_bounds = array<i64: 128, 256>}, {transform_indices = @transform_3, window_bounds = array<i64: 3>}]} {
    %c0_i32 = arith.constant 0 : i32
    %0 = arith.cmpi eq, %arg0, %c0_i32 : i32
    %1 = arith.extui %0 : i1 to i32
    %c0_i32_0 = arith.constant 0 : i32
    %2 = arith.cmpi ne, %1, %c0_i32_0 : i32
    scf.if %2 {
      %cst_22 = arith.constant 0.000000e+00 : f32
      %42 = vector.broadcast %cst_22 : f32 to vector<256x128xf32>
      %c0_23 = arith.constant 0 : index
      %c0_24 = arith.constant 0 : index
      %43 = vector.load %arg5[%c0_23, %c0_24] : memref<256x128xf32, #tpu.memory_space<vmem>>, vector<256x128xf32>
      tpu.vector_store %arg5[%c0_23, %c0_24], %42 {strides = array<i32>} : memref<256x128xf32, #tpu.memory_space<vmem>>, vector<256x128xf32>,
      %cst_25 = arith.constant 0.000000e+00 : f32
      %44 = vector.broadcast %cst_25 : f32 to vector<256x128xf32>
      %c0_26 = arith.constant 0 : index
      %c0_27 = arith.constant 0 : index
      %45 = vector.load %arg6[%c0_26, %c0_27] : memref<256x128xf32, #tpu.memory_space<vmem>>, vector<256x128xf32>
      tpu.vector_store %arg6[%c0_26, %c0_27], %44 {strides = array<i32>} : memref<256x128xf32, #tpu.memory_space<vmem>>, vector<256x128xf32>,
      %cst_28 = arith.constant 0.000000e+00 : f32
      %46 = vector.broadcast %cst_28 : f32 to vector<256x128xf32>
      %c0_29 = arith.constant 0 : index
      %c0_30 = arith.constant 0 : index
      %47 = vector.load %arg7[%c0_29, %c0_30] : memref<256x128xf32, #tpu.memory_space<vmem>>, vector<256x128xf32>
      tpu.vector_store %arg7[%c0_29, %c0_30], %46 {strides = array<i32>} : memref<256x128xf32, #tpu.memory_space<vmem>>, vector<256x128xf32>,
    } else {
    }
    %c0 = arith.constant 0 : index
    %c0_1 = arith.constant 0 : index
    %3 = vector.load %arg1[%c0, %c0_1] : memref<256x128xf32, #tpu.memory_space<vmem>>, vector<256x128xf32>
    %c0_2 = arith.constant 0 : index
    %c0_3 = arith.constant 0 : index
    %4 = vector.load %arg2[%c0_2, %c0_3] : memref<256x128xf32, #tpu.memory_space<vmem>>, vector<256x128xf32>
    %c0_4 = arith.constant 0 : index
    %c0_5 = arith.constant 0 : index
    %5 = vector.load %arg3[%c0_4, %c0_5] : memref<128x256xf32, #tpu.memory_space<vmem>>, vector<128x256xf32>
    %cst = arith.constant dense<0.000000e+00> : vector<256x256xf32>
    %6 = tpu.matmul %3, %5, %cst {dimension_numbers = #tpu.dot_dimension_numbers<[1], [0], [0], [1], [0, 0, 1, 1], [], []>} : vector<256x128xf32>, vector<128x256xf32>, vector<256x256xf32> -> vector<256x256xf32>
    %cst_6 = arith.constant dense<0.000000e+00> : vector<256x256xf32>
    %7 = tpu.matmul %4, %5, %cst_6 {dimension_numbers = #tpu.dot_dimension_numbers<[1], [0], [0], [1], [0, 0, 1, 1], [], []>} : vector<256x128xf32>, vector<128x256xf32>, vector<256x256xf32> -> vector<256x256xf32>
    %8 = vector.extract_strided_slice %6 {offsets = [0, 0], sizes = [256, 128], strides = [1, 1]} : vector<256x256xf32> to vector<256x128xf32>
    %9 = vector.extract_strided_slice %6 {offsets = [0, 128], sizes = [256, 128], strides = [1, 1]} : vector<256x256xf32> to vector<256x128xf32>
    %10 = vector.extract_strided_slice %7 {offsets = [0, 0], sizes = [256, 128], strides = [1, 1]} : vector<256x256xf32> to vector<256x128xf32>
    %11 = vector.extract_strided_slice %7 {offsets = [0, 128], sizes = [256, 128], strides = [1, 1]} : vector<256x256xf32> to vector<256x128xf32>
    %12 = arith.mulf %8, %8 : vector<256x128xf32>
    %13 = arith.mulf %9, %9 : vector<256x128xf32>
    %14 = arith.addf %12, %13 : vector<256x128xf32>
    %15 = arith.mulf %10, %10 : vector<256x128xf32>
    %16 = arith.mulf %11, %11 : vector<256x128xf32>
    %17 = arith.addf %15, %16 : vector<256x128xf32>
    %18 = math.sqrt %14 : vector<256x128xf32>
    %19 = math.sqrt %17 : vector<256x128xf32>
    %20 = arith.subf %19, %18 : vector<256x128xf32>
    %c0_7 = arith.constant 0 : index
    %c0_8 = arith.constant 0 : index
    %21 = vector.load %arg5[%c0_7, %c0_8] : memref<256x128xf32, #tpu.memory_space<vmem>>, vector<256x128xf32>
    %22 = arith.mulf %20, %20 : vector<256x128xf32>
    %23 = arith.addf %21, %22 : vector<256x128xf32>
    %c0_9 = arith.constant 0 : index
    %c0_10 = arith.constant 0 : index
    %24 = vector.load %arg5[%c0_9, %c0_10] : memref<256x128xf32, #tpu.memory_space<vmem>>, vector<256x128xf32>
    tpu.vector_store %arg5[%c0_9, %c0_10], %23 {strides = array<i32>} : memref<256x128xf32, #tpu.memory_space<vmem>>, vector<256x128xf32>,
    %c0_11 = arith.constant 0 : index
    %c0_12 = arith.constant 0 : index
    %25 = vector.load %arg6[%c0_11, %c0_12] : memref<256x128xf32, #tpu.memory_space<vmem>>, vector<256x128xf32>
    %26 = arith.addf %25, %17 : vector<256x128xf32>
    %c0_13 = arith.constant 0 : index
    %c0_14 = arith.constant 0 : index
    %27 = vector.load %arg6[%c0_13, %c0_14] : memref<256x128xf32, #tpu.memory_space<vmem>>, vector<256x128xf32>
    tpu.vector_store %arg6[%c0_13, %c0_14], %26 {strides = array<i32>} : memref<256x128xf32, #tpu.memory_space<vmem>>, vector<256x128xf32>,
    %c0_15 = arith.constant 0 : index
    %c0_16 = arith.constant 0 : index
    %28 = vector.load %arg7[%c0_15, %c0_16] : memref<256x128xf32, #tpu.memory_space<vmem>>, vector<256x128xf32>
    %cst_17 = arith.constant 1.000000e-07 : f32
    %29 = vector.broadcast %cst_17 : f32 to vector<256x128xf32>
    %30 = arith.addf %18, %29 : vector<256x128xf32>
    %31 = math.log %30 : vector<256x128xf32>
    %cst_18 = arith.constant 1.000000e-07 : f32
    %32 = vector.broadcast %cst_18 : f32 to vector<256x128xf32>
    %33 = arith.addf %19, %32 : vector<256x128xf32>
    %34 = math.log %33 : vector<256x128xf32>
    %35 = arith.subf %31, %34 : vector<256x128xf32>
    %36 = math.absf %35 : vector<256x128xf32>
    %37 = arith.addf %28, %36 : vector<256x128xf32>
    %c0_19 = arith.constant 0 : index
    %c0_20 = arith.constant 0 : index
    %38 = vector.load %arg7[%c0_19, %c0_20] : memref<256x128xf32, #tpu.memory_space<vmem>>, vector<256x128xf32>
    tpu.vector_store %arg7[%c0_19, %c0_20], %37 {strides = array<i32>} : memref<256x128xf32, #tpu.memory_space<vmem>>, vector<256x128xf32>,
    %c1_i32 = arith.constant 1 : i32
    %39 = arith.cmpi eq, %arg0, %c1_i32 : i32
    %40 = arith.extui %39 : i1 to i32
    %c0_i32_21 = arith.constant 0 : i32
    %41 = arith.cmpi ne, %40, %c0_i32_21 : i32
    scf.if %41 {
      %c0_22 = arith.constant 0 : index
      %c0_23 = arith.constant 0 : index
      %42 = vector.load %arg5[%c0_22, %c0_23] : memref<256x128xf32, #tpu.memory_space<vmem>>, vector<256x128xf32>
      %43 = vector.shape_cast %42 : vector<256x128xf32> to vector<1x256x128xf32>
      %cst_24 = arith.constant dense<0.000000e+00> : vector<1xf32>
      %44 = vector.multi_reduction <add>, %43, %cst_24 [1, 2] : vector<1x256x128xf32> to vector<1xf32>
      %45 = vector.shape_cast %44 : vector<1xf32> to vector<1x1x1xf32>
      %46 = vector.extract %45[0, 0, 0] : f32 from vector<1x1x1xf32>
      %c0_25 = arith.constant 0 : index
      %47 = memref.load %arg4[%c0_25] : memref<3xf32, #tpu.memory_space<smem>>
      memref.store %46, %arg4[%c0_25] : memref<3xf32, #tpu.memory_space<smem>>
      %c0_26 = arith.constant 0 : index
      %c0_27 = arith.constant 0 : index
      %48 = vector.load %arg6[%c0_26, %c0_27] : memref<256x128xf32, #tpu.memory_space<vmem>>, vector<256x128xf32>
      %49 = vector.shape_cast %48 : vector<256x128xf32> to vector<1x256x128xf32>
      %cst_28 = arith.constant dense<0.000000e+00> : vector<1xf32>
      %50 = vector.multi_reduction <add>, %49, %cst_28 [1, 2] : vector<1x256x128xf32> to vector<1xf32>
      %51 = vector.shape_cast %50 : vector<1xf32> to vector<1x1x1xf32>
      %52 = vector.extract %51[0, 0, 0] : f32 from vector<1x1x1xf32>
      %c1 = arith.constant 1 : index
      %53 = memref.load %arg4[%c1] : memref<3xf32, #tpu.memory_space<smem>>
      memref.store %52, %arg4[%c1] : memref<3xf32, #tpu.memory_space<smem>>
      %c0_29 = arith.constant 0 : index
      %c0_30 = arith.constant 0 : index
      %54 = vector.load %arg7[%c0_29, %c0_30] : memref<256x128xf32, #tpu.memory_space<vmem>>, vector<256x128xf32>
      %55 = vector.shape_cast %54 : vector<256x128xf32> to vector<1x256x128xf32>
      %cst_31 = arith.constant dense<0.000000e+00> : vector<1xf32>
      %56 = vector.multi_reduction <add>, %55, %cst_31 [1, 2] : vector<1x256x128xf32> to vector<1xf32>
      %57 = vector.shape_cast %56 : vector<1xf32> to vector<1x1x1xf32>
      %58 = vector.extract %57[0, 0, 0] : f32 from vector<1x1x1xf32>
      %c2 = arith.constant 2 : index
      %59 = memref.load %arg4[%c2] : memref<3xf32, #tpu.memory_space<smem>>
      memref.store %58, %arg4[%c2] : memref<3xf32, #tpu.memory_space<smem>>
    } else {
    }
    return
  }
  func.func @transform_0(%arg0: i32) -> (i32, i32) {
    %c0_i32 = arith.constant 0 : i32
    %c0_i32_0 = arith.constant 0 : i32
    return %arg0, %c0_i32 : i32, i32
  }
  func.func @transform_1(%arg0: i32) -> (i32, i32) {
    %c0_i32 = arith.constant 0 : i32
    %c0_i32_0 = arith.constant 0 : i32
    return %arg0, %c0_i32 : i32, i32
  }
  func.func @transform_2(%arg0: i32) -> (i32, i32) {
    %c0_i32 = arith.constant 0 : i32
    %c0_i32_0 = arith.constant 0 : i32
    %c0_i32_1 = arith.constant 0 : i32
    return %c0_i32, %c0_i32_0 : i32, i32
  }
  func.func @transform_3(%arg0: i32) -> i32 {
    %c0_i32 = arith.constant 0 : i32
    %c0_i32_0 = arith.constant 0 : i32
    return %c0_i32 : i32
  }
}

</mosaic_0001>

<bundles_post_ra>
// kernel: stft_loss.1
= control target key start
LH: loop header
LB: loop body
LE: loop exit
PB: predicated region body
PF: predicated region fallthrough
CT: control target
= control target key end

     0   :  { %8 = vsyncpa [#allocation6], 0  ;;  %s2766_s12 = smov 0   ;;  %s3932_s0 = inlined_call_operand.vmem [shape: f32[512,128], index: 0, kind: input, shape index: {}]   ;;  %s3933_s1 = inlined_call_operand.vmem [shape: f32[512,128], index: 1, kind: input, shape index: {}]   ;;  %s3934_s2 = inlined_call_operand.vmem [shape: f32[128,256], index: 2, kind: input, shape index: {}]   ;;  %s3935_s3 = inlined_call_operand.vmem [shape: f32[3], index: 3, kind: output, shape index: {}]  }
   0x1 LB: > { %s2772_s13 = sadd.s32 4294967295, %s2741_s12   ;;  %p2427_p0 = scmp.ge.s32.totalorder %s2741_s12, 1  ;;  %s2741_s12 = sphi %s2766_s12, %s14_s12  }
   0x2   : > { %p145_p1 = scmp.lt.s32.totalorder %s2741_s12, 3 }
   0x4   : > { %p146_p2 = pnand %p2427_p0, %p145_p1 }
   0x5   : > { %s2428_s14 = sshll.u32 (!%p146_p2), %s2772_s13, 5  ;;  %p2432_p4 = scmp.ne.s32.totalorder (!%p146_p2), %s2772_s13, 0 }
   0x6   : > { %149 = sbr.rel (%p146_p2) target bundleno = 876 (0x36c), region = 32  ;;  %p170_p3 = scmp.lt.s32.totalorder (!%p146_p2), %s2428_s14, 63 }
   0xb   : > { %s3937_s14 = smov (!%p170_p3, %s2428_s14), 63  ;;  %184 = sbr.rel (%p2432_p4) target bundleno = 65 (0x41), region = 36 }
   0xc   : > { %s2429_s15 = sshll.u32 %s3937_s14, 3 }
   0xd   : > { %s2780_s18 = scalar_lea.vmem %s3932_s0, %s2429_s15  ;;  %s2785_s21 = scalar_lea.vmem %s3933_s1, %s2429_s15 }
  0x10   : > { %v2743_v0 = vmov 0.0  }
  0x11   : > { %185 = vst [vmem:[#allocation2 + $0xb0] sm:$0xff] %v2743_v0  ;;  %186 = vst [vmem:[#allocation2] sm:$0xff] %v2743_v0 }
  0x12   : > { %187 = vst [vmem:[#allocation2 + $0xd8] sm:$0xff] %v2743_v0  ;;  %188 = vst [vmem:[#allocation2 + $0x18] sm:$0xff] %v2743_v0 }
  0x13   : > { %189 = vst [vmem:[#allocation2 + $0x50] sm:$0xff] %v2743_v0  ;;  %190 = vst [vmem:[#allocation2 + $0x68] sm:$0xff] %v2743_v0 }
  0x14   : > { %191 = vst [vmem:[#allocation2 + $0x30] sm:$0xff] %v2743_v0  ;;  %192 = vst [vmem:[#allocation2 + $0x48] sm:$0xff] %v2743_v0 }
  0x15   : > { %193 = vst [vmem:[#allocation2 + $0x80] sm:$0xff] %v2743_v0  ;;  %194 = vst [vmem:[#allocation2 + $0x88] sm:$0xff] %v2743_v0 }
  0x16   : > { %195 = vst [vmem:[#allocation2 + $0xe8] sm:$0xff] %v2743_v0  ;;  %196 = vst [vmem:[#allocation2 + $0xb8] sm:$0xff] %v2743_v0 }
  0x17   : > { %197 = vst [vmem:[#allocation2 + $0x60] sm:$0xff] %v2743_v0  ;;  %198 = vst [vmem:[#allocation2 + $0xf0] sm:$0xff] %v2743_v0 }
  0x18   : > { %199 = vst [vmem:[#allocation2 + $0x8] sm:$0xff] %v2743_v0  ;;  %200 = vst [vmem:[#allocation2 + $0x78] sm:$0xff] %v2743_v0 }
  0x19   : > { %201 = vst [vmem:[#allocation2 + $0x38] sm:$0xff] %v2743_v0  ;;  %202 = vst [vmem:[#allocation2 + $0x58] sm:$0xff] %v2743_v0 }
  0x1a   : > { %203 = vst [vmem:[#allocation2 + $0x40] sm:$0xff] %v2743_v0  ;;  %204 = vst [vmem:[#allocation2 + $0xc8] sm:$0xff] %v2743_v0 }
  0x1b   : > { %205 = vst [vmem:[#allocation2 + $0xe0] sm:$0xff] %v2743_v0  ;;  %206 = vst [vmem:[#allocation2 + $0x90] sm:$0xff] %v2743_v0 }
  0x1c   : > { %207 = vst [vmem:[#allocation2 + $0x70] sm:$0xff] %v2743_v0  ;;  %208 = vst [vmem:[#allocation2 + $0xc0] sm:$0xff] %v2743_v0 }
  0x1d   : > { %209 = vst [vmem:[#allocation2 + $0xa8] sm:$0xff] %v2743_v0  ;;  %210 = vst [vmem:[#allocation2 + $0xd0] sm:$0xff] %v2743_v0 }
  0x1e   : > { %211 = vst [vmem:[#allocation2 + $0x10] sm:$0xff] %v2743_v0  ;;  %212 = vst [vmem:[#allocation2 + $0x28] sm:$0xff] %v2743_v0 }
  0x1f   : > { %213 = vst [vmem:[#allocation2 + $0xa0] sm:$0xff] %v2743_v0  ;;  %214 = vst [vmem:[#allocation2 + $0xf8] sm:$0xff] %v2743_v0 }
  0x20   : > { %215 = vst [vmem:[#allocation2 + $0x20] sm:$0xff] %v2743_v0  ;;  %216 = vst [vmem:[#allocation2 + $0x98] sm:$0xff] %v2743_v0 }
  0x21   : > { %217 = vst [vmem:[#allocation3 + $0x80] sm:$0xff] %v2743_v0  ;;  %218 = vst [vmem:[#allocation3 + $0xc8] sm:$0xff] %v2743_v0 }
  0x22   : > { %219 = vst [vmem:[#allocation3 + $0xe8] sm:$0xff] %v2743_v0  ;;  %220 = vst [vmem:[#allocation3 + $0x78] sm:$0xff] %v2743_v0 }
  0x23   : > { %221 = vst [vmem:[#allocation3 + $0x8] sm:$0xff] %v2743_v0  ;;  %222 = vst [vmem:[#allocation3 + $0x90] sm:$0xff] %v2743_v0 }
  0x24   : > { %223 = vst [vmem:[#allocation3 + $0x58] sm:$0xff] %v2743_v0  ;;  %224 = vst [vmem:[#allocation3 + $0xa8] sm:$0xff] %v2743_v0 }
  0x25   : > { %225 = vst [vmem:[#allocation3 + $0xd0] sm:$0xff] %v2743_v0  ;;  %226 = vst [vmem:[#allocation3 + $0xb0] sm:$0xff] %v2743_v0 }
  0x26   : > { %227 = vst [vmem:[#allocation3 + $0x38] sm:$0xff] %v2743_v0  ;;  %228 = vst [vmem:[#allocation3 + $0x40] sm:$0xff] %v2743_v0 }
  0x27   : > { %229 = vst [vmem:[#allocation3 + $0xe0] sm:$0xff] %v2743_v0  ;;  %230 = vst [vmem:[#allocation3 + $0x60] sm:$0xff] %v2743_v0 }
  0x28   : > { %231 = vst [vmem:[#allocation3 + $0x18] sm:$0xff] %v2743_v0  ;;  %232 = vst [vmem:[#allocation3 + $0x68] sm:$0xff] %v2743_v0 }
  0x29   : > { %233 = vst [vmem:[#allocation3 + $0x10] sm:$0xff] %v2743_v0  ;;  %234 = vst [vmem:[#allocation3 + $0x70] sm:$0xff] %v2743_v0 }
  0x2a   : > { %235 = vst [vmem:[#allocation3 + $0x50] sm:$0xff] %v2743_v0  ;;  %236 = vst [vmem:[#allocation3 + $0xa0] sm:$0xff] %v2743_v0 }
  0x2b   : > { %237 = vst [vmem:[#allocation3 + $0xd8] sm:$0xff] %v2743_v0  ;;  %238 = vst [vmem:[#allocation3 + $0x30] sm:$0xff] %v2743_v0 }
  0x2c   : > { %239 = vst [vmem:[#allocation3 + $0x20] sm:$0xff] %v2743_v0  ;;  %240 = vst [vmem:[#allocation3 + $0xf0] sm:$0xff] %v2743_v0 }
  0x2d   : > { %241 = vst [vmem:[#allocation3 + $0x88] sm:$0xff] %v2743_v0  ;;  %242 = vst [vmem:[#allocation3 + $0x48] sm:$0xff] %v2743_v0 }
  0x2e   : > { %243 = vst [vmem:[#allocation3 + $0xf8] sm:$0xff] %v2743_v0  ;;  %244 = vst [vmem:[#allocation3 + $0xc0] sm:$0xff] %v2743_v0 }
  0x2f   : > { %245 = vst [vmem:[#allocation3 + $0xb8] sm:$0xff] %v2743_v0  ;;  %246 = vst [vmem:[#allocation3] sm:$0xff] %v2743_v0 }
  0x30   : > { %247 = vst [vmem:[#allocation3 + $0x28] sm:$0xff] %v2743_v0  ;;  %248 = vst [vmem:[#allocation3 + $0x98] sm:$0xff] %v2743_v0 }
  0x31   : > { %249 = vst [vmem:[#allocation4 + $0xb0] sm:$0xff] %v2743_v0  ;;  %250 = vst [vmem:[#allocation4 + $0xb8] sm:$0xff] %v2743_v0 }
  0x32   : > { %251 = vst [vmem:[#allocation4 + $0xc0] sm:$0xff] %v2743_v0  ;;  %252 = vst [vmem:[#allocation4 + $0x10] sm:$0xff] %v2743_v0 }
  0x33   : > { %253 = vst [vmem:[#allocation4 + $0x28] sm:$0xff] %v2743_v0  ;;  %254 = vst [vmem:[#allocation4 + $0x30] sm:$0xff] %v2743_v0 }
  0x34   : > { %255 = vst [vmem:[#allocation4 + $0xd0] sm:$0xff] %v2743_v0  ;;  %256 = vst [vmem:[#allocation4 + $0x68] sm:$0xff] %v2743_v0 }
  0x35   : > { %257 = vst [vmem:[#allocation4 + $0x58] sm:$0xff] %v2743_v0  ;;  %258 = vst [vmem:[#allocation4] sm:$0xff] %v2743_v0 }
  0x36   : > { %259 = vst [vmem:[#allocation4 + $0x48] sm:$0xff] %v2743_v0  ;;  %260 = vst [vmem:[#allocation4 + $0x40] sm:$0xff] %v2743_v0 }
  0x37   : > { %261 = vst [vmem:[#allocation4 + $0x78] sm:$0xff] %v2743_v0  ;;  %262 = vst [vmem:[#allocation4 + $0xd8] sm:$0xff] %v2743_v0 }
  0x38   : > { %263 = vst [vmem:[#allocation4 + $0xe0] sm:$0xff] %v2743_v0  ;;  %264 = vst [vmem:[#allocation4 + $0x80] sm:$0xff] %v2743_v0 }
  0x39   : > { %265 = vst [vmem:[#allocation4 + $0xa0] sm:$0xff] %v2743_v0  ;;  %266 = vst [vmem:[#allocation4 + $0x18] sm:$0xff] %v2743_v0 }
  0x3a   : > { %267 = vst [vmem:[#allocation4 + $0xf8] sm:$0xff] %v2743_v0  ;;  %268 = vst [vmem:[#allocation4 + $0xe8] sm:$0xff] %v2743_v0 }
  0x3b   : > { %269 = vst [vmem:[#allocation4 + $0x90] sm:$0xff] %v2743_v0  ;;  %270 = vst [vmem:[#allocation4 + $0x20] sm:$0xff] %v2743_v0 }
  0x3c   : > { %271 = vst [vmem:[#allocation4 + $0x38] sm:$0xff] %v2743_v0  ;;  %272 = vst [vmem:[#allocation4 + $0x70] sm:$0xff] %v2743_v0 }
  0x3d   : > { %273 = vst [vmem:[#allocation4 + $0xa8] sm:$0xff] %v2743_v0  ;;  %274 = vst [vmem:[#allocation4 + $0xf0] sm:$0xff] %v2743_v0 }
  0x3e   : > { %275 = vst [vmem:[#allocation4 + $0x50] sm:$0xff] %v2743_v0  ;;  %276 = vst [vmem:[#allocation4 + $0x88] sm:$0xff] %v2743_v0 }
  0x3f   : > { %277 = vst [vmem:[#allocation4 + $0xc8] sm:$0xff] %v2743_v0  ;;  %278 = vst [vmem:[#allocation4 + $0x98] sm:$0xff] %v2743_v0 }
  0x40   : > { %279 = vst [vmem:[#allocation4 + $0x60] sm:$0xff] %v2743_v0  ;;  %280 = vst [vmem:[#allocation4 + $0x8] sm:$0xff] %v2743_v0 }
  0x41 PF: > { %v376_v1 = vld [vmem:[%s3934_s2 + $0xf8] sm:$0xff]  ;;  %v375_v2 = vld [vmem:[%s3934_s2 + $0xf0] sm:$0xff]  ;;  %v374_v3 = vld [vmem:[%s3934_s2 + $0xe8] sm:$0xff]  ;;  %v2744_v35 = vmov 0.0   ;;  %p2433_p5 = scmp.ne.s32.totalorder %s2772_s13, 1 }
  0x42   : > { %377 = vmatprep.subr.mxu0 %v376_v1  ;;  %634 = vmatprep.subr.mxu1 %v376_v1  ;;  %v373_v4 = vld [vmem:[%s3934_s2 + $0xe0] sm:$0xff]  ;;  %v372_v5 = vld [vmem:[%s3934_s2 + $0xd8] sm:$0xff]  ;;  %v371_v6 = vld [vmem:[%s3934_s2 + $0xd0] sm:$0xff] }
  0x43   : > { %378 = vmatpush1.msra.mxu0 %v375_v2  ;;  %635 = vmatpush1.msra.mxu1 %v375_v2  ;;  %v370_v7 = vld [vmem:[%s3934_s2 + $0xc8] sm:$0xff]  ;;  %v369_v8 = vld [vmem:[%s3934_s2 + $0xc0] sm:$0xff]  ;;  %v368_v9 = vld [vmem:[%s3934_s2 + $0xb8] sm:$0xff] }
  0x44   : > { %379 = vmatprep.subr.mxu0 %v374_v3  ;;  %636 = vmatprep.subr.mxu1 %v374_v3  ;;  %v367_v10 = vld [vmem:[%s3934_s2 + $0xb0] sm:$0xff]  ;;  %v366_v11 = vld [vmem:[%s3934_s2 + $0xa8] sm:$0xff]  ;;  %v365_v12 = vld [vmem:[%s3934_s2 + $0xa0] sm:$0xff] }
  0x45   : > { %380 = vmatpush1.msra.mxu0 %v373_v4  ;;  %637 = vmatpush1.msra.mxu1 %v373_v4  ;;  %v364_v13 = vld [vmem:[%s3934_s2 + $0x98] sm:$0xff]  ;;  %v363_v14 = vld [vmem:[%s3934_s2 + $0x90] sm:$0xff]  ;;  %v362_v15 = vld [vmem:[%s3934_s2 + $0x88] sm:$0xff] }
  0x46   : > { %381 = vmatprep.subr.mxu0 %v372_v5  ;;  %638 = vmatprep.subr.mxu1 %v372_v5  ;;  %v361_v16 = vld [vmem:[%s3934_s2 + $0x80] sm:$0xff]  ;;  %v360_v17 = vld [vmem:[%s3934_s2 + $0x78] sm:$0xff]  ;;  %v359_v18 = vld [vmem:[%s3934_s2 + $0x70] sm:$0xff] }
  0x47   : > { %382 = vmatpush1.msra.mxu0 %v371_v6  ;;  %639 = vmatpush1.msra.mxu1 %v371_v6  ;;  %v358_v19 = vld [vmem:[%s3934_s2 + $0x68] sm:$0xff]  ;;  %v357_v20 = vld [vmem:[%s3934_s2 + $0x60] sm:$0xff]  ;;  %v356_v21 = vld [vmem:[%s3934_s2 + $0x58] sm:$0xff] }
  0x48   : > { %383 = vmatprep.subr.mxu0 %v370_v7  ;;  %640 = vmatprep.subr.mxu1 %v370_v7  ;;  %v355_v22 = vld [vmem:[%s3934_s2 + $0x50] sm:$0xff]  ;;  %v354_v23 = vld [vmem:[%s3934_s2 + $0x48] sm:$0xff]  ;;  %v353_v24 = vld [vmem:[%s3934_s2 + $0x40] sm:$0xff] }
  0x49   : > { %384 = vmatpush1.msra.mxu0 %v369_v8  ;;  %641 = vmatpush1.msra.mxu1 %v369_v8  ;;  %v352_v25 = vld [vmem:[%s3934_s2 + $0x38] sm:$0xff]  ;;  %v351_v26 = vld [vmem:[%s3934_s2 + $0x30] sm:$0xff]  ;;  %v350_v27 = vld [vmem:[%s3934_s2 + $0x28] sm:$0xff] }
  0x4a   : > { %385 = vmatprep.subr.mxu0 %v368_v9  ;;  %642 = vmatprep.subr.mxu1 %v368_v9  ;;  %v349_v28 = vld [vmem:[%s3934_s2 + $0x20] sm:$0xff]  ;;  %v348_v29 = vld [vmem:[%s3934_s2 + $0x18] sm:$0xff]  ;;  %v347_v30 = vld [vmem:[%s3934_s2 + $0x10] sm:$0xff] }
  0x4b   : > { %386 = vmatpush1.msra.mxu0 %v367_v10  ;;  %643 = vmatpush1.msra.mxu1 %v367_v10  ;;  %v346_v31 = vld [vmem:[%s3934_s2 + $0x8] sm:$0xff]  ;;  %v345_v32 = vld [vmem:[%s3934_s2] sm:$0xff]  ;;  %v283_v38 = vld [vmem:[%s2780_s18 + $0x10] sm:$0xff] }
  0x4c   : > { %387 = vmatprep.subr.mxu0 %v366_v11  ;;  %644 = vmatprep.subr.mxu1 %v366_v11  ;;  %v281_v33 = vld [vmem:[%s2780_s18] sm:$0xff]  ;;  %v282_v36 = vld [vmem:[%s2780_s18 + $0x8] sm:$0xff]  ;;  %v315_v39 = vld [vmem:[%s2785_s21 + $0x10] sm:$0xff] }
  0x4d   : > { %388 = vmatpush1.msra.mxu0 %v365_v12  ;;  %645 = vmatpush1.msra.mxu1 %v365_v12  ;;  %v313_v34 = vld [vmem:[%s2785_s21] sm:$0xff]  ;;  %v314_v37 = vld [vmem:[%s2785_s21 + $0x8] sm:$0xff]  ;;  %v284_v40 = vld [vmem:[%s2780_s18 + $0x18] sm:$0xff] }
  0x4e   : > { %389 = vmatprep.subr.mxu0 %v364_v13  ;;  %646 = vmatprep.subr.mxu1 %v364_v13  ;;  %v316_v41 = vld [vmem:[%s2785_s21 + $0x18] sm:$0xff]  ;;  %v285_v42 = vld [vmem:[%s2780_s18 + $0x20] sm:$0xff]  ;;  %v286_v44 = vld [vmem:[%s2780_s18 + $0x28] sm:$0xff] }
  0x4f   : > { %390 = vmatpush1.msra.mxu0 %v363_v14  ;;  %647 = vmatpush1.msra.mxu1 %v363_v14  ;;  %v317_v43 = vld [vmem:[%s2785_s21 + $0x20] sm:$0xff]  ;;  %v318_v45 = vld [vmem:[%s2785_s21 + $0x28] sm:$0xff]  ;;  %v287_v46 = vld [vmem:[%s2780_s18 + $0x30] sm:$0xff] }
  0x50   : > { %391 = vmatprep.subr.mxu0 %v362_v15  ;;  %648 = vmatprep.subr.mxu1 %v362_v15  ;;  %v319_v47 = vld [vmem:[%s2785_s21 + $0x30] sm:$0xff]  ;;  %v288_v48 = vld [vmem:[%s2780_s18 + $0x38] sm:$0xff]  ;;  %v289_v50 = vld [vmem:[%s2780_s18 + $0x40] sm:$0xff] }
  0x51   : > { %392 = vmatpush1.msra.mxu0 %v361_v16  ;;  %649 = vmatpush1.msra.mxu1 %v361_v16  ;;  %v320_v49 = vld [vmem:[%s2785_s21 + $0x38] sm:$0xff]  ;;  %v321_v51 = vld [vmem:[%s2785_s21 + $0x40] sm:$0xff]  ;;  %v290_v52 = vld [vmem:[%s2780_s18 + $0x48] sm:$0xff] }
  0x52   : > { %393 = vmatprep.subr.mxu0 %v360_v17  ;;  %650 = vmatprep.subr.mxu1 %v360_v17  ;;  %v322_v53 = vld [vmem:[%s2785_s21 + $0x48] sm:$0xff]  ;;  %v291_v54 = vld [vmem:[%s2780_s18 + $0x50] sm:$0xff]  ;;  %v292_v56 = vld [vmem:[%s2780_s18 + $0x58] sm:$0xff] }
  0x53   : > { %394 = vmatpush1.msra.mxu0 %v359_v18  ;;  %651 = vmatpush1.msra.mxu1 %v359_v18  ;;  %v323_v55 = vld [vmem:[%s2785_s21 + $0x50] sm:$0xff]  ;;  %v324_v57 = vld [vmem:[%s2785_s21 + $0x58] sm:$0xff]  ;;  %v293_v58 = vld [vmem:[%s2780_s18 + $0x60] sm:$0xff] }
  0x54   : > { %395 = vmatprep.subr.mxu0 %v358_v19  ;;  %652 = vmatprep.subr.mxu1 %v358_v19  ;;  %v325_v59 = vld [vmem:[%s2785_s21 + $0x60] sm:$0xff]  ;;  %v294_v60 = vld [vmem:[%s2780_s18 + $0x68] sm:$0xff]  ;;  %v295_v62 = vld [vmem:[%s2780_s18 + $0x70] sm:$0xff] }
  0x55   : > { %396 = vmatpush1.msra.mxu0 %v357_v20  ;;  %653 = vmatpush1.msra.mxu1 %v357_v20  ;;  %v326_v61 = vld [vmem:[%s2785_s21 + $0x68] sm:$0xff]  ;;  %v327_v63 = vld [vmem:[%s2785_s21 + $0x70] sm:$0xff]  ;;  %v296_v0 = vld [vmem:[%s2780_s18 + $0x78] sm:$0xff] }
  0x56   : > { %397 = vmatprep.subr.mxu0 %v356_v21  ;;  %654 = vmatprep.subr.mxu1 %v356_v21  ;;  %v328_v1 = vld [vmem:[%s2785_s21 + $0x78] sm:$0xff]  ;;  %v297_v2 = vld [vmem:[%s2780_s18 + $0x80] sm:$0xff]  ;;  %v298_v4 = vld [vmem:[%s2780_s18 + $0x88] sm:$0xff] }
  0x57   : > { %398 = vmatpush1.msra.mxu0 %v355_v22  ;;  %655 = vmatpush1.msra.mxu1 %v355_v22  ;;  %v329_v3 = vld [vmem:[%s2785_s21 + $0x80] sm:$0xff]  ;;  %v330_v5 = vld [vmem:[%s2785_s21 + $0x88] sm:$0xff]  ;;  %v299_v6 = vld [vmem:[%s2780_s18 + $0x90] sm:$0xff] }
  0x58   : > { %399 = vmatprep.subr.mxu0 %v354_v23  ;;  %656 = vmatprep.subr.mxu1 %v354_v23  ;;  %v331_v7 = vld [vmem:[%s2785_s21 + $0x90] sm:$0xff]  ;;  %v300_v8 = vld [vmem:[%s2780_s18 + $0x98] sm:$0xff]  ;;  %v301_v10 = vld [vmem:[%s2780_s18 + $0xa0] sm:$0xff] }
  0x59   : > { %400 = vmatpush1.msra.mxu0 %v353_v24  ;;  %657 = vmatpush1.msra.mxu1 %v353_v24  ;;  %v332_v9 = vld [vmem:[%s2785_s21 + $0x98] sm:$0xff]  ;;  %v333_v11 = vld [vmem:[%s2785_s21 + $0xa0] sm:$0xff]  ;;  %v302_v12 = vld [vmem:[%s2780_s18 + $0xa8] sm:$0xff] }
  0x5a   : > { %401 = vmatprep.subr.mxu0 %v352_v25  ;;  %658 = vmatprep.subr.mxu1 %v352_v25  ;;  %v334_v13 = vld [vmem:[%s2785_s21 + $0xa8] sm:$0xff]  ;;  %v303_v14 = vld [vmem:[%s2780_s18 + $0xb0] sm:$0xff]  ;;  %v304_v16 = vld [vmem:[%s2780_s18 + $0xb8] sm:$0xff] }
  0x5b   : > { %402 = vmatpush1.msra.mxu0 %v351_v26  ;;  %659 = vmatpush1.msra.mxu1 %v351_v26  ;;  %v335_v15 = vld [vmem:[%s2785_s21 + $0xb0] sm:$0xff]  ;;  %v336_v17 = vld [vmem:[%s2785_s21 + $0xb8] sm:$0xff]  ;;  %v305_v18 = vld [vmem:[%s2780_s18 + $0xc0] sm:$0xff] }
  0x5c   : > { %403 = vmatprep.subr.mxu0 %v350_v27  ;;  %660 = vmatprep.subr.mxu1 %v350_v27  ;;  %v337_v19 = vld [vmem:[%s2785_s21 + $0xc0] sm:$0xff]  ;;  %v306_v20 = vld [vmem:[%s2780_s18 + $0xc8] sm:$0xff]  ;;  %v307_v22 = vld [vmem:[%s2780_s18 + $0xd0] sm:$0xff] }
  0x5d   : > { %404 = vmatpush1.msra.mxu0 %v349_v28  ;;  %661 = vmatpush1.msra.mxu1 %v349_v28  ;;  %v338_v21 = vld [vmem:[%s2785_s21 + $0xc8] sm:$0xff]  ;;  %v339_v23 = vld [vmem:[%s2785_s21 + $0xd0] sm:$0xff]  ;;  %v308_v24 = vld [vmem:[%s2780_s18 + $0xd8] sm:$0xff] }
  0x5e   : > { %405 = vmatprep.subr.mxu0 %v348_v29  ;;  %662 = vmatprep.subr.mxu1 %v348_v29  ;;  %v340_v25 = vld [vmem:[%s2785_s21 + $0xd8] sm:$0xff]  ;;  %v309_v26 = vld [vmem:[%s2780_s18 + $0xe0] sm:$0xff]  ;;  %v310_v28 = vld [vmem:[%s2780_s18 + $0xe8] sm:$0xff] }
  0x5f   : > { %406 = vmatpush1.msra.mxu0 %v347_v30  ;;  %663 = vmatpush1.msra.mxu1 %v347_v30  ;;  %v341_v27 = vld [vmem:[%s2785_s21 + $0xe0] sm:$0xff]  ;;  %v342_v29 = vld [vmem:[%s2785_s21 + $0xe8] sm:$0xff]  ;;  %v311_v30 = vld [vmem:[%s2780_s18 + $0xf0] sm:$0xff] }
  0x60   : > { %407 = vmatprep.subr.mxu0 %v346_v31  ;;  %664 = vmatprep.subr.mxu1 %v346_v31  ;;  %v343_v31 = vld [vmem:[%s2785_s21 + $0xf0] sm:$0xff] }
  0x61   : > { %408 = vmatpush1.msra.mxu0 %v345_v32  ;;  %441 = vmatprep.mubr.f32.mxu0 %v2744_v35 }
  0x62   : > { %665 = vmatpush1.msra.mxu1 %v345_v32  ;;  %698 = vmatprep.mubr.f32.mxu1 %v2744_v35  ;;  %v312_v32 = vld [vmem:[%s2780_s18 + $0xf8] sm:$0xff] }
  0x63   : > { %442 = vmatmul.mubr.f32.vlgmr.msra.gmra.mxu0 %v281_v33  ;;  %699 = vmatmul.mubr.f32.vlgmr.msra.gmra.mxu1 %v313_v34  ;;  %v344_v33 = vld [vmem:[%s2785_s21 + $0xf8] sm:$0xff] }
  0x64   : > { %447 = vmatprep.mubr.f32.mxu0 %v2744_v35  ;;  %704 = vmatprep.mubr.f32.mxu1 %v2744_v35 }
  0x67   : > { %448 = vmatmul.mubr.f32.gmra.mxu0 %v282_v36  ;;  %705 = vmatmul.mubr.f32.gmra.mxu1 %v314_v37 }
  0x68   : > { %453 = vmatprep.mubr.f32.mxu0 %v2744_v35  ;;  %710 = vmatprep.mubr.f32.mxu1 %v2744_v35 }
  0x6b   : > { %454 = vmatmul.mubr.f32.gmra.mxu0 %v283_v38  ;;  %711 = vmatmul.mubr.f32.gmra.mxu1 %v315_v39 }
  0x6c   : > { %459 = vmatprep.mubr.f32.mxu0 %v2744_v35  ;;  %716 = vmatprep.mubr.f32.mxu1 %v2744_v35 }
  0x6f   : > { %460 = vmatmul.mubr.f32.gmra.mxu0 %v284_v40  ;;  %717 = vmatmul.mubr.f32.gmra.mxu1 %v316_v41 }
  0x70   : > { %465 = vmatprep.mubr.f32.mxu0 %v2744_v35  ;;  %722 = vmatprep.mubr.f32.mxu1 %v2744_v35 }
  0x73   : > { %466 = vmatmul.mubr.f32.gmra.mxu0 %v285_v42  ;;  %723 = vmatmul.mubr.f32.gmra.mxu1 %v317_v43 }
  0x74   : > { %471 = vmatprep.mubr.f32.mxu0 %v2744_v35  ;;  %728 = vmatprep.mubr.f32.mxu1 %v2744_v35 }
  0x77   : > { %472 = vmatmul.mubr.f32.gmra.mxu0 %v286_v44  ;;  %729 = vmatmul.mubr.f32.gmra.mxu1 %v318_v45 }
  0x78   : > { %477 = vmatprep.mubr.f32.mxu0 %v2744_v35  ;;  %734 = vmatprep.mubr.f32.mxu1 %v2744_v35 }
  0x7b   : > { %478 = vmatmul.mubr.f32.gmra.mxu0 %v287_v46  ;;  %735 = vmatmul.mubr.f32.gmra.mxu1 %v319_v47  ;;  %v1691_v47 = vld [vmem:[#allocation3 + $0x80] sm:$0xff] }
  0x7c   : > { %483 = vmatprep.mubr.f32.mxu0 %v2744_v35  ;;  %740 = vmatprep.mubr.f32.mxu1 %v2744_v35 }
  0x7f   : > { %484 = vmatmul.mubr.f32.gmra.mxu0 %v288_v48  ;;  %741 = vmatmul.mubr.f32.gmra.mxu1 %v320_v49 }
  0x80   : > { %489 = vmatprep.mubr.f32.mxu0 %v2744_v35  ;;  %746 = vmatprep.mubr.f32.mxu1 %v2744_v35 }
  0x83   : > { %490 = vmatmul.mubr.f32.gmra.mxu0 %v289_v50  ;;  %747 = vmatmul.mubr.f32.gmra.mxu1 %v321_v51 }
  0x84   : > { %495 = vmatprep.mubr.f32.mxu0 %v2744_v35  ;;  %752 = vmatprep.mubr.f32.mxu1 %v2744_v35 }
  0x87   : > { %496 = vmatmul.mubr.f32.gmra.mxu0 %v290_v52  ;;  %753 = vmatmul.mubr.f32.gmra.mxu1 %v322_v53 }
  0x88   : > { %501 = vmatprep.mubr.f32.mxu0 %v2744_v35  ;;  %758 = vmatprep.mubr.f32.mxu1 %v2744_v35 }
  0x8b   : > { %502 = vmatmul.mubr.f32.gmra.mxu0 %v291_v54  ;;  %759 = vmatmul.mubr.f32.gmra.mxu1 %v323_v55 }
  0x8c   : > { %507 = vmatprep.mubr.f32.mxu0 %v2744_v35  ;;  %764 = vmatprep.mubr.f32.mxu1 %v2744_v35 }
  0x8f   : > { %508 = vmatmul.mubr.f32.gmra.mxu0 %v292_v56  ;;  %765 = vmatmul.mubr.f32.gmra.mxu1 %v324_v57 }
  0x90   : > { %513 = vmatprep.mubr.f32.mxu0 %v2744_v35  ;;  %770 = vmatprep.mubr.f32.mxu1 %v2744_v35 }
  0x93   : > { %514 = vmatmul.mubr.f32.gmra.mxu0 %v293_v58  ;;  %771 = vmatmul.mubr.f32.gmra.mxu1 %v325_v59 }
  0x94   : > { %519 = vmatprep.mubr.f32.mxu0 %v2744_v35  ;;  %776 = vmatprep.mubr.f32.mxu1 %v2744_v35 }
  0x97   : > { %520 = vmatmul.mubr.f32.gmra.mxu0 %v294_v60  ;;  %777 = vmatmul.mubr.f32.gmra.mxu1 %v326_v61 }
  0x98   : > { %525 = vmatprep.mubr.f32.mxu0 %v2744_v35  ;;  %782 = vmatprep.mubr.f32.mxu1 %v2744_v35 }
  0x9b   : > { %526 = vmatmul.mubr.f32.gmra.mxu0 %v295_v62  ;;  %783 = vmatmul.mubr.f32.gmra.mxu1 %v327_v63  ;;  %v1692_v62 = vld [vmem:[#allocation3 + $0xc8] sm:$0xff] }
  0x9c   : > { %531 = vmatprep.mubr.f32.mxu0 %v2744_v35  ;;  %788 = vmatprep.mubr.f32.mxu1 %v2744_v35 }
  0x9f   : > { %532 = vmatmul.mubr.f32.gmra.mxu0 %v296_v0  ;;  %789 = vmatmul.mubr.f32.gmra.mxu1 %v328_v1 }
  0xa0   : > { %537 = vmatprep.mubr.f32.mxu0 %v2744_v35  ;;  %794 = vmatprep.mubr.f32.mxu1 %v2744_v35 }
  0xa3   : > { %538 = vmatmul.mubr.f32.gmra.mxu0 %v297_v2  ;;  %795 = vmatmul.mubr.f32.gmra.mxu1 %v329_v3 }
  0xa4   : > { %543 = vmatprep.mubr.f32.mxu0 %v2744_v35  ;;  %800 = vmatprep.mubr.f32.mxu1 %v2744_v35 }
  0xa7   : > { %544 = vmatmul.mubr.f32.gmra.mxu0 %v298_v4  ;;  %801 = vmatmul.mubr.f32.gmra.mxu1 %v330_v5 }
  0xa8   : > { %549 = vmatprep.mubr.f32.mxu0 %v2744_v35  ;;  %806 = vmatprep.mubr.f32.mxu1 %v2744_v35 }
  0xab   : > { %550 = vmatmul.mubr.f32.gmra.mxu0 %v299_v6  ;;  %807 = vmatmul.mubr.f32.gmra.mxu1 %v331_v7 }
  0xac   : > { %555 = vmatprep.mubr.f32.mxu0 %v2744_v35  ;;  %812 = vmatprep.mubr.f32.mxu1 %v2744_v35 }
  0xaf   : > { %556 = vmatmul.mubr.f32.gmra.mxu0 %v300_v8  ;;  %813 = vmatmul.mubr.f32.gmra.mxu1 %v332_v9  ;;  %v1693_v8 = vld [vmem:[#allocation3 + $0xe8] sm:$0xff] }
  0xb0   : > { %561 = vmatprep.mubr.f32.mxu0 %v2744_v35  ;;  %818 = vmatprep.mubr.f32.mxu1 %v2744_v35 }
  0xb3   : > { %562 = vmatmul.mubr.f32.gmra.mxu0 %v301_v10  ;;  %819 = vmatmul.mubr.f32.gmra.mxu1 %v333_v11 }
  0xb4   : > { %567 = vmatprep.mubr.f32.mxu0 %v2744_v35  ;;  %824 = vmatprep.mubr.f32.mxu1 %v2744_v35 }
  0xb7   : > { %568 = vmatmul.mubr.f32.gmra.mxu0 %v302_v12  ;;  %825 = vmatmul.mubr.f32.gmra.mxu1 %v334_v13 }
  0xb8   : > { %573 = vmatprep.mubr.f32.mxu0 %v2744_v35  ;;  %830 = vmatprep.mubr.f32.mxu1 %v2744_v35 }
  0xbb   : > { %574 = vmatmul.mubr.f32.gmra.mxu0 %v303_v14  ;;  %831 = vmatmul.mubr.f32.gmra.mxu1 %v335_v15 }
  0xbc   : > { %579 = vmatprep.mubr.f32.mxu0 %v2744_v35  ;;  %836 = vmatprep.mubr.f32.mxu1 %v2744_v35 }
  0xbf   : > { %580 = vmatmul.mubr.f32.gmra.mxu0 %v304_v16  ;;  %837 = vmatmul.mubr.f32.gmra.mxu1 %v336_v17 }
  0xc0   : > { %585 = vmatprep.mubr.f32.mxu0 %v2744_v35  ;;  %842 = vmatprep.mubr.f32.mxu1 %v2744_v35 }
  0xc3   : > { %586 = vmatmul.mubr.f32.gmra.mxu0 %v305_v18  ;;  %843 = vmatmul.mubr.f32.gmra.mxu1 %v337_v19 }
  0xc4   : > { %591 = vmatprep.mubr.f32.mxu0 %v2744_v35  ;;  %848 = vmatprep.mubr.f32.mxu1 %v2744_v35 }
  0xc7   : > { %592 = vmatmul.mubr.f32.gmra.mxu0 %v306_v20  ;;  %849 = vmatmul.mubr.f32.gmra.mxu1 %v338_v21 }
  0xc8   : > { %597 = vmatprep.mubr.f32.mxu0 %v2744_v35  ;;  %854 = vmatprep.mubr.f32.mxu1 %v2744_v35 }
  0xcb   : > { %598 = vmatmul.mubr.f32.gmra.mxu0 %v307_v22  ;;  %855 = vmatmul.mubr.f32.gmra.mxu1 %v339_v23 }
  0xcc   : > { %603 = vmatprep.mubr.f32.mxu0 %v2744_v35  ;;  %860 = vmatprep.mubr.f32.mxu1 %v2744_v35 }
  0xcf   : > { %604 = vmatmul.mubr.f32.gmra.mxu0 %v308_v24  ;;  %861 = vmatmul.mubr.f32.gmra.mxu1 %v340_v25  ;;  %v1694_v24 = vld [vmem:[#allocation3 + $0x78] sm:$0xff] }
  0xd0   : > { %609 = vmatprep.mubr.f32.mxu0 %v2744_v35  ;;  %866 = vmatprep.mubr.f32.mxu1 %v2744_v35 }
  0xd3   : > { %610 = vmatmul.mubr.f32.gmra.mxu0 %v309_v26  ;;  %867 = vmatmul.mubr.f32.gmra.mxu1 %v341_v27 }
  0xd4   : > { %615 = vmatprep.mubr.f32.mxu0 %v2744_v35  ;;  %872 = vmatprep.mubr.f32.mxu1 %v2744_v35 }
  0xd7   : > { %616 = vmatmul.mubr.f32.gmra.mxu0 %v310_v28  ;;  %873 = vmatmul.mubr.f32.gmra.mxu1 %v342_v29 }
  0xd8   : > { %621 = vmatprep.mubr.f32.mxu0 %v2744_v35  ;;  %878 = vmatprep.mubr.f32.mxu1 %v2744_v35 }
  0xdb   : > { %622 = vmatmul.mubr.f32.gmra.mxu0 %v311_v30  ;;  %879 = vmatmul.mubr.f32.gmra.mxu1 %v343_v31 }
  0xdc   : > { %627 = vmatprep.mubr.f32.mxu0 %v2744_v35  ;;  %884 = vmatprep.mubr.f32.mxu1 %v2744_v35 }
  0xdf   : > { %628 = vmatmul.mubr.f32.gmra.mxu0 %v312_v32  ;;  %885 = vmatmul.mubr.f32.gmra.mxu1 %v344_v33 }
 0x123   : > { %v443_v34 = vpop.f32.mrf.mxu0  ;;  %v700_v36 = vpop.f32.mrf.mxu1 }
 0x124   : > { %v891_v39 = vmul.f32 %v443_v34, %v443_v34  ;;  %v987_v40 = vmul.f32 %v700_v36, %v700_v36 }
 0x125   : > { %v445_v37 = vpop.f32.mrf.mxu0  ;;  %v702_v38 = vpop.f32.mrf.mxu1 }
 0x126   : > { %v923_v41 = vmul.f32 %v445_v37, %v445_v37  ;;  %v1019_v42 = vmul.f32 %v702_v38, %v702_v38 }
 0x127   : > { %v449_v43 = vpop.f32.mrf.mxu0  ;;  %v706_v44 = vpop.f32.mrf.mxu1 }
 0x128   : > { %v3108_v45 = vadd.f32 %v923_v41, %v891_v39  ;;  %v3110_v46 = vadd.f32 %v1019_v42, %v987_v40  ;;  %v892_v49 = vmul.f32 %v449_v43, %v449_v43  ;;  %v988_v53 = vmul.f32 %v706_v44, %v706_v44 }
 0x129   : > { %v451_v35 = vpop.f32.mrf.mxu0  ;;  %v708_v48 = vpop.f32.mrf.mxu1 }
 0x12a   : > { %2461 = vrsqrt.f32 %v3108_v45  ;;  %v1723_v52 = vadd.f32 %v1691_v47, %v3110_v46  ;;  %v924_v54 = vmul.f32 %v451_v35, %v451_v35  ;;  %v1020_v55 = vmul.f32 %v708_v48, %v708_v48 }
 0x12b   : > { %2463 = vrsqrt.f32 %v3110_v46  ;;  %v455_v50 = vpop.f32.mrf.mxu0  ;;  %v712_v51 = vpop.f32.mrf.mxu1  ;;  %vm1085_vm0 = vcmp.eq.f32.partialorder %v3108_v45, inf  ;;  %vm1087_vm1 = vcmp.eq.f32.partialorder %v3108_v45, 0.0  ;;  %v1088_v15 = vand.u32 2147483648, %v3108_v45 }
 0x12c   : > { %1755 = vst [vmem:[#allocation3 + $0x80] sm:$0xff] %v1723_v52  ;;  %v3115_v58 = vadd.f32 %v924_v54, %v892_v49  ;;  %v3117_v59 = vadd.f32 %v1020_v55, %v988_v53  ;;  %v893_v1 = vmul.f32 %v455_v50, %v455_v50  ;;  %v989_v2 = vmul.f32 %v712_v51, %v712_v51  ;;  %v1563_v49 = vld [vmem:[#allocation2 + $0xb0] sm:$0xff]  ;;  %v1695_v51 = vld [vmem:[#allocation3 + $0x8] sm:$0xff] }
 0x12d   : > { %v457_v56 = vpop.f32.mrf.mxu0  ;;  %v714_v57 = vpop.f32.mrf.mxu1  ;;  %vm1309_vm2 = vcmp.eq.f32.partialorder %v3110_v46, inf  ;;  %vm1311_vm3 = vcmp.eq.f32.partialorder %v3110_v46, 0.0  ;;  %v1312_v22 = vand.u32 2147483648, %v3110_v46 }
 0x12e   : > { %v925_v60 = vmul.f32 %v457_v56, %v457_v56  ;;  %v1021_v61 = vmul.f32 %v714_v57, %v714_v57  ;;  %2465 = vrsqrt.f32 %v3115_v58  ;;  %v1724_v5 = vadd.f32 %v1692_v62, %v3117_v59 }
 0x12f   : > { %v461_v63 = vpop.f32.mrf.mxu0  ;;  %v718_v0 = vpop.f32.mrf.mxu1  ;;  %2467 = vrsqrt.f32 %v3117_v59  ;;  %vm1092_vm4 = vcmp.eq.f32.partialorder %v3115_v58, inf  ;;  %v1095_v23 = vand.u32 2147483648, %v3115_v58  ;;  %vm1094_vm5 = vcmp.eq.f32.partialorder %v3115_v58, 0.0 }
 0x130   : > { %v3122_v6 = vadd.f32 %v925_v60, %v893_v1  ;;  %v3124_v7 = vadd.f32 %v1021_v61, %v989_v2  ;;  %1756 = vst [vmem:[#allocation3 + $0xc8] sm:$0xff] %v1724_v5  ;;  %v894_v13 = vmul.f32 %v461_v63, %v461_v63  ;;  %v990_v14 = vmul.f32 %v718_v0, %v718_v0 }
 0x131   : > { %v463_v3 = vpop.f32.mrf.mxu0  ;;  %v720_v4 = vpop.f32.mrf.mxu1  ;;  %vm1316_vm6 = vcmp.eq.f32.partialorder %v3117_v59, inf  ;;  %vm1318_vm7 = vcmp.eq.f32.partialorder %v3117_v59, 0.0  ;;  %v1319_v32 = vand.u32 2147483648, %v3117_v59 }
 0x132   : > { %v926_v9 = vmul.f32 %v463_v3, %v463_v3  ;;  %v1022_v10 = vmul.f32 %v720_v4, %v720_v4  ;;  %2469 = vrsqrt.f32 %v3122_v6  ;;  %v1725_v18 = vadd.f32 %v1693_v8, %v3124_v7 }
 0x133   : > { %v467_v11 = vpop.f32.mrf.mxu0  ;;  %v724_v12 = vpop.f32.mrf.mxu1  ;;  %2471 = vrsqrt.f32 %v3124_v7  ;;  %vm1099_vm8 = vcmp.eq.f32.partialorder %v3122_v6, inf  ;;  %vm1101_vm9 = vcmp.eq.f32.partialorder %v3122_v6, 0.0  ;;  %v1102_v42 = vand.u32 2147483648, %v3122_v6 }
 0x134   : > { %v3134_v19 = vadd.f32 %v926_v9, %v894_v13  ;;  %v3136_v20 = vadd.f32 %v1022_v10, %v990_v14  ;;  %1757 = vst [vmem:[#allocation3 + $0xe8] sm:$0xff] %v1725_v18  ;;  %v895_v30 = vmul.f32 %v467_v11, %v467_v11  ;;  %v991_v34 = vmul.f32 %v724_v12, %v724_v12  ;;  %v1564_v13 = vld [vmem:[#allocation2] sm:$0xff] }
 0x135   : > { %v469_v16 = vpop.f32.mrf.mxu0  ;;  %v726_v17 = vpop.f32.mrf.mxu1  ;;  %vm1323_vm10 = vcmp.eq.f32.partialorder %v3124_v7, inf  ;;  %vm1325_vm11 = vcmp.eq.f32.partialorder %v3124_v7, 0.0  ;;  %v1326_v50 = vand.u32 2147483648, %v3124_v7 }
 0x136   : > { %v927_v25 = vmul.f32 %v469_v16, %v469_v16  ;;  %2473 = vrsqrt.f32 %v3134_v19  ;;  %v1023_v28 = vmul.f32 %v726_v17, %v726_v17  ;;  %v1726_v33 = vadd.f32 %v1694_v24, %v3136_v20 }
 0x137   : > { %v2462_v21 = vpop.eup %2461  ;;  %2475 = vrsqrt.f32 %v3136_v20  ;;  %v473_v39 = vpop.f32.mrf.mxu0  ;;  %vm1106_vm12 = vcmp.eq.f32.partialorder %v3134_v19, inf  ;;  %v1109_v54 = vand.u32 2147483648, %v3134_v19  ;;  %vm1108_vm13 = vcmp.eq.f32.partialorder %v3134_v19, 0.0 }
 0x138   : > { %v2464_v26 = vpop.eup %2463  ;;  %v1084_v27 = vmul.f32 %v2462_v21, %v3108_v45  ;;  %v3159_v38 = vadd.f32 %v927_v25, %v895_v30  ;;  %1758 = vst [vmem:[#allocation3 + $0x78] sm:$0xff] %v1726_v33  ;;  %v3165_v43 = vadd.f32 %v1023_v28, %v991_v34  ;;  %v730_v35 = vpop.f32.mrf.mxu1  ;;  %vm1330_vm14 = vcmp.eq.f32.partialorder %v3136_v20, inf }
 0x139   : > { %v1308_v29 = vmul.f32 %v2464_v26, %v3110_v46  ;;  %v475_v55 = vpop.f32.mrf.mxu0  ;;  %v1333_v57 = vand.u32 2147483648, %v3136_v20  ;;  %v896_v60 = vmul.f32 %v473_v39, %v473_v39  ;;  %vm1332_vm15 = vcmp.eq.f32.partialorder %v3136_v20, 0.0 }
 0x13a   : > { %v1086_v31 = vsel %vm1085_vm0, %v3108_v45, %v1084_v27  ;;  %2477 = vrsqrt.f32 %v3159_v38  ;;  %v1727_v1 = vadd.f32 %v1695_v51, %v3165_v43  ;;  %v732_v2 = vpop.f32.mrf.mxu1  ;;  %v928_v9 = vmul.f32 %v475_v55, %v475_v55 }
 0x13b   : > { %v1089_v36 = vsel %vm1087_vm1, %v1088_v15, %v1086_v31  ;;  %v1310_v37 = vsel %vm1309_vm2, %v3110_v46, %v1308_v29  ;;  %v2466_v44 = vpop.eup %2465  ;;  %v992_v12 = vmul.f32 %v730_v35, %v730_v35  ;;  %v3198_v16 = vpop.f32.mrf.mxu0  ;;  %v1565_v31 = vld [vmem:[#allocation2 + $0xd8] sm:$0xff]  ;;  %vm1113_vm0 = vcmp.eq.f32.partialorder %v3159_v38, inf }
 0x13c   : > { %v1819_v40 = vadd.f32 1e-07, %v1089_v36  ;;  %v1313_v41 = vsel %vm1311_vm3, %v1312_v22, %v1310_v37  ;;  %v2468_v48 = vpop.eup %2467  ;;  %v1091_v46 = vmul.f32 %v2466_v44, %v3115_v58  ;;  %1759 = vst [vmem:[#allocation3 + $0x8] sm:$0xff] %v1727_v1  ;;  %v3196_v15 = vadd.f32 %v928_v9, %v896_v60  ;;  %v736_v27 = vpop.f32.mrf.mxu1 }
 0x13d   : > { %v1531_v45 = vsub.f32 %v1313_v41, %v1089_v36  ;;  %v1915_v47 = vadd.f32 1e-07, %v1313_v41  ;;  %v1315_v53 = vmul.f32 %v2468_v48, %v3117_v59  ;;  %vm1115_vm1 = vcmp.eq.f32.partialorder %v3159_v38, 0.0 }
 0x13e   : > { %2479 = vlog2.f32 %v1819_v40  ;;  %v1093_v56 = vsel %vm1092_vm4, %v3115_v58, %v1091_v46  ;;  %v1116_v41 = vand.u32 2147483648, %v3159_v38  ;;  %v738_v44 = vpop.f32.mrf.mxu1  ;;  %vm1337_vm2 = vcmp.eq.f32.partialorder %v3165_v43, inf }
 0x13f   : > { %v1595_v52 = vmul.f32 %v1531_v45, %v1531_v45  ;;  %2481 = vlog2.f32 %v1915_v47  ;;  %v2470_v61 = vpop.eup %2469  ;;  %v1096_v63 = vsel %vm1094_vm5, %v1095_v23, %v1093_v56  ;;  %v1317_v0 = vsel %vm1316_vm6, %v3117_v59, %v1315_v53 }
 0x140   : > { %2483 = vrsqrt.f32 %v3165_v43  ;;  %v2472_v3 = vpop.eup %2471  ;;  %v1820_v4 = vadd.f32 1e-07, %v1096_v63  ;;  %v1320_v5 = vsel %vm1318_vm7, %v1319_v32, %v1317_v0  ;;  %v1098_v8 = vmul.f32 %v2470_v61, %v3122_v6  ;;  %v742_v61 = vpop.f32.mrf.mxu1 }
 0x141   : > { %v1627_v62 = vadd.f32 %v1595_v52, %v1563_v49  ;;  %v1532_v58 = vsub.f32 %v1320_v5, %v1096_v63  ;;  %v1916_v10 = vadd.f32 1e-07, %v1320_v5  ;;  %v1322_v11 = vmul.f32 %v2472_v3, %v3124_v7 }
 0x142   : > { %2485 = vlog2.f32 %v1820_v4  ;;  %v1100_v14 = vsel %vm1099_vm8, %v3122_v6, %v1098_v8  ;;  %v1024_v59 = vmul.f32 %v732_v2, %v732_v2  ;;  %vm1339_vm3 = vcmp.eq.f32.partialorder %v3165_v43, 0.0  ;;  %v1787_v2 = vld [vmem:[#allocation4 + $0xb0] sm:$0xff] }
 0x143   : > { %1659 = vst [vmem:[#allocation2 + $0xb0] sm:$0xff] %v1627_v62  ;;  %v2474_v17 = vpop.eup %2473  ;;  %v1596_v18 = vmul.f32 %v1532_v58, %v1532_v58  ;;  %2487 = vlog2.f32 %v1916_v10  ;;  %v1103_v21 = vsel %vm1101_vm9, %v1102_v42, %v1100_v14  ;;  %v1324_v22 = vsel %vm1323_vm10, %v3124_v7, %v1322_v11  ;;  %v481_v7 = vpop.f32.mrf.mxu0 }
 0x144   : > { %v2476_v23 = vpop.eup %2475  ;;  %v1821_v24 = vadd.f32 1e-07, %v1103_v21  ;;  %v1327_v25 = vsel %vm1325_vm11, %v1326_v50, %v1324_v22  ;;  %v1105_v26 = vmul.f32 %v2474_v17, %v3134_v19  ;;  %2489 = vrsqrt.f32 %v3196_v15  ;;  %v1566_v50 = vld [vmem:[#allocation2 + $0x18] sm:$0xff] }
 0x145   : > { %v1628_v28 = vadd.f32 %v1596_v18, %v1564_v13  ;;  %v1533_v29 = vsub.f32 %v1327_v25, %v1103_v21  ;;  %v1917_v30 = vadd.f32 1e-07, %v1327_v25  ;;  %v1329_v6 = vmul.f32 %v2476_v23, %v3136_v20  ;;  %v3228_v51 = vpop.f32.mrf.mxu0  ;;  %v744_v18 = vpop.f32.mrf.mxu1  ;;  %v1567_v23 = vld [vmem:[#allocation2 + $0x50] sm:$0xff] }
 0x146   : > { %2491 = vlog2.f32 %v1821_v24  ;;  %v1107_v32 = vsel %vm1106_vm12, %v3134_v19, %v1105_v26  ;;  %v3223_v42 = vadd.f32 %v1024_v59, %v992_v12  ;;  %v1340_v60 = vand.u32 2147483648, %v3165_v43 }
 0x147   : > { %1660 = vst [vmem:[#allocation2] sm:$0xff] %v1628_v28  ;;  %v1597_v33 = vmul.f32 %v1533_v29, %v1533_v29  ;;  %2493 = vlog2.f32 %v1917_v30  ;;  %v1110_v34 = vsel %vm1108_vm13, %v1109_v54, %v1107_v32  ;;  %v1331_v36 = vsel %vm1330_vm14, %v3136_v20, %v1329_v6  ;;  %v2478_v37 = vpop.eup %2477  ;;  %v1696_v20 = vld [vmem:[#allocation3 + $0x90] sm:$0xff]  ;;  %v487_v8 = vpop.f32.mrf.mxu0  ;;  %v1697_v30 = vld [vmem:[#allocation3 + $0x58] sm:$0xff] }
 0x148   : > { %v1822_v39 = vadd.f32 1e-07, %v1110_v34  ;;  %v1334_v40 = vsel %vm1332_vm15, %v1333_v57, %v1331_v36  ;;  %v1112_v19 = vmul.f32 %v2478_v37, %v3159_v38  ;;  %v1728_v1 = vadd.f32 %v1696_v20, %v3223_v42 }
 0x149   : > { %v1629_v47 = vadd.f32 %v1597_v33, %v1565_v31  ;;  %v1534_v35 = vsub.f32 %v1334_v40, %v1110_v34  ;;  %v1918_v48 = vadd.f32 1e-07, %v1334_v40  ;;  %v929_v4 = vmul.f32 %v481_v7, %v481_v7  ;;  %v3252_v26 = vpop.f32.mrf.mxu0  ;;  %v1788_v31 = vld [vmem:[#allocation4 + $0xb8] sm:$0xff]  ;;  %v748_v34 = vpop.f32.mrf.mxu1 }
 0x14a   : > { %2495 = vlog2.f32 %v1822_v39  ;;  %v1114_v55 = vsel %vm1113_vm0, %v3159_v38, %v1112_v19  ;;  %v897_v38 = vmul.f32 %v3198_v16, %v3198_v16  ;;  %v1025_v5 = vmul.f32 %v738_v44, %v738_v44  ;;  %1760 = vst [vmem:[#allocation3 + $0x90] sm:$0xff] %v1728_v1 }
 0x14b   : > { %v2480_v45 = vpop.eup %2479  ;;  %1661 = vst [vmem:[#allocation2 + $0xd8] sm:$0xff] %v1629_v47  ;;  %v1598_v54 = vmul.f32 %v1534_v35, %v1534_v35  ;;  %2497 = vlog2.f32 %v1918_v48  ;;  %v1117_v56 = vsel %vm1115_vm1, %v1116_v41, %v1114_v55  ;;  %v993_v11 = vmul.f32 %v736_v27, %v736_v27  ;;  %v493_v47 = vpop.f32.mrf.mxu0 }
 0x14c   : > { %v2482_v49 = vpop.eup %2481  ;;  %v1852_v46 = vmul.f32 0.6931472, %v2480_v45  ;;  %2499 = vrsqrt.f32 %v3223_v42  ;;  %v1823_v0 = vadd.f32 1e-07, %v1117_v56  ;;  %v3246_v17 = vadd.f32 %v929_v4, %v897_v38 }
 0x14d   : > { %v2484_v52 = vpop.eup %2483  ;;  %v1948_v53 = vmul.f32 0.6931472, %v2482_v49  ;;  %v1630_v63 = vadd.f32 %v1598_v54, %v1566_v50  ;;  %v3248_v24 = vadd.f32 %v1025_v5, %v993_v11  ;;  %vm1120_vm4 = vcmp.eq.f32.partialorder %v3196_v15, inf  ;;  %v1789_v50 = vld [vmem:[#allocation4 + $0xc0] sm:$0xff]  ;;  %v1698_v5 = vld [vmem:[#allocation3 + $0xa8] sm:$0xff] }
 0x14e   : > { %v1336_v57 = vmul.f32 %v2484_v52, %v3165_v43  ;;  %2501 = vlog2.f32 %v1823_v0  ;;  %vm1122_vm5 = vcmp.eq.f32.partialorder %v3196_v15, 0.0  ;;  %v1123_v29 = vand.u32 2147483648, %v3196_v15 }
 0x14f   : > { %v2011_v62 = vsub.f32 %v1852_v46, %v1948_v53  ;;  %v2486_v9 = vpop.eup %2485  ;;  %1662 = vst [vmem:[#allocation2 + $0x18] sm:$0xff] %v1630_v63  ;;  %v1729_v41 = vadd.f32 %v1697_v30, %v3248_v24  ;;  %v898_v44 = vmul.f32 %v3228_v51, %v3228_v51  ;;  %v994_v45 = vmul.f32 %v742_v61, %v742_v61  ;;  %v750_v53 = vpop.f32.mrf.mxu1 }
 0x150   : > { %v1338_v3 = vsel %vm1337_vm2, %v3165_v43, %v1336_v57  ;;  %v2488_v12 = vpop.eup %2487  ;;  %v1854_v13 = vmul.f32 0.6931472, %v2486_v9  ;;  %v930_v49 = vmul.f32 %v487_v8, %v487_v8  ;;  %vm1344_vm6 = vcmp.eq.f32.partialorder %v3223_v42, inf }
 0x151   : > { %v2043_v58 = vand.u32 2147483647, %v2011_v62  ;;  %v1341_v10 = vsel %vm1339_vm3, %v1340_v60, %v1338_v3  ;;  %v2490_v16 = vpop.eup %2489  ;;  %v1950_v22 = vmul.f32 0.6931472, %v2488_v12  ;;  %vm1346_vm7 = vcmp.eq.f32.partialorder %v3223_v42, 0.0  ;;  %1761 = vst [vmem:[#allocation3 + $0x58] sm:$0xff] %v1729_v41  ;;  %v497_v62 = vpop.f32.mrf.mxu0 }
 0x152   : > { %v1535_v14 = vsub.f32 %v1341_v10, %v1117_v56  ;;  %v1919_v59 = vadd.f32 1e-07, %v1341_v10  ;;  %v1119_v43 = vmul.f32 %v2490_v16, %v3196_v15  ;;  %v1347_v52 = vand.u32 2147483648, %v3223_v42  ;;  %v1790_v3 = vld [vmem:[#allocation4 + $0x10] sm:$0xff]  ;;  %v754_v11 = vpop.f32.mrf.mxu1 }
 0x153   : > { %v2075_v21 = vadd.f32 %v2043_v58, %v1787_v2  ;;  %v2492_v27 = vpop.eup %2491  ;;  %v2012_v28 = vsub.f32 %v1854_v13, %v1950_v22  ;;  %v3265_v56 = vadd.f32 %v930_v49, %v898_v44  ;;  %vm1127_vm8 = vcmp.eq.f32.partialorder %v3246_v17, inf }
 0x154   : > { %v1599_v25 = vmul.f32 %v1535_v14, %v1535_v14  ;;  %2503 = vlog2.f32 %v1919_v59  ;;  %v2494_v6 = vpop.eup %2493  ;;  %v1856_v32 = vmul.f32 0.6931472, %v2492_v27  ;;  %v1121_v33 = vsel %vm1120_vm4, %v3196_v15, %v1119_v43  ;;  %v499_v59 = vpop.f32.mrf.mxu0 }
 0x155   : > { %2107 = vst [vmem:[#allocation4 + $0xb0] sm:$0xff] %v2075_v21  ;;  %2505 = vrsqrt.f32 %v3246_v17  ;;  %v2044_v36 = vand.u32 2147483647, %v2012_v28  ;;  %v1952_v37 = vmul.f32 0.6931472, %v2494_v6  ;;  %v1124_v39 = vsel %vm1122_vm5, %v1123_v29, %v1121_v33  ;;  %v1568_v21 = vld [vmem:[#allocation2 + $0x68] sm:$0xff]  ;;  %v756_v6 = vpop.f32.mrf.mxu1 }
 0x156   : > { %v1631_v7 = vadd.f32 %v1599_v25, %v1567_v23  ;;  %2507 = vrsqrt.f32 %v3248_v24  ;;  %v1824_v40 = vadd.f32 1e-07, %v1124_v39  ;;  %v1026_v15 = vmul.f32 %v744_v18, %v744_v18  ;;  %v1699_v33 = vld [vmem:[#allocation3 + $0xd0] sm:$0xff] }
 0x157   : > { %v2496_v35 = vpop.eup %2495  ;;  %v2076_v48 = vadd.f32 %v2044_v36, %v1788_v31  ;;  %v2013_v19 = vsub.f32 %v1856_v32, %v1952_v37  ;;  %v931_v61 = vmul.f32 %v493_v47, %v493_v47  ;;  %v1027_v1 = vmul.f32 %v750_v53, %v750_v53  ;;  %v1791_v36 = vld [vmem:[#allocation4 + $0x28] sm:$0xff] }
 0x158   : > { %1663 = vst [vmem:[#allocation2 + $0x50] sm:$0xff] %v1631_v7  ;;  %v2498_v46 = vpop.eup %2497  ;;  %v1858_v20 = vmul.f32 0.6931472, %v2496_v35  ;;  %v3267_v57 = vadd.f32 %v1026_v15, %v994_v45  ;;  %2509 = vlog2.f32 %v1824_v40  ;;  %vm1129_vm9 = vcmp.eq.f32.partialorder %v3246_v17, 0.0 }
 0x159   : > { %v2500_v54 = vpop.eup %2499  ;;  %2108 = vst [vmem:[#allocation4 + $0xb8] sm:$0xff] %v2076_v48  ;;  %v2045_v51 = vand.u32 2147483647, %v2013_v19  ;;  %v1954_v55 = vmul.f32 0.6931472, %v2498_v46  ;;  %2511 = vrsqrt.f32 %v3265_v56  ;;  %v1130_v4 = vand.u32 2147483648, %v3246_v17  ;;  %v760_v19 = vpop.f32.mrf.mxu1 }
 0x15a   : > { %v1343_v60 = vmul.f32 %v2500_v54, %v3223_v42  ;;  %2513 = vrsqrt.f32 %v3267_v57  ;;  %v899_v58 = vmul.f32 %v3252_v26, %v3252_v26  ;;  %v995_v10 = vmul.f32 %v748_v34, %v748_v34  ;;  %v503_v34 = vpop.f32.mrf.mxu0 }
 0x15b   : > { %v2077_v63 = vadd.f32 %v2045_v51, %v1789_v50  ;;  %v2014_v0 = vsub.f32 %v1858_v20, %v1954_v55  ;;  %v2502_v2 = vpop.eup %2501  ;;  %vm1351_vm10 = vcmp.eq.f32.partialorder %v3248_v24, inf  ;;  %v1730_v22 = vadd.f32 %v1698_v5, %v3267_v57  ;;  %v1569_v20 = vld [vmem:[#allocation2 + $0x30] sm:$0xff] }
 0x15c   : > { %v1345_v38 = vsel %vm1344_vm6, %v3223_v42, %v1343_v60  ;;  %v1860_v12 = vmul.f32 0.6931472, %v2502_v2  ;;  %v3284_v23 = vadd.f32 %v931_v61, %v899_v58  ;;  %v3286_v42 = vadd.f32 %v1027_v1, %v995_v10 }
 0x15d   : > { %2109 = vst [vmem:[#allocation4 + $0xc0] sm:$0xff] %v2077_v63  ;;  %v2046_v8 = vand.u32 2147483647, %v2014_v0  ;;  %v1348_v9 = vsel %vm1346_vm7, %v1347_v52, %v1345_v38  ;;  %vm1353_vm11 = vcmp.eq.f32.partialorder %v3248_v24, 0.0  ;;  %v1354_v29 = vand.u32 2147483648, %v3248_v24  ;;  %1762 = vst [vmem:[#allocation3 + $0xa8] sm:$0xff] %v1730_v22  ;;  %v762_v63 = vpop.f32.mrf.mxu1 }
 0x15e   : > { %v1536_v13 = vsub.f32 %v1348_v9, %v1124_v39  ;;  %v1920_v14 = vadd.f32 1e-07, %v1348_v9  ;;  %v900_v30 = vmul.f32 %v497_v62, %v497_v62  ;;  %vm1134_vm12 = vcmp.eq.f32.partialorder %v3265_v56, inf }
 0x15f   : > { %v2078_v16 = vadd.f32 %v2046_v8, %v1790_v3  ;;  %vm1136_vm13 = vcmp.eq.f32.partialorder %v3265_v56, 0.0  ;;  %v1137_v39 = vand.u32 2147483648, %v3265_v56  ;;  %vm1358_vm14 = vcmp.eq.f32.partialorder %v3267_v57, inf }
 0x160   : > { %v1600_v26 = vmul.f32 %v1536_v13, %v1536_v13  ;;  %2515 = vlog2.f32 %v1920_v14  ;;  %v1731_v35 = vadd.f32 %v1699_v33, %v3286_v42  ;;  %v932_v48 = vmul.f32 %v499_v59, %v499_v59 }
 0x161   : > { %v2504_v18 = vpop.eup %2503  ;;  %2110 = vst [vmem:[#allocation4 + $0x10] sm:$0xff] %v2078_v16  ;;  %2517 = vrsqrt.f32 %v3284_v23  ;;  %vm1360_vm15 = vcmp.eq.f32.partialorder %v3267_v57, 0.0  ;;  %v1361_v52 = vand.u32 2147483648, %v3267_v57  ;;  %vm1141_vm0 = vcmp.eq.f32.partialorder %v3284_v23, inf }
 0x162   : > { %v2506_v25 = vpop.eup %2505  ;;  %v1956_v43 = vmul.f32 0.6931472, %v2504_v18  ;;  %v1632_v32 = vadd.f32 %v1600_v26, %v1568_v21  ;;  %2519 = vrsqrt.f32 %v3286_v42  ;;  %1763 = vst [vmem:[#allocation3 + $0xd0] sm:$0xff] %v1731_v35  ;;  %v3311_v53 = vadd.f32 %v932_v48, %v900_v30  ;;  %v766_v18 = vpop.f32.mrf.mxu1 }
 0x163   : > { %v2508_v27 = vpop.eup %2507  ;;  %v1126_v28 = vmul.f32 %v2506_v25, %v3246_v17  ;;  %v996_v55 = vmul.f32 %v754_v11, %v754_v11  ;;  %vm1143_vm1 = vcmp.eq.f32.partialorder %v3284_v23, 0.0  ;;  %v1144_v2 = vand.u32 2147483648, %v3284_v23 }
 0x164   : > { %v2015_v31 = vsub.f32 %v1860_v12, %v1956_v43  ;;  %v1350_v7 = vmul.f32 %v2508_v27, %v3248_v24  ;;  %1664 = vst [vmem:[#allocation2 + $0x68] sm:$0xff] %v1632_v32  ;;  %vm1365_vm2 = vcmp.eq.f32.partialorder %v3286_v42, inf  ;;  %vm1367_vm3 = vcmp.eq.f32.partialorder %v3286_v42, 0.0  ;;  %v1570_v43 = vld [vmem:[#allocation2 + $0x48] sm:$0xff] }
 0x165   : > { %v1128_v37 = vsel %vm1127_vm8, %v3246_v17, %v1126_v28  ;;  %v505_v17 = vpop.f32.mrf.mxu0  ;;  %v2510_v50 = vpop.eup %2509  ;;  %v901_v5 = vmul.f32 %v503_v34, %v503_v34  ;;  %v1029_v59 = vmul.f32 %v762_v63, %v762_v63  ;;  %v1368_v27 = vand.u32 2147483648, %v3286_v42 }
 0x166   : > { %v2047_v40 = vand.u32 2147483647, %v2015_v31  ;;  %v1131_v41 = vsel %vm1129_vm9, %v1130_v4, %v1128_v37  ;;  %v1352_v44 = vsel %vm1351_vm10, %v3248_v24, %v1350_v7  ;;  %v1028_v24 = vmul.f32 %v756_v6, %v756_v6  ;;  %v2512_v54 = vpop.eup %2511  ;;  %v1700_v4 = vld [vmem:[#allocation3 + $0xb0] sm:$0xff]  ;;  %v768_v34 = vpop.f32.mrf.mxu1 }
 0x167   : > { %v1825_v45 = vadd.f32 1e-07, %v1131_v41  ;;  %v1355_v47 = vsel %vm1353_vm11, %v1354_v29, %v1352_v44  ;;  %v2514_v60 = vpop.eup %2513  ;;  %v1133_v61 = vmul.f32 %v2512_v54, %v3265_v56  ;;  %v933_v62 = vmul.f32 %v505_v17, %v505_v17  ;;  %v509_v8 = vpop.f32.mrf.mxu0  ;;  %v1792_v31 = vld [vmem:[#allocation4 + $0x30] sm:$0xff]  ;;  %v1571_v54 = vld [vmem:[#allocation2 + $0x80] sm:$0xff] }
 0x168   : > { %v2079_v49 = vadd.f32 %v2047_v40, %v1791_v36  ;;  %v1537_v15 = vsub.f32 %v1355_v47, %v1131_v41  ;;  %v1921_v46 = vadd.f32 1e-07, %v1355_v47  ;;  %v1357_v1 = vmul.f32 %v2514_v60, %v3267_v57 }
 0x169   : > { %2521 = vlog2.f32 %v1825_v45  ;;  %v3319_v3 = vadd.f32 %v1028_v24, %v996_v55  ;;  %v1135_v38 = vsel %vm1134_vm12, %v3265_v56, %v1133_v61  ;;  %v1862_v9 = vmul.f32 0.6931472, %v2510_v50  ;;  %v511_v29 = vpop.f32.mrf.mxu0  ;;  %v1701_v45 = vld [vmem:[#allocation3 + $0x38] sm:$0xff] }
 0x16a   : > { %2111 = vst [vmem:[#allocation4 + $0x28] sm:$0xff] %v2079_v49  ;;  %v1601_v51 = vmul.f32 %v1537_v15, %v1537_v15  ;;  %2523 = vlog2.f32 %v1921_v46  ;;  %v1138_v58 = vsel %vm1136_vm13, %v1137_v39, %v1135_v38  ;;  %v1359_v10 = vsel %vm1358_vm14, %v3267_v57, %v1357_v1  ;;  %v1793_v38 = vld [vmem:[#allocation4 + $0xd0] sm:$0xff] }
 0x16b   : > { %2525 = vrsqrt.f32 %v3311_v53  ;;  %v1826_v12 = vadd.f32 1e-07, %v1138_v58  ;;  %v1362_v13 = vsel %vm1360_vm15, %v1361_v52, %v1359_v10  ;;  %v3334_v14 = vadd.f32 %v933_v62, %v901_v5  ;;  %v515_v47 = vpop.f32.mrf.mxu0 }
 0x16c   : > { %v1633_v0 = vadd.f32 %v1601_v51, %v1569_v20  ;;  %2527 = vrsqrt.f32 %v3319_v3  ;;  %v1538_v22 = vsub.f32 %v1362_v13, %v1138_v58  ;;  %v1922_v56 = vadd.f32 1e-07, %v1362_v13  ;;  %v772_v20 = vpop.f32.mrf.mxu1 }
 0x16d   : > { %v2516_v11 = vpop.eup %2515  ;;  %v1732_v25 = vadd.f32 %v1700_v4, %v3319_v3  ;;  %2529 = vlog2.f32 %v1826_v12  ;;  %v997_v28 = vmul.f32 %v760_v19, %v760_v19  ;;  %vm1148_vm4 = vcmp.eq.f32.partialorder %v3311_v53, inf  ;;  %v517_v62 = vpop.f32.mrf.mxu0 }
 0x16e   : > { %1665 = vst [vmem:[#allocation2 + $0x30] sm:$0xff] %v1633_v0  ;;  %v2518_v16 = vpop.eup %2517  ;;  %v1958_v21 = vmul.f32 0.6931472, %v2516_v11  ;;  %v1602_v6 = vmul.f32 %v1538_v22, %v1538_v22  ;;  %2531 = vlog2.f32 %v1922_v56  ;;  %vm1150_vm5 = vcmp.eq.f32.partialorder %v3311_v53, 0.0  ;;  %v1702_v22 = vld [vmem:[#allocation3 + $0x40] sm:$0xff] }
 0x16f   : > { %v1140_v26 = vmul.f32 %v2518_v16, %v3284_v23  ;;  %v2520_v57 = vpop.eup %2519  ;;  %1764 = vst [vmem:[#allocation3 + $0xb0] sm:$0xff] %v1732_v25  ;;  %2533 = vrsqrt.f32 %v3334_v14  ;;  %v3345_v33 = vadd.f32 %v1029_v59, %v997_v28  ;;  %v1151_v44 = vand.u32 2147483648, %v3311_v53 }
 0x170   : > { %v2016_v30 = vsub.f32 %v1862_v9, %v1958_v21  ;;  %v1364_v7 = vmul.f32 %v2520_v57, %v3286_v42  ;;  %v1634_v37 = vadd.f32 %v1602_v6, %v1570_v43  ;;  %v902_v19 = vmul.f32 %v509_v8, %v509_v8  ;;  %v774_v9 = vpop.f32.mrf.mxu1 }
 0x171   : > { %v1142_v32 = vsel %vm1141_vm0, %v3284_v23, %v1140_v26  ;;  %2535 = vrsqrt.f32 %v3345_v33  ;;  %v998_v49 = vmul.f32 %v766_v18, %v766_v18  ;;  %v1733_v51 = vadd.f32 %v1701_v45, %v3345_v33  ;;  %v3376_v18 = vpop.f32.mrf.mxu0 }
 0x172   : > { %v2048_v36 = vand.u32 2147483647, %v2016_v30  ;;  %v1145_v39 = vsel %vm1143_vm1, %v1144_v2, %v1142_v32  ;;  %v1366_v41 = vsel %vm1365_vm2, %v3286_v42, %v1364_v7  ;;  %1666 = vst [vmem:[#allocation2 + $0x48] sm:$0xff] %v1634_v37  ;;  %v934_v55 = vmul.f32 %v511_v29, %v511_v29  ;;  %v778_v28 = vpop.f32.mrf.mxu1  ;;  %v1572_v32 = vld [vmem:[#allocation2 + $0x88] sm:$0xff] }
 0x173   : > { %v1827_v40 = vadd.f32 1e-07, %v1145_v39  ;;  %v1369_v23 = vsel %vm1367_vm3, %v1368_v27, %v1366_v41  ;;  %v1030_v60 = vmul.f32 %v768_v34, %v768_v34  ;;  %vm1372_vm6 = vcmp.eq.f32.partialorder %v3319_v3, inf  ;;  %1765 = vst [vmem:[#allocation3 + $0x38] sm:$0xff] %v1733_v51  ;;  %v523_v37 = vpop.f32.mrf.mxu0 }
 0x174   : > { %v2080_v48 = vadd.f32 %v2048_v36, %v1792_v31  ;;  %v1539_v17 = vsub.f32 %v1369_v23, %v1145_v39  ;;  %v1923_v50 = vadd.f32 1e-07, %v1369_v23  ;;  %vm1374_vm7 = vcmp.eq.f32.partialorder %v3319_v3, 0.0 }
 0x175   : > { %2537 = vlog2.f32 %v1827_v40  ;;  %v3361_v0 = vadd.f32 %v934_v55, %v902_v19  ;;  %v3363_v1 = vadd.f32 %v1030_v60, %v998_v49  ;;  %v1375_v8 = vand.u32 2147483648, %v3319_v3 }
 0x176   : > { %v2522_v35 = vpop.eup %2521  ;;  %2112 = vst [vmem:[#allocation4 + $0x30] sm:$0xff] %v2080_v48  ;;  %v1603_v61 = vmul.f32 %v1539_v17, %v1539_v17  ;;  %2539 = vlog2.f32 %v1923_v50  ;;  %vm1155_vm8 = vcmp.eq.f32.partialorder %v3334_v14, inf  ;;  %vm1157_vm9 = vcmp.eq.f32.partialorder %v3334_v14, 0.0 }
 0x177   : > { %v2524_v15 = vpop.eup %2523  ;;  %v1864_v46 = vmul.f32 0.6931472, %v2522_v35  ;;  %2541 = vrsqrt.f32 %v3361_v0  ;;  %v1158_v13 = vand.u32 2147483648, %v3334_v14  ;;  %v935_v59 = vmul.f32 %v517_v62, %v517_v62  ;;  %v780_v35 = vpop.f32.mrf.mxu1 }
 0x178   : > { %v2526_v52 = vpop.eup %2525  ;;  %v1960_v24 = vmul.f32 0.6931472, %v2524_v15  ;;  %v1635_v4 = vadd.f32 %v1603_v61, %v1571_v54  ;;  %2543 = vrsqrt.f32 %v3363_v1  ;;  %v1031_v56 = vmul.f32 %v774_v9, %v774_v9  ;;  %v1795_v9 = vld [vmem:[#allocation4 + $0x58] sm:$0xff] }
 0x179   : > { %v1147_v42 = vmul.f32 %v2526_v52, %v3311_v53  ;;  %v2528_v2 = vpop.eup %2527  ;;  %v903_v27 = vmul.f32 %v515_v47, %v515_v47  ;;  %v999_v31 = vmul.f32 %v772_v20, %v772_v20  ;;  %vm1379_vm10 = vcmp.eq.f32.partialorder %v3345_v33, inf  ;;  %v1703_v20 = vld [vmem:[#allocation3 + $0xe0] sm:$0xff]  ;;  %v527_v52 = vpop.f32.mrf.mxu0 }
 0x17a   : > { %v2017_v63 = vsub.f32 %v1864_v46, %v1960_v24  ;;  %v1371_v11 = vmul.f32 %v2528_v2, %v3319_v3  ;;  %1667 = vst [vmem:[#allocation2 + $0x80] sm:$0xff] %v1635_v4  ;;  %v2530_v16 = vpop.eup %2529  ;;  %v1734_v34 = vadd.f32 %v1702_v22, %v3363_v1  ;;  %vm1381_vm11 = vcmp.eq.f32.partialorder %v3345_v33, 0.0  ;;  %v784_v61 = vpop.f32.mrf.mxu1 }
 0x17b   : > { %v1149_v5 = vsel %vm1148_vm4, %v3311_v53, %v1147_v42  ;;  %v2532_v25 = vpop.eup %2531  ;;  %v1866_v43 = vmul.f32 0.6931472, %v2530_v16  ;;  %v3387_v36 = vadd.f32 %v935_v59, %v903_v27  ;;  %v3389_v41 = vadd.f32 %v1031_v56, %v999_v31  ;;  %v1573_v42 = vld [vmem:[#allocation2 + $0xe8] sm:$0xff] }
 0x17c   : > { %v2049_v58 = vand.u32 2147483647, %v2017_v63  ;;  %v1152_v10 = vsel %vm1150_vm5, %v1151_v44, %v1149_v5  ;;  %v1373_v53 = vsel %vm1372_vm6, %v3319_v3, %v1371_v11  ;;  %v2534_v29 = vpop.eup %2533  ;;  %v1962_v57 = vmul.f32 0.6931472, %v2532_v25  ;;  %v1794_v44 = vld [vmem:[#allocation4 + $0x68] sm:$0xff]  ;;  %1766 = vst [vmem:[#allocation3 + $0x40] sm:$0xff] %v1734_v34 }
 0x17d   : > { %v1828_v12 = vadd.f32 1e-07, %v1152_v10  ;;  %v1376_v26 = vsel %vm1374_vm7, %v1375_v8, %v1373_v53  ;;  %v1154_v7 = vmul.f32 %v2534_v29, %v3334_v14  ;;  %v1382_v15 = vand.u32 2147483648, %v3345_v33  ;;  %v529_v8 = vpop.f32.mrf.mxu0 }
 0x17e   : > { %v2081_v21 = vadd.f32 %v2049_v58, %v1793_v38  ;;  %v1540_v30 = vsub.f32 %v1376_v26, %v1152_v10  ;;  %v1924_v6 = vadd.f32 1e-07, %v1376_v26  ;;  %v2536_v3 = vpop.eup %2535  ;;  %v2018_v39 = vsub.f32 %v1866_v43, %v1962_v57 }
 0x17f   : > { %2545 = vlog2.f32 %v1828_v12  ;;  %v1156_v45 = vsel %vm1155_vm8, %v3334_v14, %v1154_v7  ;;  %v1378_v47 = vmul.f32 %v2536_v3, %v3345_v33  ;;  %vm1162_vm12 = vcmp.eq.f32.partialorder %v3361_v0, inf  ;;  %v3429_v27 = vpop.f32.mrf.mxu0 }
 0x180   : > { %2113 = vst [vmem:[#allocation4 + $0xd0] sm:$0xff] %v2081_v21  ;;  %v1604_v40 = vmul.f32 %v1540_v30, %v1540_v30  ;;  %2547 = vlog2.f32 %v1924_v6  ;;  %v2050_v23 = vand.u32 2147483647, %v2018_v39  ;;  %v1159_v49 = vsel %vm1157_vm9, %v1158_v13, %v1156_v45  ;;  %v786_v21 = vpop.f32.mrf.mxu1  ;;  %v1704_v30 = vld [vmem:[#allocation3 + $0x60] sm:$0xff] }
 0x181   : > { %2549 = vrsqrt.f32 %v3387_v36  ;;  %v1829_v17 = vadd.f32 1e-07, %v1159_v49  ;;  %v1380_v50 = vsel %vm1379_vm10, %v3345_v33, %v1378_v47  ;;  %vm1164_vm13 = vcmp.eq.f32.partialorder %v3361_v0, 0.0 }
 0x182   : > { %v2538_v48 = vpop.eup %2537  ;;  %v1636_v19 = vadd.f32 %v1604_v40, %v1572_v32  ;;  %v2082_v54 = vadd.f32 %v2050_v23, %v1794_v44  ;;  %v1383_v51 = vsel %vm1381_vm11, %v1382_v15, %v1380_v50  ;;  %2551 = vrsqrt.f32 %v3389_v41  ;;  %v790_v34 = vpop.f32.mrf.mxu1  ;;  %v1574_v44 = vld [vmem:[#allocation2 + $0xb8] sm:$0xff] }
 0x183   : > { %v1868_v46 = vmul.f32 0.6931472, %v2538_v48  ;;  %v2540_v24 = vpop.eup %2539  ;;  %2553 = vlog2.f32 %v1829_v17  ;;  %v1541_v55 = vsub.f32 %v1383_v51, %v1159_v49  ;;  %v1925_v60 = vadd.f32 1e-07, %v1383_v51 }
 0x184   : > { %1668 = vst [vmem:[#allocation2 + $0x88] sm:$0xff] %v1636_v19  ;;  %v1964_v14 = vmul.f32 0.6931472, %v2540_v24  ;;  %2114 = vst [vmem:[#allocation4 + $0x68] sm:$0xff] %v2082_v54  ;;  %v1165_v62 = vand.u32 2147483648, %v3361_v0  ;;  %vm1386_vm14 = vcmp.eq.f32.partialorder %v3363_v1, inf  ;;  %v1735_v63 = vadd.f32 %v1703_v20, %v3389_v41  ;;  %v2542_v2 = vpop.eup %2541  ;;  %v792_v20 = vpop.f32.mrf.mxu1 }
 0x185   : > { %v904_v33 = vmul.f32 %v3376_v18, %v3376_v18  ;;  %v1605_v4 = vmul.f32 %v1541_v55, %v1541_v55  ;;  %2555 = vlog2.f32 %v1925_v60  ;;  %v936_v5 = vmul.f32 %v523_v37, %v523_v37  ;;  %v2544_v12 = vpop.eup %2543 }
 0x186   : > { %v2019_v38 = vsub.f32 %v1868_v46, %v1964_v14  ;;  %v1161_v58 = vmul.f32 %v2542_v2, %v3361_v0  ;;  %vm1388_vm15 = vcmp.eq.f32.partialorder %v3363_v1, 0.0  ;;  %1767 = vst [vmem:[#allocation3 + $0xe0] sm:$0xff] %v1735_v63  ;;  %v1000_v10 = vmul.f32 %v778_v28, %v778_v28  ;;  %v1796_v46 = vld [vmem:[#allocation4] sm:$0xff] }
 0x187   : > { %v1032_v11 = vmul.f32 %v780_v35, %v780_v35  ;;  %v1637_v59 = vadd.f32 %v1605_v4, %v1573_v42  ;;  %v1389_v16 = vand.u32 2147483648, %v3363_v1  ;;  %v3416_v18 = vadd.f32 %v936_v5, %v904_v33  ;;  %v796_v5 = vpop.f32.mrf.mxu1 }
 0x188   : > { %v2051_v13 = vand.u32 2147483647, %v2019_v38  ;;  %v1163_v22 = vsel %vm1162_vm12, %v3361_v0, %v1161_v58  ;;  %v1385_v56 = vmul.f32 %v2544_v12, %v3363_v1  ;;  %vm1169_vm0 = vcmp.eq.f32.partialorder %v3387_v36, inf }
 0x189   : > { %v3423_v25 = vadd.f32 %v1032_v11, %v1000_v10  ;;  %1669 = vst [vmem:[#allocation2 + $0xe8] sm:$0xff] %v1637_v59  ;;  %v1166_v26 = vsel %vm1164_vm13, %v1165_v62, %v1163_v22  ;;  %vm1171_vm1 = vcmp.eq.f32.partialorder %v3387_v36, 0.0  ;;  %2557 = vrsqrt.f32 %v3416_v18  ;;  %v1575_v10 = vld [vmem:[#allocation2 + $0x60] sm:$0xff] }
 0x18a   : > { %v2083_v43 = vadd.f32 %v2051_v13, %v1795_v9  ;;  %v1830_v29 = vadd.f32 1e-07, %v1166_v26  ;;  %v1387_v57 = vsel %vm1386_vm14, %v3363_v1, %v1385_v56  ;;  %v937_v6 = vmul.f32 %v529_v8, %v529_v8  ;;  %v535_v1 = vpop.f32.mrf.mxu0 }
 0x18b   : > { %v1390_v0 = vsel %vm1388_vm15, %v1389_v16, %v1387_v57  ;;  %2559 = vrsqrt.f32 %v3423_v25  ;;  %v905_v32 = vmul.f32 %v527_v52, %v527_v52  ;;  %v1033_v7 = vmul.f32 %v786_v21, %v786_v21  ;;  %v1797_v16 = vld [vmem:[#allocation4 + $0x48] sm:$0xff] }
 0x18c   : > { %v2546_v53 = vpop.eup %2545  ;;  %2115 = vst [vmem:[#allocation4 + $0x58] sm:$0xff] %v2083_v43  ;;  %2561 = vlog2.f32 %v1830_v29  ;;  %v1542_v39 = vsub.f32 %v1390_v0, %v1166_v26  ;;  %v1926_v40 = vadd.f32 1e-07, %v1390_v0  ;;  %v1172_v47 = vand.u32 2147483648, %v3387_v36  ;;  %v3454_v42 = vpop.f32.mrf.mxu0 }
 0x18d   : > { %v1870_v28 = vmul.f32 0.6931472, %v2546_v53  ;;  %v2548_v31 = vpop.eup %2547  ;;  %v1736_v35 = vadd.f32 %v1704_v30, %v3423_v25  ;;  %v1001_v48 = vmul.f32 %v784_v61, %v784_v61  ;;  %v3440_v49 = vadd.f32 %v937_v6, %v905_v32 }
 0x18e   : > { %v2550_v37 = vpop.eup %2549  ;;  %v1966_v3 = vmul.f32 0.6931472, %v2548_v31  ;;  %v1606_v19 = vmul.f32 %v1542_v39, %v1542_v39  ;;  %2563 = vlog2.f32 %v1926_v40  ;;  %vm1393_vm2 = vcmp.eq.f32.partialorder %v3389_v41, inf }
 0x18f   : > { %v1168_v45 = vmul.f32 %v2550_v37, %v3387_v36  ;;  %v2552_v15 = vpop.eup %2551  ;;  %vm1395_vm3 = vcmp.eq.f32.partialorder %v3389_v41, 0.0  ;;  %1768 = vst [vmem:[#allocation3 + $0x60] sm:$0xff] %v1736_v35  ;;  %v3447_v50 = vadd.f32 %v1033_v7, %v1001_v48  ;;  %v1396_v61 = vand.u32 2147483648, %v3389_v41  ;;  %v1706_v35 = vld [vmem:[#allocation3 + $0x68] sm:$0xff] }
 0x190   : > { %v2020_v23 = vsub.f32 %v1870_v28, %v1966_v3  ;;  %v2554_v52 = vpop.eup %2553  ;;  %v1638_v54 = vadd.f32 %v1606_v19, %v1574_v44  ;;  %v1392_v14 = vmul.f32 %v2552_v15, %v3389_v41  ;;  %2565 = vrsqrt.f32 %v3440_v49  ;;  %v798_v28 = vpop.f32.mrf.mxu1 }
 0x191   : > { %v1170_v17 = vsel %vm1169_vm0, %v3387_v36, %v1168_v45  ;;  %v1872_v55 = vmul.f32 0.6931472, %v2554_v52  ;;  %vm1176_vm4 = vcmp.eq.f32.partialorder %v3416_v18, inf  ;;  %vm1178_vm5 = vcmp.eq.f32.partialorder %v3416_v18, 0.0  ;;  %v1705_v36 = vld [vmem:[#allocation3 + $0x18] sm:$0xff]  ;;  %v1576_v52 = vld [vmem:[#allocation2 + $0xf0] sm:$0xff] }
 0x192   : > { %v2052_v24 = vand.u32 2147483647, %v2020_v23  ;;  %v1173_v51 = vsel %vm1171_vm1, %v1172_v47, %v1170_v17  ;;  %v2556_v62 = vpop.eup %2555  ;;  %1670 = vst [vmem:[#allocation2 + $0xb8] sm:$0xff] %v1638_v54  ;;  %v1394_v33 = vsel %vm1393_vm2, %v3389_v41, %v1392_v14  ;;  %v1179_v4 = vand.u32 2147483648, %v3416_v18  ;;  %v541_v41 = vpop.f32.mrf.mxu0  ;;  %v1798_v14 = vld [vmem:[#allocation4 + $0x40] sm:$0xff] }
 0x193   : > { %v1831_v60 = vadd.f32 1e-07, %v1173_v51  ;;  %v1968_v2 = vmul.f32 0.6931472, %v2556_v62  ;;  %v1397_v38 = vsel %vm1395_vm3, %v1396_v61, %v1394_v33  ;;  %vm1400_vm6 = vcmp.eq.f32.partialorder %v3423_v25, inf }
 0x194   : > { %v2084_v63 = vadd.f32 %v2052_v24, %v1796_v46  ;;  %v1543_v8 = vsub.f32 %v1397_v38, %v1173_v51  ;;  %v1927_v9 = vadd.f32 1e-07, %v1397_v38  ;;  %v1737_v11 = vadd.f32 %v1705_v36, %v3447_v50  ;;  %v545_v7 = vpop.f32.mrf.mxu0  ;;  %v1707_v38 = vld [vmem:[#allocation3 + $0x10] sm:$0xff] }
 0x195   : > { %2567 = vlog2.f32 %v1831_v60  ;;  %v2021_v58 = vsub.f32 %v1872_v55, %v1968_v2  ;;  %v906_v12 = vmul.f32 %v3429_v27, %v3429_v27  ;;  %v938_v13 = vmul.f32 %v535_v1, %v535_v1 }
 0x196   : > { %2116 = vst [vmem:[#allocation4] sm:$0xff] %v2084_v63  ;;  %2569 = vrsqrt.f32 %v3447_v50  ;;  %v2558_v59 = vpop.eup %2557  ;;  %v1607_v21 = vmul.f32 %v1543_v8, %v1543_v8  ;;  %v1002_v53 = vmul.f32 %v790_v34, %v790_v34  ;;  %v1034_v22 = vmul.f32 %v792_v20, %v792_v20  ;;  %1769 = vst [vmem:[#allocation3 + $0x18] sm:$0xff] %v1737_v11  ;;  %v547_v46 = vpop.f32.mrf.mxu0 }
 0x197   : > { %2571 = vlog2.f32 %v1927_v9  ;;  %v2053_v56 = vand.u32 2147483647, %v2021_v58  ;;  %v1175_v43 = vmul.f32 %v2558_v59, %v3416_v18  ;;  %vm1402_vm7 = vcmp.eq.f32.partialorder %v3423_v25, 0.0 }
 0x198   : > { %v3471_v26 = vadd.f32 %v938_v13, %v906_v12  ;;  %v2560_v29 = vpop.eup %2559  ;;  %v1639_v57 = vadd.f32 %v1607_v21, %v1575_v10  ;;  %v1403_v27 = vand.u32 2147483648, %v3423_v25  ;;  %vm1183_vm8 = vcmp.eq.f32.partialorder %v3440_v49, inf }
 0x199   : > { %v3475_v30 = vadd.f32 %v1034_v22, %v1002_v53  ;;  %v2562_v6 = vpop.eup %2561  ;;  %v2085_v31 = vadd.f32 %v2053_v56, %v1797_v16  ;;  %v1177_v0 = vsel %vm1176_vm4, %v3416_v18, %v1175_v43  ;;  %v1399_v32 = vmul.f32 %v2560_v29, %v3423_v25 }
 0x19a   : > { %vm1185_vm9 = vcmp.eq.f32.partialorder %v3440_v49, 0.0  ;;  %2573 = vrsqrt.f32 %v3471_v26  ;;  %v1874_v34 = vmul.f32 0.6931472, %v2562_v6  ;;  %1671 = vst [vmem:[#allocation2 + $0x60] sm:$0xff] %v1639_v57  ;;  %v1180_v37 = vsel %vm1178_vm5, %v1179_v4, %v1177_v0  ;;  %v551_v4 = vpop.f32.mrf.mxu0  ;;  %v1799_v6 = vld [vmem:[#allocation4 + $0x78] sm:$0xff] }
 0x19b   : > { %v939_v3 = vmul.f32 %v541_v41, %v541_v41  ;;  %v1035_v39 = vmul.f32 %v798_v28, %v798_v28  ;;  %v2564_v40 = vpop.eup %2563  ;;  %2117 = vst [vmem:[#allocation4 + $0x48] sm:$0xff] %v2085_v31  ;;  %v1832_v44 = vadd.f32 1e-07, %v1180_v37  ;;  %v1401_v45 = vsel %vm1400_vm6, %v3423_v25, %v1399_v32  ;;  %v802_v25 = vpop.f32.mrf.mxu1  ;;  %v1577_v31 = vld [vmem:[#allocation2 + $0x8] sm:$0xff] }
 0x19c   : > { %v1186_v47 = vand.u32 2147483648, %v3440_v49  ;;  %2575 = vrsqrt.f32 %v3475_v30  ;;  %v1970_v48 = vmul.f32 0.6931472, %v2564_v40  ;;  %v1404_v1 = vsel %vm1402_vm7, %v1403_v27, %v1401_v45  ;;  %v553_v22 = vpop.f32.mrf.mxu0 }
 0x19d   : > { %v907_v18 = vmul.f32 %v3454_v42, %v3454_v42  ;;  %v1003_v23 = vmul.f32 %v796_v5, %v796_v5  ;;  %2577 = vlog2.f32 %v1832_v44  ;;  %v1544_v19 = vsub.f32 %v1404_v1, %v1180_v37  ;;  %v2566_v17 = vpop.eup %2565  ;;  %v804_v58 = vpop.f32.mrf.mxu1 }
 0x19e   : > { %v1928_v15 = vadd.f32 1e-07, %v1404_v1  ;;  %vm1407_vm10 = vcmp.eq.f32.partialorder %v3447_v50, inf  ;;  %v2022_v20 = vsub.f32 %v1874_v34, %v1970_v48  ;;  %v1738_v24 = vadd.f32 %v1706_v35, %v3475_v30  ;;  %v3535_v44 = vpop.f32.mrf.mxu0 }
 0x19f   : > { %v3496_v54 = vadd.f32 %v939_v3, %v907_v18  ;;  %v3498_v51 = vadd.f32 %v1035_v39, %v1003_v23  ;;  %v1608_v55 = vmul.f32 %v1544_v19, %v1544_v19  ;;  %v1182_v60 = vmul.f32 %v2566_v17, %v3440_v49  ;;  %v808_v27 = vpop.f32.mrf.mxu1  ;;  %v1708_v17 = vld [vmem:[#allocation3 + $0x70] sm:$0xff] }
 0x1a0   : > { %2579 = vlog2.f32 %v1928_v15  ;;  %vm1409_vm11 = vcmp.eq.f32.partialorder %v3447_v50, 0.0  ;;  %v2054_v42 = vand.u32 2147483647, %v2022_v20  ;;  %v1410_v62 = vand.u32 2147483648, %v3447_v50  ;;  %1770 = vst [vmem:[#allocation3 + $0x68] sm:$0xff] %v1738_v24 }
 0x1a1   : > { %vm1190_vm12 = vcmp.eq.f32.partialorder %v3471_v26, inf  ;;  %2581 = vrsqrt.f32 %v3496_v54  ;;  %v1640_v36 = vadd.f32 %v1608_v55, %v1576_v52  ;;  %v1184_v2 = vsel %vm1183_vm8, %v3440_v49, %v1182_v60  ;;  %v810_v18 = vpop.f32.mrf.mxu1  ;;  %v559_v60 = vpop.f32.mrf.mxu0 }
 0x1a2   : > { %v2568_v61 = vpop.eup %2567  ;;  %vm1192_vm13 = vcmp.eq.f32.partialorder %v3471_v26, 0.0  ;;  %v2086_v5 = vadd.f32 %v2054_v42, %v1798_v14  ;;  %v1187_v8 = vsel %vm1185_vm9, %v1186_v47, %v1184_v2  ;;  %2583 = vrsqrt.f32 %v3498_v51 }
 0x1a3   : > { %v2570_v63 = vpop.eup %2569  ;;  %v1876_v33 = vmul.f32 0.6931472, %v2568_v61  ;;  %1672 = vst [vmem:[#allocation2 + $0xf0] sm:$0xff] %v1640_v36  ;;  %v1833_v11 = vadd.f32 1e-07, %v1187_v8  ;;  %v1193_v12 = vand.u32 2147483648, %v3471_v26  ;;  %v1739_v41 = vadd.f32 %v1707_v38, %v3498_v51 }
 0x1a4   : > { %v1406_v9 = vmul.f32 %v2570_v63, %v3447_v50  ;;  %v2572_v10 = vpop.eup %2571  ;;  %vm1414_vm14 = vcmp.eq.f32.partialorder %v3475_v30, inf  ;;  %vm1416_vm15 = vcmp.eq.f32.partialorder %v3475_v30, 0.0  ;;  %2118 = vst [vmem:[#allocation4 + $0x40] sm:$0xff] %v2086_v5  ;;  %v908_v59 = vmul.f32 %v545_v7, %v545_v7  ;;  %v1578_v61 = vld [vmem:[#allocation2 + $0x78] sm:$0xff]  ;;  %v814_v63 = vpop.f32.mrf.mxu1 }
 0x1a5   : > { %v1972_v13 = vmul.f32 0.6931472, %v2572_v10  ;;  %2585 = vlog2.f32 %v1833_v11  ;;  %v940_v21 = vmul.f32 %v547_v46, %v547_v46  ;;  %v1036_v53 = vmul.f32 %v804_v58, %v804_v58  ;;  %1771 = vst [vmem:[#allocation3 + $0x10] sm:$0xff] %v1739_v41 }
 0x1a6   : > { %v1408_v49 = vsel %vm1407_vm10, %v3447_v50, %v1406_v9  ;;  %v1004_v57 = vmul.f32 %v802_v25, %v802_v25  ;;  %v1417_v32 = vand.u32 2147483648, %v3475_v30  ;;  %vm1197_vm0 = vcmp.eq.f32.partialorder %v3496_v54, inf }
 0x1a7   : > { %v1411_v16 = vsel %vm1409_vm11, %v1410_v62, %v1408_v49  ;;  %v2574_v56 = vpop.eup %2573  ;;  %v2023_v43 = vsub.f32 %v1876_v33, %v1972_v13  ;;  %v3525_v50 = vadd.f32 %v940_v21, %v908_v59  ;;  %vm1199_vm1 = vcmp.eq.f32.partialorder %v3496_v54, 0.0  ;;  %v563_v13 = vpop.f32.mrf.mxu0  ;;  %v1709_v21 = vld [vmem:[#allocation3 + $0x50] sm:$0xff] }
 0x1a8   : > { %v1545_v28 = vsub.f32 %v1411_v16, %v1187_v8  ;;  %v1929_v29 = vadd.f32 1e-07, %v1411_v16  ;;  %v1189_v0 = vmul.f32 %v2574_v56, %v3471_v26  ;;  %v3527_v3 = vadd.f32 %v1036_v53, %v1004_v57  ;;  %v816_v53 = vpop.f32.mrf.mxu1 }
 0x1a9   : > { %v2576_v7 = vpop.eup %2575  ;;  %v2055_v34 = vand.u32 2147483647, %v2023_v43  ;;  %v941_v1 = vmul.f32 %v553_v22, %v553_v22  ;;  %v1200_v46 = vand.u32 2147483648, %v3496_v54  ;;  %vm1421_vm2 = vcmp.eq.f32.partialorder %v3498_v51, inf }
 0x1aa   : > { %v1609_v37 = vmul.f32 %v1545_v28, %v1545_v28  ;;  %2587 = vlog2.f32 %v1929_v29  ;;  %v1191_v39 = vsel %vm1190_vm12, %v3471_v26, %v1189_v0  ;;  %v1413_v40 = vmul.f32 %v2576_v7, %v3475_v30  ;;  %v2578_v45 = vpop.eup %2577 }
 0x1ab   : > { %2589 = vrsqrt.f32 %v3525_v50  ;;  %v2087_v47 = vadd.f32 %v2055_v34, %v1799_v6  ;;  %v1194_v48 = vsel %vm1192_vm13, %v1193_v12, %v1191_v39  ;;  %v1878_v23 = vmul.f32 0.6931472, %v2578_v45  ;;  %v565_v6 = vpop.f32.mrf.mxu0  ;;  %v820_v34 = vpop.f32.mrf.mxu1 }
 0x1ac   : > { %v1641_v35 = vadd.f32 %v1609_v37, %v1577_v31  ;;  %v1834_v19 = vadd.f32 1e-07, %v1194_v48  ;;  %v1415_v15 = vsel %vm1414_vm14, %v3475_v30, %v1413_v40  ;;  %2591 = vrsqrt.f32 %v3527_v3 }
 0x1ad   : > { %v2580_v20 = vpop.eup %2579  ;;  %2119 = vst [vmem:[#allocation4 + $0x78] sm:$0xff] %v2087_v47  ;;  %v1418_v52 = vsel %vm1416_vm15, %v1417_v32, %v1415_v15  ;;  %v909_v26 = vmul.f32 %v551_v4, %v551_v4  ;;  %vm1423_vm3 = vcmp.eq.f32.partialorder %v3498_v51, 0.0  ;;  %v1740_v62 = vadd.f32 %v1708_v17, %v3527_v3  ;;  %v1800_v4 = vld [vmem:[#allocation4 + $0xd8] sm:$0xff] }
 0x1ae   : > { %1673 = vst [vmem:[#allocation2 + $0x8] sm:$0xff] %v1641_v35  ;;  %v2582_v24 = vpop.eup %2581  ;;  %v1974_v25 = vmul.f32 0.6931472, %v2580_v20  ;;  %2593 = vlog2.f32 %v1834_v19  ;;  %v1546_v14 = vsub.f32 %v1418_v52, %v1194_v48  ;;  %v1930_v55 = vadd.f32 1e-07, %v1418_v52 }
 0x1af   : > { %v1196_v42 = vmul.f32 %v2582_v24, %v3496_v54  ;;  %v3550_v30 = vadd.f32 %v941_v1, %v909_v26  ;;  %v2584_v33 = vpop.eup %2583  ;;  %v1037_v38 = vmul.f32 %v810_v18, %v810_v18  ;;  %1772 = vst [vmem:[#allocation3 + $0x70] sm:$0xff] %v1740_v62  ;;  %v1005_v9 = vmul.f32 %v808_v27, %v808_v27  ;;  %v1579_v27 = vld [vmem:[#allocation2 + $0x38] sm:$0xff]  ;;  %v1801_v18 = vld [vmem:[#allocation4 + $0xe0] sm:$0xff]  ;;  %v822_v24 = vpop.f32.mrf.mxu1 }
 0x1b0   : > { %v2024_v36 = vsub.f32 %v1878_v23, %v1974_v25  ;;  %v1610_v2 = vmul.f32 %v1546_v14, %v1546_v14  ;;  %2595 = vlog2.f32 %v1930_v55  ;;  %v1420_v8 = vmul.f32 %v2584_v33, %v3498_v51 }
 0x1b1   : > { %v1198_v5 = vsel %vm1197_vm0, %v3496_v54, %v1196_v42  ;;  %2597 = vrsqrt.f32 %v3550_v30  ;;  %v1424_v12 = vand.u32 2147483648, %v3498_v51  ;;  %vm1204_vm4 = vcmp.eq.f32.partialorder %v3525_v50, inf }
 0x1b2   : > { %v2056_v58 = vand.u32 2147483647, %v2024_v36  ;;  %v1642_v10 = vadd.f32 %v1610_v2, %v1578_v61  ;;  %v1201_v11 = vsel %vm1199_vm1, %v1200_v46, %v1198_v5  ;;  %v2586_v49 = vpop.eup %2585  ;;  %v1422_v59 = vsel %vm1421_vm2, %v3498_v51, %v1420_v8  ;;  %v3585_v46 = vpop.f32.mrf.mxu0 }
 0x1b3   : > { %v1835_v41 = vadd.f32 1e-07, %v1201_v11  ;;  %v3564_v16 = vadd.f32 %v1037_v38, %v1005_v9  ;;  %v1425_v54 = vsel %vm1423_vm3, %v1424_v12, %v1422_v59  ;;  %vm1206_vm5 = vcmp.eq.f32.partialorder %v3525_v50, 0.0  ;;  %v826_v9 = vpop.f32.mrf.mxu1 }
 0x1b4   : > { %v2088_v22 = vadd.f32 %v2056_v58, %v1800_v4  ;;  %1674 = vst [vmem:[#allocation2 + $0x78] sm:$0xff] %v1642_v10  ;;  %v1207_v56 = vand.u32 2147483648, %v3525_v50  ;;  %v1880_v43 = vmul.f32 0.6931472, %v2586_v49  ;;  %v1547_v28 = vsub.f32 %v1425_v54, %v1201_v11  ;;  %v571_v38 = vpop.f32.mrf.mxu0  ;;  %v1580_v10 = vld [vmem:[#allocation2 + $0x58] sm:$0xff] }
 0x1b5   : > { %2599 = vlog2.f32 %v1835_v41  ;;  %v1931_v29 = vadd.f32 1e-07, %v1425_v54  ;;  %vm1428_vm6 = vcmp.eq.f32.partialorder %v3527_v3, inf  ;;  %vm1430_vm7 = vcmp.eq.f32.partialorder %v3527_v3, 0.0 }
 0x1b6   : > { %2120 = vst [vmem:[#allocation4 + $0xd8] sm:$0xff] %v2088_v22  ;;  %2601 = vrsqrt.f32 %v3564_v16  ;;  %v1741_v51 = vadd.f32 %v1709_v21, %v3564_v16  ;;  %v1611_v32 = vmul.f32 %v1547_v28, %v1547_v28  ;;  %v1431_v7 = vand.u32 2147483648, %v3527_v3  ;;  %v575_v54 = vpop.f32.mrf.mxu0 }
 0x1b7   : > { %v2588_v57 = vpop.eup %2587  ;;  %2603 = vlog2.f32 %v1931_v29  ;;  %v910_v39 = vmul.f32 %v3535_v44, %v3535_v44  ;;  %v942_v40 = vmul.f32 %v559_v60, %v559_v60  ;;  %v1038_v45 = vmul.f32 %v816_v53, %v816_v53 }
 0x1b8   : > { %v2590_v31 = vpop.eup %2589  ;;  %v1976_v0 = vmul.f32 0.6931472, %v2588_v57  ;;  %1773 = vst [vmem:[#allocation3 + $0x50] sm:$0xff] %v1741_v51  ;;  %v1643_v35 = vadd.f32 %v1611_v32, %v1579_v27  ;;  %vm1211_vm8 = vcmp.eq.f32.partialorder %v3550_v30, inf  ;;  %v1006_v48 = vmul.f32 %v814_v63, %v814_v63  ;;  %v828_v57 = vpop.f32.mrf.mxu1 }
 0x1b9   : > { %v1203_v37 = vmul.f32 %v2590_v31, %v3525_v50  ;;  %v2592_v1 = vpop.eup %2591  ;;  %vm1213_vm9 = vcmp.eq.f32.partialorder %v3550_v30, 0.0  ;;  %v3583_v19 = vadd.f32 %v942_v40, %v910_v39  ;;  %v943_v15 = vmul.f32 %v565_v6, %v565_v6  ;;  %v1711_v31 = vld [vmem:[#allocation3 + $0xd8] sm:$0xff]  ;;  %v577_v39 = vpop.f32.mrf.mxu0 }
 0x1ba   : > { %v2025_v47 = vsub.f32 %v1880_v43, %v1976_v0  ;;  %1675 = vst [vmem:[#allocation2 + $0x38] sm:$0xff] %v1643_v35  ;;  %v1427_v52 = vmul.f32 %v2592_v1, %v3527_v3  ;;  %v3590_v26 = vadd.f32 %v1038_v45, %v1006_v48  ;;  %v911_v55 = vmul.f32 %v563_v13, %v563_v13  ;;  %v832_v35 = vpop.f32.mrf.mxu1  ;;  %v1803_v48 = vld [vmem:[#allocation4 + $0xa0] sm:$0xff] }
 0x1bb   : > { %v1205_v23 = vsel %vm1204_vm4, %v3525_v50, %v1203_v37  ;;  %v2594_v44 = vpop.eup %2593  ;;  %2605 = vrsqrt.f32 %v3583_v19  ;;  %v1214_v62 = vand.u32 2147483648, %v3550_v30  ;;  %vm1435_vm10 = vcmp.eq.f32.partialorder %v3564_v16, inf  ;;  %v1710_v50 = vld [vmem:[#allocation3 + $0xa0] sm:$0xff] }
 0x1bc   : > { %v2057_v17 = vand.u32 2147483647, %v2025_v47  ;;  %v1208_v20 = vsel %vm1206_vm5, %v1207_v56, %v1205_v23  ;;  %v1882_v25 = vmul.f32 0.6931472, %v2594_v44  ;;  %v1429_v42 = vsel %vm1428_vm6, %v3527_v3, %v1427_v52  ;;  %v1802_v3 = vld [vmem:[#allocation4 + $0x80] sm:$0xff] }
 0x1bd   : > { %v1836_v14 = vadd.f32 1e-07, %v1208_v20  ;;  %v2596_v60 = vpop.eup %2595  ;;  %v1432_v36 = vsel %vm1430_vm7, %v1431_v7, %v1429_v42  ;;  %v3600_v2 = vadd.f32 %v943_v15, %v911_v55  ;;  %vm1437_vm11 = vcmp.eq.f32.partialorder %v3564_v16, 0.0 }
 0x1be   : > { %v2089_v61 = vadd.f32 %v2057_v17, %v1801_v18  ;;  %v2598_v63 = vpop.eup %2597  ;;  %v1978_v33 = vmul.f32 0.6931472, %v2596_v60  ;;  %v1548_v4 = vsub.f32 %v1432_v36, %v1208_v20  ;;  %v1932_v5 = vadd.f32 1e-07, %v1432_v36  ;;  %v1581_v20 = vld [vmem:[#allocation2 + $0x40] sm:$0xff]  ;;  %v1712_v36 = vld [vmem:[#allocation3 + $0x30] sm:$0xff] }
 0x1bf   : > { %2607 = vlog2.f32 %v1836_v14  ;;  %v1210_v8 = vmul.f32 %v2598_v63, %v3550_v30  ;;  %v1742_v11 = vadd.f32 %v1710_v50, %v3590_v26  ;;  %v1039_v12 = vmul.f32 %v822_v24, %v822_v24 }
 0x1c0   : > { %2121 = vst [vmem:[#allocation4 + $0xe0] sm:$0xff] %v2089_v61  ;;  %2609 = vrsqrt.f32 %v3590_v26  ;;  %v2026_v58 = vsub.f32 %v1882_v25, %v1978_v33  ;;  %v1612_v13 = vmul.f32 %v1548_v4, %v1548_v4  ;;  %v1438_v41 = vand.u32 2147483648, %v3564_v16  ;;  %v834_v61 = vpop.f32.mrf.mxu1 }
 0x1c1   : > { %2611 = vlog2.f32 %v1932_v5  ;;  %v1212_v49 = vsel %vm1211_vm8, %v3550_v30, %v1210_v8  ;;  %1774 = vst [vmem:[#allocation3 + $0xa0] sm:$0xff] %v1742_v11  ;;  %v1007_v22 = vmul.f32 %v820_v34, %v820_v34  ;;  %vm1218_vm12 = vcmp.eq.f32.partialorder %v3583_v19, inf }
 0x1c2   : > { %v2600_v59 = vpop.eup %2599  ;;  %v2058_v21 = vand.u32 2147483647, %v2026_v58  ;;  %v1215_v53 = vsel %vm1213_vm9, %v1214_v62, %v1212_v49  ;;  %2613 = vrsqrt.f32 %v3600_v2  ;;  %v1644_v28 = vadd.f32 %v1612_v13, %v1580_v10 }
 0x1c3   : > { %v2602_v56 = vpop.eup %2601  ;;  %v1884_v43 = vmul.f32 0.6931472, %v2600_v59  ;;  %v1837_v29 = vadd.f32 1e-07, %v1215_v53  ;;  %vm1220_vm13 = vcmp.eq.f32.partialorder %v3583_v19, 0.0  ;;  %v3616_v30 = vadd.f32 %v1039_v12, %v1007_v22 }
 0x1c4   : > { %v2604_v27 = vpop.eup %2603  ;;  %v2090_v51 = vadd.f32 %v2058_v21, %v1802_v3  ;;  %v1434_v6 = vmul.f32 %v2602_v56, %v3564_v16  ;;  %1676 = vst [vmem:[#allocation2 + $0x58] sm:$0xff] %v1644_v28  ;;  %v1221_v32 = vand.u32 2147483648, %v3583_v19  ;;  %v944_v7 = vmul.f32 %v571_v38, %v571_v38  ;;  %v838_v21 = vpop.f32.mrf.mxu1  ;;  %v1804_v28 = vld [vmem:[#allocation4 + $0x18] sm:$0xff] }
 0x1c5   : > { %v1980_v0 = vmul.f32 0.6931472, %v2604_v27  ;;  %2615 = vlog2.f32 %v1837_v29  ;;  %vm1442_vm14 = vcmp.eq.f32.partialorder %v3590_v26, inf  ;;  %v912_v37 = vmul.f32 %v3585_v46, %v3585_v46  ;;  %v1582_v29 = vld [vmem:[#allocation2 + $0xc8] sm:$0xff] }
 0x1c6   : > { %2122 = vst [vmem:[#allocation4 + $0x80] sm:$0xff] %v2090_v51  ;;  %v1436_v34 = vsel %vm1435_vm10, %v3564_v16, %v1434_v6  ;;  %2617 = vrsqrt.f32 %v3616_v30  ;;  %vm1444_vm15 = vcmp.eq.f32.partialorder %v3590_v26, 0.0  ;;  %v1743_v47 = vadd.f32 %v1711_v31, %v3616_v30 }
 0x1c7   : > { %v2027_v40 = vsub.f32 %v1884_v43, %v1980_v0  ;;  %v1439_v45 = vsel %vm1437_vm11, %v1438_v41, %v1436_v34  ;;  %v3630_v23 = vadd.f32 %v944_v7, %v912_v37  ;;  %v1040_v15 = vmul.f32 %v828_v57, %v828_v57  ;;  %v1713_v0 = vld [vmem:[#allocation3 + $0x20] sm:$0xff]  ;;  %v840_v37 = vpop.f32.mrf.mxu1 }
 0x1c8   : > { %v1549_v1 = vsub.f32 %v1439_v45, %v1215_v53  ;;  %v1933_v18 = vadd.f32 1e-07, %v1439_v45  ;;  %v2606_v44 = vpop.eup %2605  ;;  %v1445_v46 = vand.u32 2147483648, %v3590_v26  ;;  %vm1225_vm0 = vcmp.eq.f32.partialorder %v3600_v2, inf  ;;  %1775 = vst [vmem:[#allocation3 + $0xd8] sm:$0xff] %v1743_v47 }
 0x1c9   : > { %v2059_v17 = vand.u32 2147483647, %v2027_v40  ;;  %v945_v16 = vmul.f32 %v577_v39, %v577_v39  ;;  %v1217_v24 = vmul.f32 %v2606_v44, %v3583_v19  ;;  %v1008_v25 = vmul.f32 %v826_v9, %v826_v9  ;;  %v581_v9 = vpop.f32.mrf.mxu0 }
 0x1ca   : > { %v1613_v52 = vmul.f32 %v1549_v1, %v1549_v1  ;;  %2619 = vlog2.f32 %v1933_v18  ;;  %vm1227_vm1 = vcmp.eq.f32.partialorder %v3600_v2, 0.0  ;;  %v913_v60 = vmul.f32 %v575_v54, %v575_v54 }
 0x1cb   : > { %v2091_v55 = vadd.f32 %v2059_v17, %v1803_v48  ;;  %2621 = vrsqrt.f32 %v3630_v23  ;;  %v1219_v50 = vsel %vm1218_vm12, %v3583_v19, %v1217_v24  ;;  %v1228_v63 = vand.u32 2147483648, %v3600_v2  ;;  %v583_v56 = vpop.f32.mrf.mxu0 }
 0x1cc   : > { %v2608_v14 = vpop.eup %2607  ;;  %v1645_v62 = vadd.f32 %v1613_v52, %v1581_v20  ;;  %v3641_v33 = vadd.f32 %v1040_v15, %v1008_v25  ;;  %v1222_v4 = vsel %vm1220_vm13, %v1221_v32, %v1219_v50  ;;  %v3646_v8 = vadd.f32 %v945_v16, %v913_v60  ;;  %v844_v25 = vpop.f32.mrf.mxu1 }
 0x1cd   : > { %v2610_v42 = vpop.eup %2609  ;;  %2123 = vst [vmem:[#allocation4 + $0xa0] sm:$0xff] %v2091_v55  ;;  %v1886_v38 = vmul.f32 0.6931472, %v2608_v14  ;;  %v1838_v10 = vadd.f32 1e-07, %v1222_v4  ;;  %vm1449_vm2 = vcmp.eq.f32.partialorder %v3616_v30, inf  ;;  %v1041_v11 = vmul.f32 %v834_v61, %v834_v61  ;;  %v587_v47 = vpop.f32.mrf.mxu0 }
 0x1ce   : > { %v1441_v5 = vmul.f32 %v2610_v42, %v3590_v26  ;;  %v2612_v58 = vpop.eup %2611  ;;  %1677 = vst [vmem:[#allocation2 + $0x40] sm:$0xff] %v1645_v62  ;;  %2623 = vrsqrt.f32 %v3641_v33  ;;  %vm1451_vm3 = vcmp.eq.f32.partialorder %v3616_v30, 0.0  ;;  %v1744_v13 = vadd.f32 %v1712_v36, %v3641_v33  ;;  %v1583_v14 = vld [vmem:[#allocation2 + $0xe0] sm:$0xff]  ;;  %v1805_v36 = vld [vmem:[#allocation4 + $0xf8] sm:$0xff] }
 0x1cf   : > { %v2614_v12 = vpop.eup %2613  ;;  %v1982_v3 = vmul.f32 0.6931472, %v2612_v58  ;;  %2625 = vlog2.f32 %v1838_v10  ;;  %v1009_v59 = vmul.f32 %v832_v35, %v832_v35  ;;  %vm1232_vm4 = vcmp.eq.f32.partialorder %v3630_v23, inf  ;;  %v846_v10 = vpop.f32.mrf.mxu1 }
 0x1d0   : > { %v1443_v19 = vsel %vm1442_vm14, %v3590_v26, %v1441_v5  ;;  %v1224_v41 = vmul.f32 %v2614_v12, %v3600_v2  ;;  %1776 = vst [vmem:[#allocation3 + $0x30] sm:$0xff] %v1744_v13  ;;  %2627 = vrsqrt.f32 %v3646_v8  ;;  %v1452_v26 = vand.u32 2147483648, %v3616_v30 }
 0x1d1   : > { %v1446_v49 = vsel %vm1444_vm15, %v1445_v46, %v1443_v19  ;;  %v2028_v53 = vsub.f32 %v1886_v38, %v1982_v3  ;;  %v3664_v27 = vadd.f32 %v1041_v11, %v1009_v59  ;;  %vm1234_vm5 = vcmp.eq.f32.partialorder %v3630_v23, 0.0  ;;  %v1714_v19 = vld [vmem:[#allocation3 + $0xf0] sm:$0xff] }
 0x1d2   : > { %v1550_v22 = vsub.f32 %v1446_v49, %v1222_v4  ;;  %v1934_v54 = vadd.f32 1e-07, %v1446_v49  ;;  %v2616_v43 = vpop.eup %2615  ;;  %v1226_v57 = vsel %vm1225_vm0, %v3600_v2, %v1224_v41  ;;  %v1235_v34 = vand.u32 2147483648, %v3630_v23 }
 0x1d3   : > { %v2618_v51 = vpop.eup %2617  ;;  %v2060_v6 = vand.u32 2147483647, %v2028_v53  ;;  %v1229_v32 = vsel %vm1227_vm1, %v1228_v63, %v1226_v57  ;;  %vm1456_vm6 = vcmp.eq.f32.partialorder %v3641_v33, inf  ;;  %v1888_v35 = vmul.f32 0.6931472, %v2616_v43 }
 0x1d4   : > { %v1614_v31 = vmul.f32 %v1550_v22, %v1550_v22  ;;  %2629 = vlog2.f32 %v1934_v54  ;;  %v1448_v7 = vmul.f32 %v2618_v51, %v3616_v30  ;;  %v1839_v45 = vadd.f32 1e-07, %v1229_v32 }
 0x1d5   : > { %2631 = vrsqrt.f32 %v3664_v27  ;;  %v2092_v39 = vadd.f32 %v2060_v6, %v1804_v28  ;;  %v1745_v2 = vadd.f32 %v1713_v0, %v3664_v27  ;;  %v914_v1 = vmul.f32 %v581_v9, %v581_v9 }
 0x1d6   : > { %v1646_v40 = vadd.f32 %v1614_v31, %v1582_v29  ;;  %v1450_v48 = vsel %vm1449_vm2, %v3616_v30, %v1448_v7  ;;  %2633 = vlog2.f32 %v1839_v45  ;;  %v1010_v44 = vmul.f32 %v838_v21, %v838_v21  ;;  %v589_v30 = vpop.f32.mrf.mxu0  ;;  %v1584_v31 = vld [vmem:[#allocation2 + $0x90] sm:$0xff] }
 0x1d7   : > { %v2620_v18 = vpop.eup %2619  ;;  %2124 = vst [vmem:[#allocation4 + $0x18] sm:$0xff] %v2092_v39  ;;  %v1453_v15 = vsel %vm1451_vm3, %v1452_v26, %v1450_v48  ;;  %v946_v17 = vmul.f32 %v583_v56, %v583_v56  ;;  %1777 = vst [vmem:[#allocation3 + $0x20] sm:$0xff] %v1745_v2  ;;  %v1042_v24 = vmul.f32 %v840_v37, %v840_v37  ;;  %vm1458_vm7 = vcmp.eq.f32.partialorder %v3641_v33, 0.0  ;;  %v3706_v26 = vpop.f32.mrf.mxu1  ;;  %v1806_v2 = vld [vmem:[#allocation4 + $0xe8] sm:$0xff] }
 0x1d8   : > { %1678 = vst [vmem:[#allocation2 + $0xc8] sm:$0xff] %v1646_v40  ;;  %v2622_v20 = vpop.eup %2621  ;;  %v1984_v46 = vmul.f32 0.6931472, %v2620_v18  ;;  %v1551_v16 = vsub.f32 %v1453_v15, %v1229_v32  ;;  %v1935_v52 = vadd.f32 1e-07, %v1453_v15  ;;  %v1459_v60 = vand.u32 2147483648, %v3641_v33  ;;  %v593_v13 = vpop.f32.mrf.mxu0 }
 0x1d9   : > { %v1231_v55 = vmul.f32 %v2622_v20, %v3630_v23  ;;  %v3682_v61 = vadd.f32 %v946_v17, %v914_v1  ;;  %v3684_v50 = vadd.f32 %v1042_v24, %v1010_v44  ;;  %vm1239_vm8 = vcmp.eq.f32.partialorder %v3646_v8, inf  ;;  %v1715_v24 = vld [vmem:[#allocation3 + $0x88] sm:$0xff] }
 0x1da   : > { %v2029_v42 = vsub.f32 %v1888_v35, %v1984_v46  ;;  %v1615_v62 = vmul.f32 %v1551_v16, %v1551_v16  ;;  %2635 = vlog2.f32 %v1935_v52  ;;  %vm1241_vm9 = vcmp.eq.f32.partialorder %v3646_v8, 0.0  ;;  %v595_v7 = vpop.f32.mrf.mxu0 }
 0x1db   : > { %v2624_v63 = vpop.eup %2623  ;;  %v1233_v38 = vsel %vm1232_vm4, %v3630_v23, %v1231_v55  ;;  %2637 = vrsqrt.f32 %v3682_v61  ;;  %v1242_v3 = vand.u32 2147483648, %v3646_v8  ;;  %vm1463_vm10 = vcmp.eq.f32.partialorder %v3664_v27, inf  ;;  %v1585_v55 = vld [vmem:[#allocation2 + $0x70] sm:$0xff] }
 0x1dc   : > { %v2061_v4 = vand.u32 2147483647, %v2029_v42  ;;  %v1647_v5 = vadd.f32 %v1615_v62, %v1583_v14  ;;  %v1236_v9 = vsel %vm1234_vm5, %v1235_v34, %v1233_v38  ;;  %v1455_v58 = vmul.f32 %v2624_v63, %v3641_v33  ;;  %v2626_v11 = vpop.eup %2625  ;;  %v599_v20 = vpop.f32.mrf.mxu0 }
 0x1dd   : > { %v1840_v12 = vadd.f32 1e-07, %v1236_v9  ;;  %2639 = vrsqrt.f32 %v3684_v50  ;;  %v2628_v49 = vpop.eup %2627  ;;  %v1466_v59 = vand.u32 2147483648, %v3664_v27  ;;  %v915_v21 = vmul.f32 %v587_v47, %v587_v47 }
 0x1de   : > { %v2093_v41 = vadd.f32 %v2061_v4, %v1805_v36  ;;  %1679 = vst [vmem:[#allocation2 + $0xe0] sm:$0xff] %v1647_v5  ;;  %v1457_v23 = vsel %vm1456_vm6, %v3641_v33, %v1455_v58  ;;  %v1890_v53 = vmul.f32 0.6931472, %v2626_v11  ;;  %v1238_v54 = vmul.f32 %v2628_v49, %v3646_v8  ;;  %v601_v4 = vpop.f32.mrf.mxu0 }
 0x1df   : > { %2641 = vlog2.f32 %v1840_v12  ;;  %v1460_v22 = vsel %vm1458_vm7, %v1459_v60, %v1457_v23  ;;  %v1746_v29 = vadd.f32 %v1714_v19, %v3684_v50  ;;  %v947_v57 = vmul.f32 %v589_v30, %v589_v30  ;;  %v1807_v12 = vld [vmem:[#allocation4 + $0x90] sm:$0xff] }
 0x1e0   : > { %2125 = vst [vmem:[#allocation4 + $0xf8] sm:$0xff] %v2093_v41  ;;  %v1552_v43 = vsub.f32 %v1460_v22, %v1236_v9  ;;  %v1936_v28 = vadd.f32 1e-07, %v1460_v22  ;;  %v1240_v0 = vsel %vm1239_vm8, %v3646_v8, %v1238_v54  ;;  %v1011_v33 = vmul.f32 %v844_v25, %v844_v25  ;;  %v852_v8 = vpop.f32.mrf.mxu1  ;;  %v605_v54 = vpop.f32.mrf.mxu0 }
 0x1e1   : > { %v2630_v56 = vpop.eup %2629  ;;  %v1043_v32 = vmul.f32 %v846_v10, %v846_v10  ;;  %v1243_v37 = vsel %vm1241_vm9, %v1242_v3, %v1240_v0  ;;  %1778 = vst [vmem:[#allocation3 + $0xf0] sm:$0xff] %v1746_v29  ;;  %v3714_v47 = vadd.f32 %v947_v57, %v915_v21  ;;  %vm1465_vm11 = vcmp.eq.f32.partialorder %v3664_v27, 0.0  ;;  %v1586_v0 = vld [vmem:[#allocation2 + $0xc0] sm:$0xff] }
 0x1e2   : > { %v2632_v51 = vpop.eup %2631  ;;  %v1986_v6 = vmul.f32 0.6931472, %v2630_v56  ;;  %v1616_v34 = vmul.f32 %v1552_v43, %v1552_v43  ;;  %2643 = vlog2.f32 %v1936_v28  ;;  %v1841_v45 = vadd.f32 1e-07, %v1243_v37  ;;  %v856_v62 = vpop.f32.mrf.mxu1 }
 0x1e3   : > { %v1462_v39 = vmul.f32 %v2632_v51, %v3664_v27  ;;  %v3716_v35 = vadd.f32 %v1043_v32, %v1011_v33  ;;  %v2634_v48 = vpop.eup %2633  ;;  %v948_v17 = vmul.f32 %v595_v7, %v595_v7  ;;  %vm1246_vm12 = vcmp.eq.f32.partialorder %v3682_v61, inf }
 0x1e4   : > { %v2030_v40 = vsub.f32 %v1890_v53, %v1986_v6  ;;  %v1648_v1 = vadd.f32 %v1616_v34, %v1584_v31  ;;  %2645 = vlog2.f32 %v1841_v45  ;;  %v1892_v46 = vmul.f32 0.6931472, %v2634_v48  ;;  %v858_v21 = vpop.f32.mrf.mxu1 }
 0x1e5   : > { %v1464_v18 = vsel %vm1463_vm10, %v3664_v27, %v1462_v39  ;;  %2647 = vrsqrt.f32 %v3714_v47  ;;  %v916_v42 = vmul.f32 %v593_v13, %v593_v13  ;;  %vm1248_vm13 = vcmp.eq.f32.partialorder %v3682_v61, 0.0 }
 0x1e6   : > { %v2062_v15 = vand.u32 2147483647, %v2030_v40  ;;  %v1467_v44 = vsel %vm1465_vm11, %v1466_v59, %v1464_v18  ;;  %1680 = vst [vmem:[#allocation2 + $0x90] sm:$0xff] %v1648_v1  ;;  %2649 = vrsqrt.f32 %v3716_v35  ;;  %v1249_v36 = vand.u32 2147483648, %v3682_v61  ;;  %v862_v33 = vpop.f32.mrf.mxu1  ;;  %v1808_v1 = vld [vmem:[#allocation4 + $0x20] sm:$0xff] }
 0x1e7   : > { %v1553_v16 = vsub.f32 %v1467_v44, %v1243_v37  ;;  %v1937_v52 = vadd.f32 1e-07, %v1467_v44  ;;  %v2636_v25 = vpop.eup %2635  ;;  %v1747_v38 = vadd.f32 %v1715_v24, %v3716_v35  ;;  %v3729_v10 = vadd.f32 %v948_v17, %v916_v42  ;;  %v607_v37 = vpop.f32.mrf.mxu0 }
 0x1e8   : > { %v2094_v14 = vadd.f32 %v2062_v15, %v1806_v2  ;;  %v2638_v27 = vpop.eup %2637  ;;  %v1988_v60 = vmul.f32 0.6931472, %v2636_v25  ;;  %v1044_v11 = vmul.f32 %v852_v8, %v852_v8  ;;  %vm1470_vm14 = vcmp.eq.f32.partialorder %v3684_v50, inf }
 0x1e9   : > { %v1617_v30 = vmul.f32 %v1553_v16, %v1553_v16  ;;  %2651 = vlog2.f32 %v1937_v52  ;;  %v1245_v63 = vmul.f32 %v2638_v27, %v3682_v61  ;;  %v1473_v13 = vand.u32 2147483648, %v3684_v50  ;;  %1779 = vst [vmem:[#allocation3 + $0x88] sm:$0xff] %v1747_v38  ;;  %v864_v16 = vpop.f32.mrf.mxu1 }
 0x1ea   : > { %2126 = vst [vmem:[#allocation4 + $0xe8] sm:$0xff] %v2094_v14  ;;  %v2640_v5 = vpop.eup %2639  ;;  %v2031_v9 = vsub.f32 %v1892_v46, %v1988_v60  ;;  %v1012_v59 = vmul.f32 %v3706_v26, %v3706_v26  ;;  %2653 = vrsqrt.f32 %v3729_v10  ;;  %vm1472_vm15 = vcmp.eq.f32.partialorder %v3684_v50, 0.0 }
 0x1eb   : > { %v1649_v58 = vadd.f32 %v1617_v30, %v1585_v55  ;;  %v1247_v3 = vsel %vm1246_vm12, %v3682_v61, %v1245_v63  ;;  %v1469_v19 = vmul.f32 %v2640_v5, %v3684_v50  ;;  %vm1253_vm0 = vcmp.eq.f32.partialorder %v3714_v47, inf  ;;  %v1716_v61 = vld [vmem:[#allocation3 + $0x48] sm:$0xff]  ;;  %v1717_v30 = vld [vmem:[#allocation3 + $0xf8] sm:$0xff] }
 0x1ec   : > { %v2642_v49 = vpop.eup %2641  ;;  %v2063_v41 = vand.u32 2147483647, %v2031_v9  ;;  %v1250_v23 = vsel %vm1248_vm13, %v1249_v36, %v1247_v3  ;;  %v3745_v29 = vadd.f32 %v1044_v11, %v1012_v59  ;;  %v949_v6 = vmul.f32 %v601_v4, %v601_v4  ;;  %v611_v36 = vpop.f32.mrf.mxu0  ;;  %v1809_v11 = vld [vmem:[#allocation4 + $0x38] sm:$0xff] }
 0x1ed   : > { %1681 = vst [vmem:[#allocation2 + $0x70] sm:$0xff] %v1649_v58  ;;  %v1842_v53 = vadd.f32 1e-07, %v1250_v23  ;;  %v1471_v22 = vsel %vm1470_vm14, %v3684_v50, %v1469_v19  ;;  %v1894_v43 = vmul.f32 0.6931472, %v2642_v49  ;;  %vm1255_vm1 = vcmp.eq.f32.partialorder %v3714_v47, 0.0  ;;  %v868_v58 = vpop.f32.mrf.mxu1 }
 0x1ee   : > { %v2095_v56 = vadd.f32 %v2063_v41, %v1807_v12  ;;  %v1474_v28 = vsel %vm1472_vm15, %v1473_v13, %v1471_v22  ;;  %v917_v50 = vmul.f32 %v599_v20, %v599_v20  ;;  %v1256_v7 = vand.u32 2147483648, %v3714_v47  ;;  %v1587_v41 = vld [vmem:[#allocation2 + $0xa8] sm:$0xff] }
 0x1ef   : > { %v2644_v57 = vpop.eup %2643  ;;  %2655 = vlog2.f32 %v1842_v53  ;;  %v1554_v26 = vsub.f32 %v1474_v28, %v1250_v23  ;;  %v1938_v51 = vadd.f32 1e-07, %v1474_v28  ;;  %v1748_v34 = vadd.f32 %v1716_v61, %v3745_v29 }
 0x1f0   : > { %2127 = vst [vmem:[#allocation4 + $0x90] sm:$0xff] %v2095_v56  ;;  %v1990_v31 = vmul.f32 0.6931472, %v2644_v57  ;;  %2657 = vrsqrt.f32 %v3745_v29  ;;  %vm1477_vm2 = vcmp.eq.f32.partialorder %v3716_v35, inf  ;;  %v3752_v45 = vadd.f32 %v949_v6, %v917_v50 }
 0x1f1   : > { %v1618_v32 = vmul.f32 %v1554_v26, %v1554_v26  ;;  %2659 = vlog2.f32 %v1938_v51  ;;  %v2646_v39 = vpop.eup %2645  ;;  %v1045_v48 = vmul.f32 %v858_v21, %v858_v21  ;;  %vm1479_vm3 = vcmp.eq.f32.partialorder %v3716_v35, 0.0  ;;  %1780 = vst [vmem:[#allocation3 + $0x48] sm:$0xff] %v1748_v34  ;;  %v613_v21 = vpop.f32.mrf.mxu0 }
 0x1f2   : > { %v2032_v40 = vsub.f32 %v1894_v43, %v1990_v31  ;;  %v2648_v2 = vpop.eup %2647  ;;  %v1896_v18 = vmul.f32 0.6931472, %v2646_v39  ;;  %v1013_v15 = vmul.f32 %v856_v62, %v856_v62  ;;  %2661 = vrsqrt.f32 %v3752_v45  ;;  %v870_v43 = vpop.f32.mrf.mxu1 }
 0x1f3   : > { %v1650_v8 = vadd.f32 %v1618_v32, %v1586_v0  ;;  %v2650_v44 = vpop.eup %2649  ;;  %v1252_v20 = vmul.f32 %v2648_v2, %v3714_v47  ;;  %v950_v46 = vmul.f32 %v607_v37, %v607_v37  ;;  %v1480_v25 = vand.u32 2147483648, %v3716_v35  ;;  %v1718_v32 = vld [vmem:[#allocation3 + $0xc0] sm:$0xff] }
 0x1f4   : > { %v2064_v17 = vand.u32 2147483647, %v2032_v40  ;;  %v1476_v24 = vmul.f32 %v2650_v44, %v3716_v35  ;;  %vm1260_vm4 = vcmp.eq.f32.partialorder %v3729_v10, inf  ;;  %v3760_v14 = vadd.f32 %v1045_v48, %v1013_v15  ;;  %v3797_v48 = vpop.f32.mrf.mxu1  ;;  %v1810_v15 = vld [vmem:[#allocation4 + $0x70] sm:$0xff] }
 0x1f5   : > { %1682 = vst [vmem:[#allocation2 + $0xc0] sm:$0xff] %v1650_v8  ;;  %v1254_v60 = vsel %vm1253_vm0, %v3714_v47, %v1252_v20  ;;  %v918_v42 = vmul.f32 %v605_v54, %v605_v54  ;;  %vm1262_vm5 = vcmp.eq.f32.partialorder %v3729_v10, 0.0  ;;  %v1263_v19 = vand.u32 2147483648, %v3729_v10 }
 0x1f6   : > { %v2652_v52 = vpop.eup %2651  ;;  %v2096_v55 = vadd.f32 %v2064_v17, %v1808_v1  ;;  %v1257_v62 = vsel %vm1255_vm1, %v1256_v7, %v1254_v60  ;;  %v1478_v63 = vsel %vm1477_vm2, %v3716_v35, %v1476_v24  ;;  %2663 = vrsqrt.f32 %v3760_v14 }
 0x1f7   : > { %v1992_v27 = vmul.f32 0.6931472, %v2652_v52  ;;  %v1843_v4 = vadd.f32 1e-07, %v1257_v62  ;;  %v1481_v5 = vsel %vm1479_vm3, %v1480_v25, %v1478_v63  ;;  %v3774_v9 = vadd.f32 %v950_v46, %v918_v42  ;;  %v2654_v47 = vpop.eup %2653  ;;  %v1588_v52 = vld [vmem:[#allocation2 + $0xd0] sm:$0xff] }
 0x1f8   : > { %2128 = vst [vmem:[#allocation4 + $0x20] sm:$0xff] %v2096_v55  ;;  %v1555_v12 = vsub.f32 %v1481_v5, %v1257_v62  ;;  %v1939_v3 = vadd.f32 1e-07, %v1481_v5  ;;  %v1749_v13 = vadd.f32 %v1717_v30, %v3760_v14  ;;  %v1259_v23 = vmul.f32 %v2654_v47, %v3729_v10  ;;  %v876_v30 = vpop.f32.mrf.mxu1 }
 0x1f9   : > { %v2033_v38 = vsub.f32 %v1896_v18, %v1992_v27  ;;  %2665 = vlog2.f32 %v1843_v4  ;;  %vm1484_vm6 = vcmp.eq.f32.partialorder %v3745_v29, inf  ;;  %vm1486_vm7 = vcmp.eq.f32.partialorder %v3745_v29, 0.0 }
 0x1fa   : > { %v1619_v35 = vmul.f32 %v1555_v12, %v1555_v12  ;;  %2667 = vlog2.f32 %v1939_v3  ;;  %1781 = vst [vmem:[#allocation3 + $0xf8] sm:$0xff] %v1749_v13  ;;  %v1014_v59 = vmul.f32 %v862_v33, %v862_v33  ;;  %v1261_v54 = vsel %vm1260_vm4, %v3729_v10, %v1259_v23  ;;  %v617_v10 = vpop.f32.mrf.mxu0 }
 0x1fb   : > { %v2065_v49 = vand.u32 2147483647, %v2033_v38  ;;  %2669 = vrsqrt.f32 %v3774_v9  ;;  %v1046_v56 = vmul.f32 %v864_v16, %v864_v16  ;;  %v1264_v26 = vsel %vm1262_vm5, %v1263_v19, %v1261_v54 }
 0x1fc   : > { %v2656_v53 = vpop.eup %2655  ;;  %v1651_v57 = vadd.f32 %v1619_v35, %v1587_v41  ;;  %v1487_v51 = vand.u32 2147483648, %v3745_v29  ;;  %v1844_v31 = vadd.f32 1e-07, %v1264_v26  ;;  %vm1267_vm8 = vcmp.eq.f32.partialorder %v3752_v45, inf }
 0x1fd   : > { %v2097_v22 = vadd.f32 %v2065_v49, %v1809_v11  ;;  %v2658_v28 = vpop.eup %2657  ;;  %v1898_v61 = vmul.f32 0.6931472, %v2656_v53  ;;  %v3790_v50 = vadd.f32 %v1046_v56, %v1014_v59  ;;  %vm1269_vm9 = vcmp.eq.f32.partialorder %v3752_v45, 0.0  ;;  %v880_v49 = vpop.f32.mrf.mxu1  ;;  %v1589_v53 = vld [vmem:[#allocation2 + $0x10] sm:$0xff] }
 0x1fe   : > { %v2660_v6 = vpop.eup %2659  ;;  %v1483_v0 = vmul.f32 %v2658_v28, %v3745_v29  ;;  %1683 = vst [vmem:[#allocation2 + $0xa8] sm:$0xff] %v1651_v57  ;;  %v951_v7 = vmul.f32 %v613_v21, %v613_v21  ;;  %v1047_v34 = vmul.f32 %v870_v43, %v870_v43  ;;  %2671 = vlog2.f32 %v1844_v31 }
 0x1ff   : > { %2129 = vst [vmem:[#allocation4 + $0x38] sm:$0xff] %v2097_v22  ;;  %v1994_v33 = vmul.f32 0.6931472, %v2660_v6  ;;  %v1270_v39 = vand.u32 2147483648, %v3752_v45  ;;  %v919_v40 = vmul.f32 %v611_v36, %v611_v36  ;;  %v2662_v2 = vpop.eup %2661  ;;  %2673 = vrsqrt.f32 %v3790_v50  ;;  %v882_v6 = vpop.f32.mrf.mxu1 }
 0x200   : > { %v1485_v37 = vsel %vm1484_vm6, %v3745_v29, %v1483_v0  ;;  %v1015_v8 = vmul.f32 %v868_v58, %v868_v58  ;;  %v1266_v20 = vmul.f32 %v2662_v2, %v3752_v45  ;;  %v1750_v46 = vadd.f32 %v1718_v32, %v3790_v50  ;;  %v619_v29 = vpop.f32.mrf.mxu0 }
 0x201   : > { %v2034_v1 = vsub.f32 %v1898_v61, %v1994_v33  ;;  %v1488_v18 = vsel %vm1486_vm7, %v1487_v51, %v1485_v37  ;;  %vm1491_vm10 = vcmp.eq.f32.partialorder %v3760_v14, inf  ;;  %v3805_v24 = vadd.f32 %v951_v7, %v919_v40  ;;  %v1811_v61 = vld [vmem:[#allocation4 + $0xa8] sm:$0xff] }
 0x202   : > { %v1556_v44 = vsub.f32 %v1488_v18, %v1264_v26  ;;  %v1940_v17 = vadd.f32 1e-07, %v1488_v18  ;;  %v3807_v25 = vadd.f32 %v1047_v34, %v1015_v8  ;;  %v1268_v60 = vsel %vm1267_vm8, %v3752_v45, %v1266_v20  ;;  %1782 = vst [vmem:[#allocation3 + $0xc0] sm:$0xff] %v1750_v46  ;;  %v1719_v45 = vld [vmem:[#allocation3 + $0xb8] sm:$0xff]  ;;  %v623_v13 = vpop.f32.mrf.mxu0 }
 0x203   : > { %v2066_v16 = vand.u32 2147483647, %v2034_v1  ;;  %v2664_v55 = vpop.eup %2663  ;;  %vm1493_vm11 = vcmp.eq.f32.partialorder %v3760_v14, 0.0  ;;  %v1271_v62 = vsel %vm1269_vm9, %v1270_v39, %v1268_v60  ;;  %v1494_v4 = vand.u32 2147483648, %v3760_v14  ;;  %v1720_v39 = vld [vmem:[#allocation3] sm:$0xff] }
 0x204   : > { %v1620_v27 = vmul.f32 %v1556_v44, %v1556_v44  ;;  %2675 = vlog2.f32 %v1940_v17  ;;  %v1490_v63 = vmul.f32 %v2664_v55, %v3760_v14  ;;  %v1845_v38 = vadd.f32 1e-07, %v1271_v62  ;;  %v625_v51 = vpop.f32.mrf.mxu0 }
 0x205   : > { %v2098_v42 = vadd.f32 %v2066_v16, %v1810_v15  ;;  %2677 = vrsqrt.f32 %v3805_v24  ;;  %v952_v5 = vmul.f32 %v619_v29, %v619_v29  ;;  %vm1274_vm12 = vcmp.eq.f32.partialorder %v3774_v9, inf }
 0x206   : > { %v1652_v36 = vadd.f32 %v1620_v27, %v1588_v52  ;;  %v2666_v58 = vpop.eup %2665  ;;  %v1492_v47 = vsel %vm1491_vm10, %v3760_v14, %v1490_v63  ;;  %vm1276_vm13 = vcmp.eq.f32.partialorder %v3774_v9, 0.0  ;;  %2679 = vrsqrt.f32 %v3807_v25 }
 0x207   : > { %2130 = vst [vmem:[#allocation4 + $0x70] sm:$0xff] %v2098_v42  ;;  %v2668_v11 = vpop.eup %2667  ;;  %v1900_v12 = vmul.f32 0.6931472, %v2666_v58  ;;  %2681 = vlog2.f32 %v1845_v38  ;;  %v1495_v3 = vsel %vm1493_vm11, %v1494_v4, %v1492_v47  ;;  %v920_v19 = vmul.f32 %v617_v10, %v617_v10  ;;  %v629_v42 = vpop.f32.mrf.mxu0 }
 0x208   : > { %1684 = vst [vmem:[#allocation2 + $0xd0] sm:$0xff] %v1652_v36  ;;  %v2670_v41 = vpop.eup %2669  ;;  %v1996_v23 = vmul.f32 0.6931472, %v2668_v11  ;;  %v1557_v35 = vsub.f32 %v1495_v3, %v1271_v62  ;;  %v1941_v59 = vadd.f32 1e-07, %v1495_v3  ;;  %v1277_v21 = vand.u32 2147483648, %v3774_v9  ;;  %v886_v38 = vpop.f32.mrf.mxu1 }
 0x209   : > { %v1273_v22 = vmul.f32 %v2670_v41, %v3774_v9  ;;  %v1751_v54 = vadd.f32 %v1719_v45, %v3807_v25  ;;  %v3829_v56 = vadd.f32 %v952_v5, %v920_v19  ;;  %v1048_v43 = vmul.f32 %v876_v30, %v876_v30  ;;  %v1590_v36 = vld [vmem:[#allocation2 + $0x28] sm:$0xff]  ;;  %v1812_v5 = vld [vmem:[#allocation4 + $0xf0] sm:$0xff] }
 0x20a   : > { %v2035_v28 = vsub.f32 %v1900_v12, %v1996_v23  ;;  %v1621_v14 = vmul.f32 %v1557_v35, %v1557_v35  ;;  %2683 = vlog2.f32 %v1941_v59  ;;  %vm1498_vm14 = vcmp.eq.f32.partialorder %v3790_v50, inf  ;;  %v1721_v41 = vld [vmem:[#allocation3 + $0x28] sm:$0xff]  ;;  %v631_v23 = vpop.f32.mrf.mxu0 }
 0x20b   : > { %v1275_v57 = vsel %vm1274_vm12, %v3774_v9, %v1273_v22  ;;  %vm1500_vm15 = vcmp.eq.f32.partialorder %v3790_v50, 0.0  ;;  %1783 = vst [vmem:[#allocation3 + $0xb8] sm:$0xff] %v1751_v54  ;;  %v1016_v26 = vmul.f32 %v3797_v48, %v3797_v48  ;;  %2685 = vrsqrt.f32 %v3829_v56  ;;  %v2672_v31 = vpop.eup %2671  ;;  %v888_v22 = vpop.f32.mrf.mxu1 }
 0x20c   : > { %v2067_v0 = vand.u32 2147483647, %v2035_v28  ;;  %v1653_v33 = vadd.f32 %v1621_v14, %v1589_v53  ;;  %v1278_v32 = vsel %vm1276_vm13, %v1277_v21, %v1275_v57  ;;  %v1501_v7 = vand.u32 2147483648, %v3790_v50  ;;  %v2674_v34 = vpop.eup %2673 }
 0x20d   : > { %v1846_v10 = vadd.f32 1e-07, %v1278_v32  ;;  %vm1281_vm0 = vcmp.eq.f32.partialorder %v3805_v24, inf  ;;  %v3843_v37 = vadd.f32 %v1048_v43, %v1016_v26  ;;  %v921_v40 = vmul.f32 %v623_v13, %v623_v13 }
 0x20e   : > { %v2099_v48 = vadd.f32 %v2067_v0, %v1811_v61  ;;  %1685 = vst [vmem:[#allocation2 + $0x10] sm:$0xff] %v1653_v33  ;;  %v1497_v2 = vmul.f32 %v2674_v34, %v3790_v50  ;;  %v953_v1 = vmul.f32 %v625_v51, %v625_v51  ;;  %v1049_v18 = vmul.f32 %v882_v6, %v882_v6  ;;  %v1591_v61 = vld [vmem:[#allocation2 + $0xa0] sm:$0xff]  ;;  %v1813_v33 = vld [vmem:[#allocation4 + $0x50] sm:$0xff] }
 0x20f   : > { %v1902_v8 = vmul.f32 0.6931472, %v2672_v31  ;;  %2687 = vlog2.f32 %v1846_v10  ;;  %vm1283_vm1 = vcmp.eq.f32.partialorder %v3805_v24, 0.0  ;;  %v1017_v9 = vmul.f32 %v880_v49, %v880_v49 }
 0x210   : > { %2131 = vst [vmem:[#allocation4 + $0xa8] sm:$0xff] %v2099_v48  ;;  %v1499_v44 = vsel %vm1498_vm14, %v3790_v50, %v1497_v2  ;;  %2689 = vrsqrt.f32 %v3843_v37  ;;  %v1752_v17 = vadd.f32 %v1720_v39, %v3843_v37  ;;  %v3852_v20 = vadd.f32 %v953_v1, %v921_v40 }
 0x211   : > { %v2676_v15 = vpop.eup %2675  ;;  %v1502_v52 = vsel %vm1500_vm15, %v1501_v7, %v1499_v44  ;;  %v1284_v29 = vand.u32 2147483648, %v3805_v24  ;;  %v3857_v55 = vadd.f32 %v1049_v18, %v1017_v9  ;;  %vm1505_vm2 = vcmp.eq.f32.partialorder %v3807_v25, inf  ;;  %v1722_v18 = vld [vmem:[#allocation3 + $0x98] sm:$0xff] }
 0x212   : > { %v2678_v46 = vpop.eup %2677  ;;  %v1998_v16 = vmul.f32 0.6931472, %v2676_v15  ;;  %v1558_v27 = vsub.f32 %v1502_v52, %v1278_v32  ;;  %v1942_v60 = vadd.f32 1e-07, %v1502_v52  ;;  %1784 = vst [vmem:[#allocation3] sm:$0xff] %v1752_v17  ;;  %2691 = vrsqrt.f32 %v3852_v20 }
 0x213   : > { %v1280_v30 = vmul.f32 %v2678_v46, %v3805_v24  ;;  %v2680_v62 = vpop.eup %2679  ;;  %vm1507_vm3 = vcmp.eq.f32.partialorder %v3807_v25, 0.0  ;;  %v1508_v50 = vand.u32 2147483648, %v3807_v25  ;;  %vm1288_vm4 = vcmp.eq.f32.partialorder %v3829_v56, inf }
 0x214   : > { %v2036_v63 = vsub.f32 %v1902_v8, %v1998_v16  ;;  %v2682_v4 = vpop.eup %2681  ;;  %v1622_v58 = vmul.f32 %v1558_v27, %v1558_v27  ;;  %2693 = vlog2.f32 %v1942_v60  ;;  %v1504_v45 = vmul.f32 %v2680_v62, %v3807_v25 }
 0x215   : > { %v1282_v47 = vsel %vm1281_vm0, %v3805_v24, %v1280_v30  ;;  %2695 = vrsqrt.f32 %v3857_v55  ;;  %v1904_v3 = vmul.f32 0.6931472, %v2682_v4  ;;  %v1291_v24 = vand.u32 2147483648, %v3829_v56 }
 0x216   : > { %v2068_v11 = vand.u32 2147483647, %v2036_v63  ;;  %v1285_v12 = vsel %vm1283_vm1, %v1284_v29, %v1282_v47  ;;  %v1654_v19 = vadd.f32 %v1622_v58, %v1590_v36  ;;  %v1506_v49 = vsel %vm1505_vm2, %v3807_v25, %v1504_v45  ;;  %v1592_v63 = vld [vmem:[#allocation2 + $0xf8] sm:$0xff]  ;;  %v1814_v47 = vld [vmem:[#allocation4 + $0x88] sm:$0xff] }
 0x217   : > { %v1847_v13 = vadd.f32 1e-07, %v1285_v12  ;;  %v2684_v35 = vpop.eup %2683  ;;  %v1509_v21 = vsel %vm1507_vm3, %v1508_v50, %v1506_v49  ;;  %v922_v53 = vmul.f32 %v629_v42, %v629_v42  ;;  %v1753_v26 = vadd.f32 %v1721_v41, %v3857_v55 }
 0x218   : > { %v2100_v59 = vadd.f32 %v2068_v11, %v1812_v5  ;;  %v2686_v54 = vpop.eup %2685  ;;  %v2000_v43 = vmul.f32 0.6931472, %v2684_v35  ;;  %1686 = vst [vmem:[#allocation2 + $0x28] sm:$0xff] %v1654_v19  ;;  %v1559_v28 = vsub.f32 %v1509_v21, %v1285_v12  ;;  %v1943_v14 = vadd.f32 1e-07, %v1509_v21 }
 0x219   : > { %2697 = vlog2.f32 %v1847_v13  ;;  %v1287_v57 = vmul.f32 %v2686_v54, %v3829_v56  ;;  %v1018_v51 = vmul.f32 %v886_v38, %v886_v38  ;;  %v954_v6 = vmul.f32 %v631_v23, %v631_v23  ;;  %1785 = vst [vmem:[#allocation3 + $0x28] sm:$0xff] %v1753_v26 }
 0x21a   : > { %2132 = vst [vmem:[#allocation4 + $0xf0] sm:$0xff] %v2100_v59  ;;  %v2037_v25 = vsub.f32 %v1904_v3, %v2000_v43  ;;  %v1623_v31 = vmul.f32 %v1559_v28, %v1559_v28  ;;  %2699 = vlog2.f32 %v1943_v14  ;;  %v1050_v0 = vmul.f32 %v888_v22, %v888_v22  ;;  %v1593_v59 = vld [vmem:[#allocation2 + $0x20] sm:$0xff]  ;;  %v1815_v22 = vld [vmem:[#allocation4 + $0xc8] sm:$0xff] }
 0x21b   : > { %v1289_v32 = vsel %vm1288_vm4, %v3829_v56, %v1287_v57  ;;  %vm1290_vm5 = vcmp.eq.f32.partialorder %v3829_v56, 0.0  ;;  %v3884_v7 = vadd.f32 %v954_v6, %v922_v53  ;;  %vm1512_vm6 = vcmp.eq.f32.partialorder %v3843_v37, inf }
 0x21c   : > { %v2688_v34 = vpop.eup %2687  ;;  %v2069_v10 = vand.u32 2147483647, %v2037_v25  ;;  %v1655_v39 = vadd.f32 %v1623_v31, %v1591_v61  ;;  %v1292_v40 = vsel %vm1290_vm5, %v1291_v24, %v1289_v32  ;;  %v3886_v48 = vadd.f32 %v1050_v0, %v1018_v51 }
 0x21d   : > { %v2690_v2 = vpop.eup %2689  ;;  %v1848_v1 = vadd.f32 1e-07, %v1292_v40  ;;  %2701 = vrsqrt.f32 %v3884_v7  ;;  %v1906_v15 = vmul.f32 0.6931472, %v2688_v34  ;;  %vm1514_vm7 = vcmp.eq.f32.partialorder %v3843_v37, 0.0 }
 0x21e   : > { %v2101_v8 = vadd.f32 %v2069_v10, %v1813_v33  ;;  %1687 = vst [vmem:[#allocation2 + $0xa0] sm:$0xff] %v1655_v39  ;;  %v1511_v9 = vmul.f32 %v2690_v2, %v3843_v37  ;;  %v1515_v44 = vand.u32 2147483648, %v3843_v37  ;;  %v1754_v16 = vadd.f32 %v1722_v18, %v3886_v48  ;;  %v1594_v2 = vld [vmem:[#allocation2 + $0x98] sm:$0xff] }
 0x21f   : > { %v2692_v56 = vpop.eup %2691  ;;  %2703 = vlog2.f32 %v1848_v1  ;;  %vm1295_vm8 = vcmp.eq.f32.partialorder %v3852_v20, inf  ;;  %vm1297_vm9 = vcmp.eq.f32.partialorder %v3852_v20, 0.0  ;;  %v1298_v27 = vand.u32 2147483648, %v3852_v20 }
 0x220   : > { %2133 = vst [vmem:[#allocation4 + $0x50] sm:$0xff] %v2101_v8  ;;  %v1513_v17 = vsel %vm1512_vm6, %v3843_v37, %v1511_v9  ;;  %v1294_v46 = vmul.f32 %v2692_v56, %v3852_v20  ;;  %2705 = vrsqrt.f32 %v3886_v48  ;;  %1786 = vst [vmem:[#allocation3 + $0x98] sm:$0xff] %v1754_v16  ;;  %vm1519_vm10 = vcmp.eq.f32.partialorder %v3857_v55, inf  ;;  %v1816_v8 = vld [vmem:[#allocation4 + $0x98] sm:$0xff]  ;;  %v1817_v16 = vld [vmem:[#allocation4 + $0x60] sm:$0xff] }
 0x221   : > { %v2694_v52 = vpop.eup %2693  ;;  %v1516_v29 = vsel %vm1514_vm7, %v1515_v44, %v1513_v17  ;;  %vm1521_vm11 = vcmp.eq.f32.partialorder %v3857_v55, 0.0  ;;  %v1522_v11 = vand.u32 2147483648, %v3857_v55  ;;  %vm1302_vm12 = vcmp.eq.f32.partialorder %v3884_v7, inf }
 0x222   : > { %v2696_v60 = vpop.eup %2695  ;;  %v2002_v30 = vmul.f32 0.6931472, %v2694_v52  ;;  %v1560_v42 = vsub.f32 %v1516_v29, %v1292_v40  ;;  %v1944_v62 = vadd.f32 1e-07, %v1516_v29  ;;  %v1296_v37 = vsel %vm1295_vm8, %v3852_v20, %v1294_v46 }
 0x223   : > { %v1299_v36 = vsel %vm1297_vm9, %v1298_v27, %v1296_v37  ;;  %v1518_v50 = vmul.f32 %v2696_v60, %v3857_v55  ;;  %v1305_v14 = vand.u32 2147483648, %v3884_v7  ;;  %vm1304_vm13 = vcmp.eq.f32.partialorder %v3884_v7, 0.0  ;;  %v1818_v37 = vld [vmem:[#allocation4 + $0x8] sm:$0xff] }
 0x224   : > { %v2038_v38 = vsub.f32 %v1906_v15, %v2002_v30  ;;  %v1624_v4 = vmul.f32 %v1560_v42, %v1560_v42  ;;  %2707 = vlog2.f32 %v1944_v62  ;;  %v1849_v5 = vadd.f32 1e-07, %v1299_v36 }
 0x225   : > { %v1520_v45 = vsel %vm1519_vm10, %v3857_v55, %v1518_v50  ;;  %vm1526_vm14 = vcmp.eq.f32.partialorder %v3886_v48, inf  ;;  %v1529_v31 = vand.u32 2147483648, %v3886_v48  ;;  %vm1528_vm15 = vcmp.eq.f32.partialorder %v3886_v48, 0.0 }
 0x226   : > { %v2698_v58 = vpop.eup %2697  ;;  %v2070_v20 = vand.u32 2147483647, %v2038_v38  ;;  %v1656_v3 = vadd.f32 %v1624_v4, %v1592_v63  ;;  %2709 = vlog2.f32 %v1849_v5  ;;  %v1523_v13 = vsel %vm1521_vm11, %v1522_v11, %v1520_v45 }
 0x227   : > { %v1908_v12 = vmul.f32 0.6931472, %v2698_v58  ;;  %v2700_v19 = vpop.eup %2699  ;;  %v1561_v23 = vsub.f32 %v1523_v13, %v1299_v36  ;;  %v1945_v35 = vadd.f32 1e-07, %v1523_v13 }
 0x228   : > { %v2102_v49 = vadd.f32 %v2070_v20, %v1814_v47  ;;  %v2004_v41 = vmul.f32 0.6931472, %v2700_v19  ;;  %1688 = vst [vmem:[#allocation2 + $0xf8] sm:$0xff] %v1656_v3 }
 0x229   : > { %v1625_v53 = vmul.f32 %v1561_v23, %v1561_v23  ;;  %2711 = vlog2.f32 %v1945_v35 }
 0x22a   : > { %v2702_v21 = vpop.eup %2701  ;;  %2134 = vst [vmem:[#allocation4 + $0x88] sm:$0xff] %v2102_v49  ;;  %v2039_v24 = vsub.f32 %v1908_v12, %v2004_v41 }
 0x22b   : > { %v1301_v55 = vmul.f32 %v2702_v21, %v3884_v7  ;;  %v1657_v28 = vadd.f32 %v1625_v53, %v1593_v59 }
 0x22c   : > { %v2704_v54 = vpop.eup %2703  ;;  %v2071_v43 = vand.u32 2147483647, %v2039_v24 }
 0x22d   : > { %v2706_v61 = vpop.eup %2705  ;;  %v1303_v57 = vsel %vm1302_vm12, %v3884_v7, %v1301_v55  ;;  %1689 = vst [vmem:[#allocation2 + $0x20] sm:$0xff] %v1657_v28  ;;  %v1910_v0 = vmul.f32 0.6931472, %v2704_v54 }
 0x22e   : > { %v2103_v26 = vadd.f32 %v2071_v43, %v1815_v22  ;;  %v1306_v51 = vsel %vm1304_vm13, %v1305_v14, %v1303_v57  ;;  %v1525_v6 = vmul.f32 %v2706_v61, %v3886_v48 }
 0x22f   : > { %v1850_v25 = vadd.f32 1e-07, %v1306_v51 }
 0x230   : > { %2135 = vst [vmem:[#allocation4 + $0xc8] sm:$0xff] %v2103_v26  ;;  %v1527_v33 = vsel %vm1526_vm14, %v3886_v48, %v1525_v6 }
 0x231   : > { %v2708_v32 = vpop.eup %2707  ;;  %2713 = vlog2.f32 %v1850_v25  ;;  %v1530_v34 = vsel %vm1528_vm15, %v1529_v31, %v1527_v33 }
 0x232   : > { %v2006_v7 = vmul.f32 0.6931472, %v2708_v32  ;;  %v1562_v10 = vsub.f32 %v1530_v34, %v1306_v51  ;;  %v1946_v39 = vadd.f32 1e-07, %v1530_v34 }
 0x233   : > { %v2710_v40 = vpop.eup %2709 }
 0x234   : > { %v2040_v1 = vsub.f32 %v1910_v0, %v2006_v7  ;;  %v1626_v18 = vmul.f32 %v1562_v10, %v1562_v10  ;;  %2715 = vlog2.f32 %v1946_v39  ;;  %v1912_v56 = vmul.f32 0.6931472, %v2710_v40 }
 0x236   : > { %v2072_v9 = vand.u32 2147483647, %v2040_v1  ;;  %v1658_v15 = vadd.f32 %v1626_v18, %v1594_v2  ;;  %v2712_v44 = vpop.eup %2711 }
 0x237   : > { %v2008_v46 = vmul.f32 0.6931472, %v2712_v44 }
 0x238   : > { %v2104_v17 = vadd.f32 %v2072_v9, %v1816_v8  ;;  %1690 = vst [vmem:[#allocation2 + $0x98] sm:$0xff] %v1658_v15 }
 0x239   : > { %v2041_v48 = vsub.f32 %v1912_v56, %v2008_v46 }
 0x23a   : > { %2136 = vst [vmem:[#allocation4 + $0x98] sm:$0xff] %v2104_v17 }
 0x23b   : > { %v2073_v52 = vand.u32 2147483647, %v2041_v48 }
 0x23d   : > { %v2105_v27 = vadd.f32 %v2073_v52, %v1817_v16 }
 0x23e   : > { %v2714_v29 = vpop.eup %2713 }
 0x23f   : > { %2137 = vst [vmem:[#allocation4 + $0x60] sm:$0xff] %v2105_v27  ;;  %v1914_v60 = vmul.f32 0.6931472, %v2714_v29 }
 0x241   : > { %v2716_v30 = vpop.eup %2715 }
 0x242   : > { %v2010_v42 = vmul.f32 0.6931472, %v2716_v30 }
 0x244   : > { %v2042_v62 = vsub.f32 %v1914_v60, %v2010_v42 }
 0x246   : > { %v2074_v63 = vand.u32 2147483647, %v2042_v62  ;;  %2142 = sbr.rel (%p2433_p5) target bundleno = 860 (0x35c), region = 40 }
 0x248   : > { %v2106_v36 = vadd.f32 %v2074_v63, %v1818_v37 }
 0x24a   : > { %2138 = vst [vmem:[#allocation4 + $0x8] sm:$0xff] %v2106_v36 }
 0x24b   : > { %v2291_v50 = vld [vmem:[#allocation4 + $0xb0] sm:$0xff]  ;;  %v2292_v38 = vld [vmem:[#allocation4 + $0xb8] sm:$0xff]  ;;  %v2293_v4 = vld [vmem:[#allocation4 + $0xc0] sm:$0xff] }
 0x24c   : > { %v2323_v5 = vadd.f32 %v2292_v38, %v2291_v50  ;;  %v2294_v58 = vld [vmem:[#allocation4 + $0x10] sm:$0xff]  ;;  %v2295_v45 = vld [vmem:[#allocation4 + $0x28] sm:$0xff]  ;;  %v2144_v23 = vld [vmem:[#allocation2] sm:$0xff] }
 0x24d   : > { %v2296_v20 = vld [vmem:[#allocation4 + $0x30] sm:$0xff]  ;;  %v2298_v13 = vld [vmem:[#allocation4 + $0x68] sm:$0xff]  ;;  %v2145_v35 = vld [vmem:[#allocation2 + $0xd8] sm:$0xff] }
 0x24e   : > { %v2324_v47 = vadd.f32 %v2323_v5, %v2293_v4  ;;  %v2297_v3 = vld [vmem:[#allocation4 + $0xd0] sm:$0xff]  ;;  %v2299_v59 = vld [vmem:[#allocation4 + $0x58] sm:$0xff]  ;;  %v2300_v22 = vld [vmem:[#allocation4] sm:$0xff] }
 0x24f   : > { %v2143_v49 = vld [vmem:[#allocation2 + $0xb0] sm:$0xff]  ;;  %v2146_v53 = vld [vmem:[#allocation2 + $0x18] sm:$0xff]  ;;  %v2301_v28 = vld [vmem:[#allocation4 + $0x48] sm:$0xff] }
 0x250   : > { %v2325_v11 = vadd.f32 %v2324_v47, %v2294_v58  ;;  %v2175_v21 = vadd.f32 %v2144_v23, %v2143_v49  ;;  %v2147_v43 = vld [vmem:[#allocation2 + $0x50] sm:$0xff]  ;;  %v2148_v57 = vld [vmem:[#allocation2 + $0x68] sm:$0xff]  ;;  %v2302_v26 = vld [vmem:[#allocation4 + $0x40] sm:$0xff] }
 0x251   : > { %v2149_v25 = vld [vmem:[#allocation2 + $0x30] sm:$0xff]  ;;  %v2303_v31 = vld [vmem:[#allocation4 + $0x78] sm:$0xff]  ;;  %v2150_v32 = vld [vmem:[#allocation2 + $0x48] sm:$0xff] }
 0x252   : > { %v2326_v12 = vadd.f32 %v2325_v11, %v2295_v45  ;;  %v2176_v55 = vadd.f32 %v2175_v21, %v2145_v35  ;;  %v2217_v34 = vld [vmem:[#allocation3 + $0x80] sm:$0xff]  ;;  %v2218_v7 = vld [vmem:[#allocation3 + $0xc8] sm:$0xff]  ;;  %v2304_v10 = vld [vmem:[#allocation4 + $0xd8] sm:$0xff] }
 0x253   : > { %v2219_v40 = vld [vmem:[#allocation3 + $0xe8] sm:$0xff]  ;;  %v2249_v2 = vadd.f32 %v2218_v7, %v2217_v34  ;;  %v2151_v18 = vld [vmem:[#allocation2 + $0x80] sm:$0xff]  ;;  %v2220_v8 = vld [vmem:[#allocation3 + $0x78] sm:$0xff] }
 0x254   : > { %v2327_v19 = vadd.f32 %v2326_v12, %v2296_v20  ;;  %v2177_v14 = vadd.f32 %v2176_v55, %v2146_v53  ;;  %v2305_v9 = vld [vmem:[#allocation4 + $0xe0] sm:$0xff]  ;;  %v2152_v17 = vld [vmem:[#allocation2 + $0x88] sm:$0xff]  ;;  %v2222_v60 = vld [vmem:[#allocation3 + $0x90] sm:$0xff] }
 0x255   : > { %v2250_v15 = vadd.f32 %v2249_v2, %v2219_v40  ;;  %v2221_v46 = vld [vmem:[#allocation3 + $0x8] sm:$0xff]  ;;  %v2306_v48 = vld [vmem:[#allocation4 + $0x80] sm:$0xff]  ;;  %v2154_v63 = vld [vmem:[#allocation2 + $0xb8] sm:$0xff] }
 0x256   : > { %v2328_v41 = vadd.f32 %v2327_v19, %v2297_v3  ;;  %v2178_v51 = vadd.f32 %v2177_v14, %v2147_v43  ;;  %v2153_v27 = vld [vmem:[#allocation2 + $0xe8] sm:$0xff]  ;;  %v2307_v30 = vld [vmem:[#allocation4 + $0xa0] sm:$0xff]  ;;  %v2223_v36 = vld [vmem:[#allocation3 + $0x58] sm:$0xff] }
 0x257   : > { %v2251_v52 = vadd.f32 %v2250_v15, %v2220_v8  ;;  %v2308_v50 = vld [vmem:[#allocation4 + $0x18] sm:$0xff]  ;;  %v2155_v58 = vld [vmem:[#allocation2 + $0x60] sm:$0xff]  ;;  %v2224_v47 = vld [vmem:[#allocation3 + $0xa8] sm:$0xff] }
 0x258   : > { %v2329_v24 = vadd.f32 %v2328_v41, %v2298_v13  ;;  %v2179_v0 = vadd.f32 %v2178_v51, %v2148_v57  ;;  %v2309_v45 = vld [vmem:[#allocation4 + $0xf8] sm:$0xff]  ;;  %v2156_v3 = vld [vmem:[#allocation2 + $0xf0] sm:$0xff]  ;;  %v2310_v13 = vld [vmem:[#allocation4 + $0xe8] sm:$0xff] }
 0x259   : > { %v2252_v62 = vadd.f32 %v2251_v52, %v2221_v46  ;;  %v2225_v19 = vld [vmem:[#allocation3 + $0xd0] sm:$0xff]  ;;  %v2157_v35 = vld [vmem:[#allocation2 + $0x8] sm:$0xff]  ;;  %v2158_v55 = vld [vmem:[#allocation2 + $0x78] sm:$0xff] }
 0x25a   : > { %v2330_v54 = vadd.f32 %v2329_v24, %v2299_v59  ;;  %v2180_v39 = vadd.f32 %v2179_v0, %v2149_v25  ;;  %v2226_v59 = vld [vmem:[#allocation3 + $0xb0] sm:$0xff]  ;;  %v2312_v43 = vld [vmem:[#allocation4 + $0x20] sm:$0xff]  ;;  %v2159_v57 = vld [vmem:[#allocation2 + $0x38] sm:$0xff] }
 0x25b   : > { %v2253_v4 = vadd.f32 %v2252_v62, %v2222_v60  ;;  %v2311_v21 = vld [vmem:[#allocation4 + $0x90] sm:$0xff]  ;;  %v2313_v51 = vld [vmem:[#allocation4 + $0x38] sm:$0xff]  ;;  %v2230_v40 = vld [vmem:[#allocation3 + $0x60] sm:$0xff] }
 0x25c   : > { %v2331_v61 = vadd.f32 %v2330_v54, %v2300_v22  ;;  %v2181_v56 = vadd.f32 %v2180_v39, %v2150_v32  ;;  %v2227_v54 = vld [vmem:[#allocation3 + $0x38] sm:$0xff]  ;;  %v2314_v32 = vld [vmem:[#allocation4 + $0x70] sm:$0xff]  ;;  %v2161_v39 = vld [vmem:[#allocation2 + $0x40] sm:$0xff] }
 0x25d   : > { %v2254_v20 = vadd.f32 %v2253_v4, %v2223_v36  ;;  %v2160_v0 = vld [vmem:[#allocation2 + $0x58] sm:$0xff]  ;;  %v2315_v2 = vld [vmem:[#allocation4 + $0xa8] sm:$0xff]  ;;  %v2316_v15 = vld [vmem:[#allocation4 + $0xf0] sm:$0xff] }
 0x25e   : > { %v2332_v6 = vadd.f32 %v2331_v61, %v2301_v28  ;;  %v2182_v16 = vadd.f32 %v2181_v56, %v2151_v18  ;;  %v2231_v56 = vld [vmem:[#allocation3 + $0x18] sm:$0xff]  ;;  %v2317_v52 = vld [vmem:[#allocation4 + $0x50] sm:$0xff]  ;;  %v2318_v62 = vld [vmem:[#allocation4 + $0x88] sm:$0xff] }
 0x25f   : > { %v2255_v41 = vadd.f32 %v2254_v20, %v2224_v47  ;;  %v2319_v4 = vld [vmem:[#allocation4 + $0xc8] sm:$0xff]  ;;  %v2320_v20 = vld [vmem:[#allocation4 + $0x98] sm:$0xff] }
 0x260   : > { %v2333_v33 = vadd.f32 %v2332_v6, %v2302_v26  ;;  %v2183_v42 = vadd.f32 %v2182_v16, %v2152_v17  ;;  %v2228_v26 = vld [vmem:[#allocation3 + $0x40] sm:$0xff]  ;;  %v2232_v16 = vld [vmem:[#allocation3 + $0x68] sm:$0xff] }
 0x261   : > { %v2256_v53 = vadd.f32 %v2255_v41, %v2225_v19  ;;  %v2321_v41 = vld [vmem:[#allocation4 + $0x60] sm:$0xff] }
 0x262   : > { %v2334_v1 = vadd.f32 %v2333_v33, %v2303_v31  ;;  %v2184_v38 = vadd.f32 %v2183_v42, %v2153_v27  ;;  %v2229_v33 = vld [vmem:[#allocation3 + $0xe0] sm:$0xff]  ;;  %v2233_v42 = vld [vmem:[#allocation3 + $0x10] sm:$0xff] }
 0x263   : > { %v2257_v14 = vadd.f32 %v2256_v53, %v2226_v59  ;;  %v2322_v53 = vld [vmem:[#allocation4 + $0x8] sm:$0xff] }
 0x264   : > { %v2335_v44 = vadd.f32 %v2334_v1, %v2304_v10  ;;  %v2185_v11 = vadd.f32 %v2184_v38, %v2154_v63  ;;  %v2234_v38 = vld [vmem:[#allocation3 + $0x70] sm:$0xff] }
 0x265   : > { %v2258_v25 = vadd.f32 %v2257_v14, %v2227_v54 }
 0x266   : > { %v2336_v29 = vadd.f32 %v2335_v44, %v2305_v9  ;;  %v2186_v49 = vadd.f32 %v2185_v11, %v2155_v58  ;;  %v2162_v9 = vld [vmem:[#allocation2 + $0xc8] sm:$0xff]  ;;  %v2235_v11 = vld [vmem:[#allocation3 + $0x50] sm:$0xff] }
 0x267   : > { %v2259_v7 = vadd.f32 %v2258_v25, %v2228_v26  ;;  %v2170_v26 = vld [vmem:[#allocation2 + $0x28] sm:$0xff] }
 0x268   : > { %v2337_v37 = vadd.f32 %v2336_v29, %v2306_v48  ;;  %v2187_v24 = vadd.f32 %v2186_v49, %v2156_v3  ;;  %v2163_v48 = vld [vmem:[#allocation2 + $0xe0] sm:$0xff] }
 0x269   : > { %v2260_v18 = vadd.f32 %v2259_v7, %v2229_v33  ;;  %v2236_v49 = vld [vmem:[#allocation3 + $0xa0] sm:$0xff]  ;;  %v2241_v7 = vld [vmem:[#allocation3 + $0x88] sm:$0xff] }
 0x26a   : > { %v2338_v5 = vadd.f32 %v2337_v37, %v2307_v30  ;;  %v2188_v28 = vadd.f32 %v2187_v24, %v2157_v35  ;;  %v2164_v30 = vld [vmem:[#allocation2 + $0x90] sm:$0xff]  ;;  %v2237_v24 = vld [vmem:[#allocation3 + $0xd8] sm:$0xff] }
 0x26b   : > { %v2261_v17 = vadd.f32 %v2260_v18, %v2230_v40  ;;  %v2173_v40 = vld [vmem:[#allocation2 + $0x20] sm:$0xff] }
 0x26c   : > { %v2339_v12 = vadd.f32 %v2338_v5, %v2308_v50  ;;  %v2189_v6 = vadd.f32 %v2188_v28, %v2158_v55  ;;  %v2165_v50 = vld [vmem:[#allocation2 + $0x70] sm:$0xff] }
 0x26d   : > { %v2262_v27 = vadd.f32 %v2261_v17, %v2231_v56  ;;  %v2238_v28 = vld [vmem:[#allocation3 + $0x30] sm:$0xff] }
 0x26e   : > { %v2340_v23 = vadd.f32 %v2339_v12, %v2309_v45  ;;  %v2190_v34 = vadd.f32 %v2189_v6, %v2159_v57  ;;  %v2166_v45 = vld [vmem:[#allocation2 + $0xc0] sm:$0xff] }
 0x26f   : > { %v2263_v63 = vadd.f32 %v2262_v27, %v2232_v16  ;;  %v2247_v27 = vld [vmem:[#allocation3 + $0x28] sm:$0xff] }
 0x270   : > { %v2341_v22 = vadd.f32 %v2340_v23, %v2310_v13  ;;  %v2191_v1 = vadd.f32 %v2190_v34, %v2160_v0  ;;  %v2167_v13 = vld [vmem:[#allocation2 + $0xa8] sm:$0xff]  ;;  %v2240_v0 = vld [vmem:[#allocation3 + $0xf0] sm:$0xff]  ;;  %v2172_v34 = vld [vmem:[#allocation2 + $0xf8] sm:$0xff] }
 0x271   : > { %v2264_v58 = vadd.f32 %v2263_v63, %v2233_v42 }
 0x272   : > { %v2342_v61 = vadd.f32 %v2341_v22, %v2311_v21  ;;  %v2192_v44 = vadd.f32 %v2191_v1, %v2161_v39  ;;  %v2168_v21 = vld [vmem:[#allocation2 + $0xd0] sm:$0xff] }
 0x273   : > { %v2265_v3 = vadd.f32 %v2264_v58, %v2234_v38 }
 0x274   : > { %v2343_v31 = vadd.f32 %v2342_v61, %v2312_v43  ;;  %v2193_v29 = vadd.f32 %v2192_v44, %v2162_v9  ;;  %v2169_v43 = vld [vmem:[#allocation2 + $0x10] sm:$0xff]  ;;  %v2243_v9 = vld [vmem:[#allocation3 + $0xf8] sm:$0xff]  ;;  %v2244_v44 = vld [vmem:[#allocation3 + $0xc0] sm:$0xff] }
 0x275   : > { %v2266_v35 = vadd.f32 %v2265_v3, %v2235_v11 }
 0x276   : > { %v2344_v10 = vadd.f32 %v2343_v31, %v2313_v51  ;;  %v2194_v37 = vadd.f32 %v2193_v29, %v2163_v48  ;;  %v2239_v51 = vld [vmem:[#allocation3 + $0x20] sm:$0xff]  ;;  %v2245_v48 = vld [vmem:[#allocation3 + $0xb8] sm:$0xff] }
 0x277   : > { %v2267_v55 = vadd.f32 %v2266_v35, %v2236_v49  ;;  %v2171_v31 = vld [vmem:[#allocation2 + $0xa0] sm:$0xff] }
 0x278   : > { %v2345_v8 = vadd.f32 %v2344_v10, %v2314_v32  ;;  %v2195_v5 = vadd.f32 %v2194_v37, %v2164_v30  ;;  %v2248_v30 = vld [vmem:[#allocation3 + $0x98] sm:$0xff] }
 0x279   : > { %v2268_v61 = vadd.f32 %v2267_v55, %v2237_v24 }
 0x27a   : > { %v2346_v46 = vadd.f32 %v2345_v8, %v2315_v2  ;;  %v2196_v12 = vadd.f32 %v2195_v5, %v2165_v50  ;;  %v2242_v2 = vld [vmem:[#allocation3 + $0x48] sm:$0xff]  ;;  %v2174_v8 = vld [vmem:[#allocation2 + $0x98] sm:$0xff] }
 0x27b   : > { %v2269_v25 = vadd.f32 %v2268_v61, %v2238_v28 }
 0x27c   : > { %v2347_v60 = vadd.f32 %v2346_v46, %v2316_v15  ;;  %v2197_v23 = vadd.f32 %v2196_v12, %v2166_v45 }
 0x27d   : > { %v2270_v32 = vadd.f32 %v2269_v25, %v2239_v51 }
 0x27e   : > { %v2348_v36 = vadd.f32 %v2347_v60, %v2317_v52  ;;  %v2198_v22 = vadd.f32 %v2197_v23, %v2167_v13  ;;  %v2246_v52 = vld [vmem:[#allocation3] sm:$0xff] }
 0x27f   : > { %v2271_v39 = vadd.f32 %v2270_v32, %v2240_v0 }
 0x280   : > { %v2349_v47 = vadd.f32 %v2348_v36, %v2318_v62  ;;  %v2199_v14 = vadd.f32 %v2198_v22, %v2168_v21 }
 0x281   : > { %v2272_v18 = vadd.f32 %v2271_v39, %v2241_v7 }
 0x282   : > { %v2350_v19 = vadd.f32 %v2349_v47, %v2319_v4  ;;  %v2200_v6 = vadd.f32 %v2199_v14, %v2169_v43 }
 0x283   : > { %v2273_v15 = vadd.f32 %v2272_v18, %v2242_v2 }
 0x284   : > { %v2351_v59 = vadd.f32 %v2350_v19, %v2320_v20  ;;  %v2201_v33 = vadd.f32 %v2200_v6, %v2170_v26 }
 0x285   : > { %v2274_v46 = vadd.f32 %v2273_v15, %v2243_v9 }
 0x286   : > { %v2352_v54 = vadd.f32 %v2351_v59, %v2321_v41  ;;  %v2202_v10 = vadd.f32 %v2201_v33, %v2171_v31 }
 0x287   : > { %v2275_v16 = vadd.f32 %v2274_v46, %v2244_v44 }
 0x288   : > { %v2353_v57 = vadd.f32 %v2352_v54, %v2322_v53  ;;  %v2203_v1 = vadd.f32 %v2202_v10, %v2172_v34 }
 0x289   : > { %v2276_v29 = vadd.f32 %v2275_v16, %v2245_v48 }
 0x28a   : > { %2354 = vadd.xlane.f32.xlu1 %v2353_v57  ;;  %v2204_v56 = vadd.f32 %v2203_v1, %v2173_v40 }
 0x28b   : > { %v2277_v60 = vadd.f32 %v2276_v29, %v2246_v52 }
 0x28c   : > { %v2205_v17 = vadd.f32 %v2204_v56, %v2174_v8 }
 0x28d   : > { %v2278_v42 = vadd.f32 %v2277_v60, %v2247_v27 }
 0x28e   : > { %2206 = vadd.xlane.f32.xlu0 %v2205_v17 }
 0x28f   : > { %v2279_v62 = vadd.f32 %v2278_v42, %v2248_v30 }
 0x292   : > { %2280 = vadd.xlane.f32.xlu0 %v2279_v62 }
 0x313   : > { %v2355_v37 = vpop.xlane.xlu1 %2354 }
 0x314   : > { %v2356_v50 = vrot.slane %v2355_v37, 4 }
 0x316   : > { %v2357_v5 = vadd.f32 %v2356_v50, %v2355_v37 }
 0x317   : > { %v2207_v63 = vpop.xlane.xlu0 %2206 }
 0x318   : > { %v2208_v36 = vrot.slane %v2207_v63, 4  ;;  %v2358_v45 = vrot.slane %v2357_v5, 2 }
 0x31a   : > { %v2209_v38 = vadd.f32 %v2208_v36, %v2207_v63  ;;  %v2359_v19 = vadd.f32 %v2358_v45, %v2357_v5 }
 0x31b   : > { %v2281_v11 = vpop.xlane.xlu0 %2280 }
 0x31c   : > { %v2210_v4 = vrot.slane %v2209_v38, 2  ;;  %v2282_v20 = vrot.slane %v2281_v11, 4  ;;  %v2360_v41 = vrot.slane %v2359_v19, 1 }
 0x31e   : > { %v2211_v58 = vadd.f32 %v2210_v4, %v2209_v38  ;;  %v2283_v3 = vadd.f32 %v2282_v20, %v2281_v11  ;;  %v2361_v59 = vadd.f32 %v2360_v41, %v2359_v19 }
 0x320   : > { %v2212_v47 = vrot.slane %v2211_v58, 1  ;;  %v2284_v13 = vrot.slane %v2283_v3, 2 }
 0x322   : > { %v2213_v12 = vadd.f32 %v2212_v47, %v2211_v58  ;;  %v2285_v49 = vadd.f32 %v2284_v13, %v2283_v3 }
 0x324   : > { %2438 = vpush %v2213_v12  ;;  %v2286_v23 = vrot.slane %v2285_v49, 1 }
 0x326   : > { %v2287_v35 = vadd.f32 %v2286_v23, %v2285_v49 }
 0x328   : > { %2440 = vpush %v2287_v35 }
 0x329   : > { %2442 = vpush %v2361_v59 }
 0x355   : > { %s2439_s18 = spop %2438 }
 0x356   : > { %2216 = sst [smem:[#allocation5]] %s2439_s18 }
 0x359   : > { %s2441_s21 = spop %2440 }
 0x35a   : > { %2290 = sst [smem:[#allocation5 + $0x1]] %s2441_s21  ;;  %s2443_s15 = spop %2442 }
 0x35b   : > { %2364 = sst [smem:[#allocation5 + $0x2]] %s2443_s15 }
 0x35c PF: > { %p2448_p6 = scmp.eq.s32.totalorder %s2772_s13, 1  ;;  %s2372_s19 = sshll.u32 %s3935_s3, 4  ;;  %s2373_s19 = int_to_ptr.vmem [resolvable:$true] %s2372_s19 }
 0x35d   : > { %s2717_s20 = scalar_lea.vmem %s2373_s19, 16  ;;  %p2724_p10 = scmp.lt.s32.totalorder %s2373_s19, %s2373_s19 }
 0x35e   : > { %p2718_p7 = scmp.ne.s32.totalorder %s2373_s19, %s2717_s20  ;;  %p2725_p11 = scmp.lt.s32.totalorder %s2717_s20, %s2717_s20 }
 0x360   : > { %p2719_p8 = pnand %p2718_p7, %p2448_p6  ;;  %p2726_p12 = por %p2725_p11, %p2724_p10 }
 0x362   : > { %p2720_p9 = pneg %p2719_p8 }
 0x364   : > { %p2727_p13 = pnand %p2726_p12, %p2720_p9 }
 0x366   : > { %2730 = shalt.err (!%p2727_p13)
}
 0x367   : > { %s2745_s22 = smov [#allocation5]  }
 0x368   : > { %2445 = dma.smem_to_vmem (%p2448_p6), %s2745_s22, 16, %s2373_s19, [#allocation6]  }
 0x369   : > { %2736 = dma.done.wait (%p2448_p6), [#allocation6], 16  }
 0x36a   : > { %2738 = vsyncadd (%p2448_p6), [#allocation6], 4294967280 }
 0x36b   : > { %2380 = sfence }
 0x36c PF: > { %s14_s12 = sadd.s32 1, %s2741_s12  }
 0x36d   : > { %p11_p0 = scmp.ge.s32.totalorder %s14_s12, 4  }
 0x36f   :  { %13 = sbr.rel (!%p11_p0) target bundleno = 1 (0x1), region = 73 }
 0x374   :  { %2386 = vsyncpa [#allocation6], 1 }
 0x375   :  { %2388 = vsyncpa [#allocation6 + $0x1], 1 }

</bundles_post_ra>
